<compile_context>
chip_gen: v5e
topology: v5e:2x2
jax: 0.10.0
libtpu: 0.0.40
codegen_flags: <defaults>
</compile_context>

<pallas_src>
import math

import jax
import jax.numpy as jnp
from jax.experimental import pallas as pl
from jax.experimental.pallas import tpu as pltpu

HIDDEN = 400
LATENT_PAD = 128          # latent dim (20) padded to one full 128-lane vreg


def _vae_kernel(
    x_ref, eps_ref,
    w1_ref, b1_ref,
    w2_ref, b2_ref,
    wh_ref, bh_ref,
    wd1_ref, bd1_ref,
    wd2_ref, bd2_ref,
    head_ref, out_ref,
):
    f32 = jnp.float32
    bf16 = jnp.bfloat16

    x = x_ref[...].astype(bf16)                                 # (bt, D)

    # ---------------- encoder ----------------
    h1 = jnp.dot(x, w1_ref[...], preferred_element_type=f32) + b1_ref[...]
    h1 = jnp.maximum(h1, 0.0)                                   # en_relu1

    h2 = jnp.dot(h1.astype(bf16), w2_ref[...], preferred_element_type=f32) + b2_ref[...]
    h2 = jnp.maximum(h2, 0.0)                                   # en_relu2

    # fused mu/logvar head: cols [0,128) = mu (padded), [128,256) = logvar (padded)
    head = jnp.dot(h2.astype(bf16), wh_ref[...], preferred_element_type=f32) + bh_ref[...]
    head_ref[...] = head                                        # lane-dense (bt, 256) store

    mu_pad = head[:, :LATENT_PAD]
    logvar_pad = head[:, LATENT_PAD:]

    # ------------- reparameterize -------------
    # Padding lanes: mu=0, logvar=0 -> std=1, eps=0  =>  z stays 0 there.
    std_pad = jnp.exp(0.5 * logvar_pad)
    z_pad = mu_pad + eps_ref[...] * std_pad                     # (bt, 128)

    # ---------------- decoder ----------------
    d1 = jnp.dot(z_pad.astype(bf16), wd1_ref[...], preferred_element_type=f32) + bd1_ref[...]
    d1 = jnp.maximum(d1, 0.0)                                   # de_relu1

    d2 = jnp.dot(d1.astype(bf16), wd2_ref[...], preferred_element_type=f32) + bd2_ref[...]
    out_ref[...] = jax.nn.sigmoid(d2)                           # lane-dense (bt, D_pad) store


def init_vae_params(key, input_dim_flat, latent_dim=20, hidden=HIDDEN):
    """Synthetic f32 parameters matching the nn.Linear layers.

    Weights stored already transposed: (in_features, out_features);
    biases as (1, out_features).
    """
    def linear(k, fan_in, fan_out):
        kw, kb = jax.random.split(k)
        bound = 1.0 / jnp.sqrt(fan_in)
        w = jax.random.uniform(kw, (fan_in, fan_out), jnp.float32, -bound, bound)
        b = jax.random.uniform(kb, (1, fan_out), jnp.float32, -bound, bound)
        return w, b

    keys = jax.random.split(key, 6)
    p = {}
    p["en_fc1_w"], p["en_fc1_b"] = linear(keys[0], input_dim_flat, hidden)
    p["en_fc2_w"], p["en_fc2_b"] = linear(keys[1], hidden, hidden)
    p["en_mu_w"], p["en_mu_b"] = linear(keys[2], hidden, latent_dim)
    p["en_lv_w"], p["en_lv_b"] = linear(keys[3], hidden, latent_dim)
    p["de_fc1_w"], p["de_fc1_b"] = linear(keys[4], latent_dim, hidden)
    p["de_fc2_w"], p["de_fc2_b"] = linear(keys[5], hidden, input_dim_flat)
    return p


def _prepare_kernel_params(params, latent_dim, input_dim_flat):
    """bf16 weights, fused+padded mu/logvar head, 128-padded latent, 896-padded output."""
    bf16 = jnp.bfloat16
    f32 = jnp.float32
    d_pad = pl.cdiv(input_dim_flat, 128) * 128

    w1 = params["en_fc1_w"].astype(bf16)
    b1 = params["en_fc1_b"].astype(f32)
    w2 = params["en_fc2_w"].astype(bf16)
    b2 = params["en_fc2_b"].astype(f32)

    # fused head: (HIDDEN, 256); [:,0:20] = mu, [:,128:148] = logvar, rest zero.
    wh = jnp.zeros((HIDDEN, 2 * LATENT_PAD), bf16)
    wh = wh.at[:, :latent_dim].set(params["en_mu_w"].astype(bf16))
    wh = wh.at[:, LATENT_PAD:LATENT_PAD + latent_dim].set(params["en_lv_w"].astype(bf16))
    bh = jnp.zeros((1, 2 * LATENT_PAD), f32)
    bh = bh.at[:, :latent_dim].set(params["en_mu_b"])
    bh = bh.at[:, LATENT_PAD:LATENT_PAD + latent_dim].set(params["en_lv_b"])

    # decoder fc1: zero-pad latent rows 20 -> 128.
    wd1 = jnp.zeros((LATENT_PAD, HIDDEN), bf16)
    wd1 = wd1.at[:latent_dim, :].set(params["de_fc1_w"].astype(bf16))
    bd1 = params["de_fc1_b"].astype(f32)

    # decoder fc2: zero-pad output cols 784 -> 896 for lane-dense stores.
    wd2 = jnp.zeros((HIDDEN, d_pad), bf16)
    wd2 = wd2.at[:, :input_dim_flat].set(params["de_fc2_w"].astype(bf16))
    bd2 = jnp.zeros((1, d_pad), f32)
    bd2 = bd2.at[:, :input_dim_flat].set(params["de_fc2_b"])

    return (w1, b1, w2, b2, wh, bh, wd1, bd1, wd2, bd2), d_pad


def vae_forward(x, eps, params, input_dim, block_b=256):
    """x: (B,) + input_dim float32 (NCHW).  eps: (B, latent_dim) float32."""
    B = x.shape[0]
    D = math.prod(input_dim)
    latent_dim = eps.shape[1]

    x_flat = x.reshape(B, D).astype(jnp.float32)               # torch .view(-1, 784)

    # ---- batch tiling (weights stay VMEM-resident across tiles) ----
    bt = min(block_b, B)
    nb = pl.cdiv(B, bt)
    B_pad = nb * bt
    if B_pad != B:
        x_flat = jnp.pad(x_flat, ((0, B_pad - B), (0, 0)))
        eps = jnp.pad(eps, ((0, B_pad - B), (0, 0)))
    eps_pad = jnp.pad(eps.astype(jnp.float32), ((0, 0), (0, LATENT_PAD - latent_dim)))

    weight_ops, D_pad = _prepare_kernel_params(params, latent_dim, D)
    operands = (x_flat, eps_pad) + weight_ops

    batch_map = lambda i: (i, 0)
    const_map = lambda i: (0, 0)
    in_specs = [
        pl.BlockSpec((bt, D), batch_map),                      # x
        pl.BlockSpec((bt, LATENT_PAD), batch_map),             # eps
        pl.BlockSpec((D, HIDDEN), const_map),                  # w1
        pl.BlockSpec((1, HIDDEN), const_map),                  # b1
        pl.BlockSpec((HIDDEN, HIDDEN), const_map),             # w2
        pl.BlockSpec((1, HIDDEN), const_map),                  # b2
        pl.BlockSpec((HIDDEN, 2 * LATENT_PAD), const_map),     # fused mu/logvar weight
        pl.BlockSpec((1, 2 * LATENT_PAD), const_map),          # fused bias
        pl.BlockSpec((LATENT_PAD, HIDDEN), const_map),         # wd1 (latent-padded)
        pl.BlockSpec((1, HIDDEN), const_map),                  # bd1
        pl.BlockSpec((HIDDEN, D_pad), const_map),              # wd2 (lane-padded)
        pl.BlockSpec((1, D_pad), const_map),                   # bd2
    ]
    out_specs = (
        pl.BlockSpec((bt, 2 * LATENT_PAD), batch_map),         # packed [mu | logvar]
        pl.BlockSpec((bt, D_pad), batch_map),                  # sigmoid output (padded)
    )

    flops = 2 * B_pad * (D * HIDDEN + HIDDEN * HIDDEN + HIDDEN * 2 * LATENT_PAD
                         + LATENT_PAD * HIDDEN + HIDDEN * D_pad)
    in_bytes = sum(int(a.size) * a.dtype.itemsize for a in operands)
    out_bytes = B_pad * (2 * LATENT_PAD + D_pad) * 4
    cost = pl.CostEstimate(
        flops=flops,
        transcendentals=B_pad * (LATENT_PAD + D_pad),
        bytes_accessed=in_bytes + out_bytes,
    )

    head, out_pad = pl.pallas_call(
        _vae_kernel,
        out_shape=(
            jax.ShapeDtypeStruct((B_pad, 2 * LATENT_PAD), jnp.float32),
            jax.ShapeDtypeStruct((B_pad, D_pad), jnp.float32),
        ),
        grid=(nb,),
        in_specs=in_specs,
        out_specs=out_specs,
        compiler_params=pltpu.CompilerParams(
            dimension_semantics=("parallel",),
            vmem_limit_bytes=16 << 20,
        ),
        cost_estimate=cost,
    )(*operands)

    mu = head[:B, :latent_dim]
    logvar = head[:B, LATENT_PAD:LATENT_PAD + latent_dim]
    output = out_pad[:B, :D].reshape((B,) + tuple(input_dim))
    return mu, logvar, output


def _vae_reference(x, eps, params, input_dim):
    """Pure-JAX f32 reference (mirrors the PyTorch module exactly)."""
    B = x.shape[0]
    D = math.prod(input_dim)
    xf = x.reshape(B, D)
    h1 = jnp.maximum(xf @ params["en_fc1_w"] + params["en_fc1_b"], 0.0)
    h2 = jnp.maximum(h1 @ params["en_fc2_w"] + params["en_fc2_b"], 0.0)
    mu = h2 @ params["en_mu_w"] + params["en_mu_b"]
    lv = h2 @ params["en_lv_w"] + params["en_lv_b"]
    z = mu + eps * jnp.exp(0.5 * lv)
    d1 = jnp.maximum(z @ params["de_fc1_w"] + params["de_fc1_b"], 0.0)
    d2 = d1 @ params["de_fc2_w"] + params["de_fc2_b"]
    return mu, lv, jax.nn.sigmoid(d2).reshape((B,) + tuple(input_dim))


if __name__ == "__main__":
    # MNIST-shaped VAE: input_dim = (1, 28, 28) -> 784 flat, latent_dim = 20.
    input_dim = (1, 28, 28)
    latent_dim = 20
    B = 2

    key = jax.random.PRNGKey(0)
    k_params, k_x, k_eps = jax.random.split(key, 3)

    params = init_vae_params(k_params, input_dim_flat=28 * 28, latent_dim=latent_dim)
    x = jax.random.uniform(k_x, (B,) + input_dim, jnp.float32)       # image-like input
    # TODO(synk): torch.randn_like inside reparameterize has no in-kernel RNG here;
    # the Gaussian noise eps is supplied explicitly for determinism.
    eps = jax.random.normal(k_eps, (B, latent_dim), jnp.float32)

    mu, logvar, output = vae_forward(x, eps, params, input_dim)
    jax.block_until_ready((mu, logvar, output))

    assert mu.shape == (B, latent_dim)
    assert logvar.shape == (B, latent_dim)
    assert output.shape == (B,) + input_dim
    assert bool(jnp.all(jnp.isfinite(mu)))
    assert bool(jnp.all(jnp.isfinite(logvar)))
    assert bool(jnp.all(jnp.isfinite(output)))

    # correctness vs f32 reference (bf16 weights -> loose tolerance)
    mu_r, lv_r, out_r = _vae_reference(x, eps, params, input_dim)
    assert bool(jnp.allclose(mu, mu_r, atol=5e-2, rtol=5e-2))
    assert bool(jnp.allclose(logvar, lv_r, atol=5e-2, rtol=5e-2))
    assert bool(jnp.allclose(output, out_r, atol=5e-2, rtol=5e-2))

    print("KERNEL_OK")
</pallas_src>

<mosaic_0001>
module attributes {stable_mosaic.version = 11 : i64} {
  func.func @_vae_kernel(%arg0: i32, %arg1: memref<2x784xf32, #tpu.memory_space<vmem>>, %arg2: memref<2x128xf32, #tpu.memory_space<vmem>>, %arg3: memref<784x400xbf16, #tpu.memory_space<vmem>>, %arg4: memref<1x400xf32, #tpu.memory_space<vmem>>, %arg5: memref<400x400xbf16, #tpu.memory_space<vmem>>, %arg6: memref<1x400xf32, #tpu.memory_space<vmem>>, %arg7: memref<400x256xbf16, #tpu.memory_space<vmem>>, %arg8: memref<1x256xf32, #tpu.memory_space<vmem>>, %arg9: memref<128x400xbf16, #tpu.memory_space<vmem>>, %arg10: memref<1x400xf32, #tpu.memory_space<vmem>>, %arg11: memref<400x896xbf16, #tpu.memory_space<vmem>>, %arg12: memref<1x896xf32, #tpu.memory_space<vmem>>, %arg13: memref<2x256xf32, #tpu.memory_space<vmem>>, %arg14: memref<2x896xf32, #tpu.memory_space<vmem>>) attributes {dimension_semantics = [#tpu.dimension_semantics<parallel>], iteration_bounds = array<i64: 1>, scalar_prefetch = 0 : i64, scratch_operands = 0 : i64, tpu.core_type = #tpu.core_type<tc>, window_params = [{transform_indices = @transform_0, window_bounds = array<i64: 2, 784>}, {transform_indices = @transform_1, window_bounds = array<i64: 2, 128>}, {pipeline_mode = #tpu.pipeline_mode<synchronous>, transform_indices = @transform_2, window_bounds = array<i64: 784, 400>}, {pipeline_mode = #tpu.pipeline_mode<synchronous>, transform_indices = @transform_3, window_bounds = array<i64: 1, 400>}, {pipeline_mode = #tpu.pipeline_mode<synchronous>, transform_indices = @transform_4, window_bounds = array<i64: 400, 400>}, {pipeline_mode = #tpu.pipeline_mode<synchronous>, transform_indices = @transform_5, window_bounds = array<i64: 1, 400>}, {pipeline_mode = #tpu.pipeline_mode<synchronous>, transform_indices = @transform_6, window_bounds = array<i64: 400, 256>}, {pipeline_mode = #tpu.pipeline_mode<synchronous>, transform_indices = @transform_7, window_bounds = array<i64: 1, 256>}, {pipeline_mode = #tpu.pipeline_mode<synchronous>, transform_indices = @transform_8, window_bounds = array<i64: 128, 400>}, {pipeline_mode = #tpu.pipeline_mode<synchronous>, transform_indices = @transform_9, window_bounds = array<i64: 1, 400>}, {pipeline_mode = #tpu.pipeline_mode<synchronous>, transform_indices = @transform_10, window_bounds = array<i64: 400, 896>}, {pipeline_mode = #tpu.pipeline_mode<synchronous>, transform_indices = @transform_11, window_bounds = array<i64: 1, 896>}, {transform_indices = @transform_12, window_bounds = array<i64: 2, 256>}, {transform_indices = @transform_13, window_bounds = array<i64: 2, 896>}]} {
    %c0 = arith.constant 0 : index
    %c0_0 = arith.constant 0 : index
    %0 = vector.load %arg1[%c0, %c0_0] : memref<2x784xf32, #tpu.memory_space<vmem>>, vector<2x784xf32>
    %1 = arith.truncf %0 : vector<2x784xf32> to vector<2x784xbf16>
    %c0_1 = arith.constant 0 : index
    %c0_2 = arith.constant 0 : index
    %2 = vector.load %arg3[%c0_1, %c0_2] : memref<784x400xbf16, #tpu.memory_space<vmem>>, vector<784x400xbf16>
    %cst = arith.constant dense<0.000000e+00> : vector<2x400xf32>
    %3 = tpu.matmul %1, %2, %cst {dimension_numbers = #tpu.dot_dimension_numbers<[1], [0], [0], [1], [0, 0, 1, 1], [], []>} : vector<2x784xbf16>, vector<784x400xbf16>, vector<2x400xf32> -> vector<2x400xf32>
    %c0_3 = arith.constant 0 : index
    %c0_4 = arith.constant 0 : index
    %4 = vector.load %arg4[%c0_3, %c0_4] : memref<1x400xf32, #tpu.memory_space<vmem>>, vector<1x400xf32>
    %5 = vector.broadcast %4 : vector<1x400xf32> to vector<2x400xf32>
    %6 = arith.addf %3, %5 : vector<2x400xf32>
    %cst_5 = arith.constant 0.000000e+00 : f32
    %7 = vector.broadcast %cst_5 : f32 to vector<2x400xf32>
    %8 = arith.maximumf %6, %7 : vector<2x400xf32>
    %9 = arith.truncf %8 : vector<2x400xf32> to vector<2x400xbf16>
    %c0_6 = arith.constant 0 : index
    %c0_7 = arith.constant 0 : index
    %10 = vector.load %arg5[%c0_6, %c0_7] : memref<400x400xbf16, #tpu.memory_space<vmem>>, vector<400x400xbf16>
    %cst_8 = arith.constant dense<0.000000e+00> : vector<2x400xf32>
    %11 = tpu.matmul %9, %10, %cst_8 {dimension_numbers = #tpu.dot_dimension_numbers<[1], [0], [0], [1], [0, 0, 1, 1], [], []>} : vector<2x400xbf16>, vector<400x400xbf16>, vector<2x400xf32> -> vector<2x400xf32>
    %c0_9 = arith.constant 0 : index
    %c0_10 = arith.constant 0 : index
    %12 = vector.load %arg6[%c0_9, %c0_10] : memref<1x400xf32, #tpu.memory_space<vmem>>, vector<1x400xf32>
    %13 = vector.broadcast %12 : vector<1x400xf32> to vector<2x400xf32>
    %14 = arith.addf %11, %13 : vector<2x400xf32>
    %cst_11 = arith.constant 0.000000e+00 : f32
    %15 = vector.broadcast %cst_11 : f32 to vector<2x400xf32>
    %16 = arith.maximumf %14, %15 : vector<2x400xf32>
    %17 = arith.truncf %16 : vector<2x400xf32> to vector<2x400xbf16>
    %c0_12 = arith.constant 0 : index
    %c0_13 = arith.constant 0 : index
    %18 = vector.load %arg7[%c0_12, %c0_13] : memref<400x256xbf16, #tpu.memory_space<vmem>>, vector<400x256xbf16>
    %cst_14 = arith.constant dense<0.000000e+00> : vector<2x256xf32>
    %19 = tpu.matmul %17, %18, %cst_14 {dimension_numbers = #tpu.dot_dimension_numbers<[1], [0], [0], [1], [0, 0, 1, 1], [], []>} : vector<2x400xbf16>, vector<400x256xbf16>, vector<2x256xf32> -> vector<2x256xf32>
    %c0_15 = arith.constant 0 : index
    %c0_16 = arith.constant 0 : index
    %20 = vector.load %arg8[%c0_15, %c0_16] : memref<1x256xf32, #tpu.memory_space<vmem>>, vector<1x256xf32>
    %21 = vector.broadcast %20 : vector<1x256xf32> to vector<2x256xf32>
    %22 = arith.addf %19, %21 : vector<2x256xf32>
    %c0_17 = arith.constant 0 : index
    %c0_18 = arith.constant 0 : index
    %23 = vector.load %arg13[%c0_17, %c0_18] : memref<2x256xf32, #tpu.memory_space<vmem>>, vector<2x256xf32>
    tpu.vector_store %arg13[%c0_17, %c0_18], %22 {strides = array<i32>} : memref<2x256xf32, #tpu.memory_space<vmem>>, vector<2x256xf32>,
    %24 = vector.extract_strided_slice %22 {offsets = [0, 0], sizes = [2, 128], strides = [1, 1]} : vector<2x256xf32> to vector<2x128xf32>
    %25 = vector.extract_strided_slice %22 {offsets = [0, 128], sizes = [2, 128], strides = [1, 1]} : vector<2x256xf32> to vector<2x128xf32>
    %cst_19 = arith.constant 5.000000e-01 : f32
    %26 = vector.broadcast %cst_19 : f32 to vector<2x128xf32>
    %27 = arith.mulf %26, %25 : vector<2x128xf32>
    %28 = math.exp %27 : vector<2x128xf32>
    %c0_20 = arith.constant 0 : index
    %c0_21 = arith.constant 0 : index
    %29 = vector.load %arg2[%c0_20, %c0_21] : memref<2x128xf32, #tpu.memory_space<vmem>>, vector<2x128xf32>
    %30 = arith.mulf %29, %28 : vector<2x128xf32>
    %31 = arith.addf %24, %30 : vector<2x128xf32>
    %32 = arith.truncf %31 : vector<2x128xf32> to vector<2x128xbf16>
    %c0_22 = arith.constant 0 : index
    %c0_23 = arith.constant 0 : index
    %33 = vector.load %arg9[%c0_22, %c0_23] : memref<128x400xbf16, #tpu.memory_space<vmem>>, vector<128x400xbf16>
    %cst_24 = arith.constant dense<0.000000e+00> : vector<2x400xf32>
    %34 = tpu.matmul %32, %33, %cst_24 {dimension_numbers = #tpu.dot_dimension_numbers<[1], [0], [0], [1], [0, 0, 1, 1], [], []>} : vector<2x128xbf16>, vector<128x400xbf16>, vector<2x400xf32> -> vector<2x400xf32>
    %c0_25 = arith.constant 0 : index
    %c0_26 = arith.constant 0 : index
    %35 = vector.load %arg10[%c0_25, %c0_26] : memref<1x400xf32, #tpu.memory_space<vmem>>, vector<1x400xf32>
    %36 = vector.broadcast %35 : vector<1x400xf32> to vector<2x400xf32>
    %37 = arith.addf %34, %36 : vector<2x400xf32>
    %cst_27 = arith.constant 0.000000e+00 : f32
    %38 = vector.broadcast %cst_27 : f32 to vector<2x400xf32>
    %39 = arith.maximumf %37, %38 : vector<2x400xf32>
    %40 = arith.truncf %39 : vector<2x400xf32> to vector<2x400xbf16>
    %c0_28 = arith.constant 0 : index
    %c0_29 = arith.constant 0 : index
    %41 = vector.load %arg11[%c0_28, %c0_29] : memref<400x896xbf16, #tpu.memory_space<vmem>>, vector<400x896xbf16>
    %cst_30 = arith.constant dense<0.000000e+00> : vector<2x896xf32>
    %42 = tpu.matmul %40, %41, %cst_30 {dimension_numbers = #tpu.dot_dimension_numbers<[1], [0], [0], [1], [0, 0, 1, 1], [], []>} : vector<2x400xbf16>, vector<400x896xbf16>, vector<2x896xf32> -> vector<2x896xf32>
    %c0_31 = arith.constant 0 : index
    %c0_32 = arith.constant 0 : index
    %43 = vector.load %arg12[%c0_31, %c0_32] : memref<1x896xf32, #tpu.memory_space<vmem>>, vector<1x896xf32>
    %44 = vector.broadcast %43 : vector<1x896xf32> to vector<2x896xf32>
    %45 = arith.addf %42, %44 : vector<2x896xf32>
    %46 = arith.negf %45 : vector<2x896xf32>
    %47 = math.exp %46 : vector<2x896xf32>
    %cst_33 = arith.constant 1.000000e+00 : f32
    %48 = vector.broadcast %cst_33 : f32 to vector<2x896xf32>
    %49 = arith.addf %48, %47 : vector<2x896xf32>
    %50 = arith.divf %48, %49 : vector<2x896xf32>
    %c0_34 = arith.constant 0 : index
    %c0_35 = arith.constant 0 : index
    %51 = vector.load %arg14[%c0_34, %c0_35] : memref<2x896xf32, #tpu.memory_space<vmem>>, vector<2x896xf32>
    tpu.vector_store %arg14[%c0_34, %c0_35], %50 {strides = array<i32>} : memref<2x896xf32, #tpu.memory_space<vmem>>, vector<2x896xf32>,
    return
  }
  func.func @transform_0(%arg0: i32) -> (i32, i32) {
    %c0_i32 = arith.constant 0 : i32
    %c0_i32_0 = arith.constant 0 : i32
    return %arg0, %c0_i32 : i32, i32
  }
  func.func @transform_1(%arg0: i32) -> (i32, i32) {
    %c0_i32 = arith.constant 0 : i32
    %c0_i32_0 = arith.constant 0 : i32
    return %arg0, %c0_i32 : i32, i32
  }
  func.func @transform_2(%arg0: i32) -> (i32, i32) {
    %c0_i32 = arith.constant 0 : i32
    %c0_i32_0 = arith.constant 0 : i32
    %c0_i32_1 = arith.constant 0 : i32
    return %c0_i32, %c0_i32_0 : i32, i32
  }
  func.func @transform_3(%arg0: i32) -> (i32, i32) {
    %c0_i32 = arith.constant 0 : i32
    %c0_i32_0 = arith.constant 0 : i32
    %c0_i32_1 = arith.constant 0 : i32
    return %c0_i32, %c0_i32_0 : i32, i32
  }
  func.func @transform_4(%arg0: i32) -> (i32, i32) {
    %c0_i32 = arith.constant 0 : i32
    %c0_i32_0 = arith.constant 0 : i32
    %c0_i32_1 = arith.constant 0 : i32
    return %c0_i32, %c0_i32_0 : i32, i32
  }
  func.func @transform_5(%arg0: i32) -> (i32, i32) {
    %c0_i32 = arith.constant 0 : i32
    %c0_i32_0 = arith.constant 0 : i32
    %c0_i32_1 = arith.constant 0 : i32
    return %c0_i32, %c0_i32_0 : i32, i32
  }
  func.func @transform_6(%arg0: i32) -> (i32, i32) {
    %c0_i32 = arith.constant 0 : i32
    %c0_i32_0 = arith.constant 0 : i32
    %c0_i32_1 = arith.constant 0 : i32
    return %c0_i32, %c0_i32_0 : i32, i32
  }
  func.func @transform_7(%arg0: i32) -> (i32, i32) {
    %c0_i32 = arith.constant 0 : i32
    %c0_i32_0 = arith.constant 0 : i32
    %c0_i32_1 = arith.constant 0 : i32
    return %c0_i32, %c0_i32_0 : i32, i32
  }
  func.func @transform_8(%arg0: i32) -> (i32, i32) {
    %c0_i32 = arith.constant 0 : i32
    %c0_i32_0 = arith.constant 0 : i32
    %c0_i32_1 = arith.constant 0 : i32
    return %c0_i32, %c0_i32_0 : i32, i32
  }
  func.func @transform_9(%arg0: i32) -> (i32, i32) {
    %c0_i32 = arith.constant 0 : i32
    %c0_i32_0 = arith.constant 0 : i32
    %c0_i32_1 = arith.constant 0 : i32
    return %c0_i32, %c0_i32_0 : i32, i32
  }
  func.func @transform_10(%arg0: i32) -> (i32, i32) {
    %c0_i32 = arith.constant 0 : i32
    %c0_i32_0 = arith.constant 0 : i32
    %c0_i32_1 = arith.constant 0 : i32
    return %c0_i32, %c0_i32_0 : i32, i32
  }
  func.func @transform_11(%arg0: i32) -> (i32, i32) {
    %c0_i32 = arith.constant 0 : i32
    %c0_i32_0 = arith.constant 0 : i32
    %c0_i32_1 = arith.constant 0 : i32
    return %c0_i32, %c0_i32_0 : i32, i32
  }
  func.func @transform_12(%arg0: i32) -> (i32, i32) {
    %c0_i32 = arith.constant 0 : i32
    %c0_i32_0 = arith.constant 0 : i32
    return %arg0, %c0_i32 : i32, i32
  }
  func.func @transform_13(%arg0: i32) -> (i32, i32) {
    %c0_i32 = arith.constant 0 : i32
    %c0_i32_0 = arith.constant 0 : i32
    return %arg0, %c0_i32 : i32, i32
  }
}

</mosaic_0001>

<bundles_post_ra>
// kernel: tpu_custom_call.1
= control target key start
LH: loop header
LB: loop body
LE: loop exit
PB: predicated region body
PF: predicated region fallthrough
CT: control target
= control target key end

     0   :  { %19 = vsyncpa [#allocation3], 0  ;;  %vm1260_vm0 = vcmask 130048   ;;  %s11377_s0 = inlined_call_operand.vmem [shape: f32[2,784], index: 0, kind: input, shape index: {}]   ;;  %s11378_s1 = inlined_call_operand.vmem [shape: f32[2,128], index: 1, kind: input, shape index: {}]   ;;  %s11379_s2 = inlined_call_operand.vmem [shape: bf16[784,400], index: 2, kind: input, shape index: {}]   ;;  %s11380_s3 = inlined_call_operand.vmem [shape: f32[1,400], index: 3, kind: input, shape index: {}]   ;;  %s11381_s4 = inlined_call_operand.vmem [shape: bf16[400,400], index: 4, kind: input, shape index: {}]   ;;  %s11382_s5 = inlined_call_operand.vmem [shape: f32[1,400], index: 5, kind: input, shape index: {}]   ;;  %s11383_s6 = inlined_call_operand.vmem [shape: bf16[400,256], index: 6, kind: input, shape index: {}]   ;;  %s11384_s7 = inlined_call_operand.vmem [shape: f32[1,256], index: 7, kind: input, shape index: {}]   ;;  %s11385_s8 = inlined_call_operand.vmem [shape: bf16[128,400], index: 8, kind: input, shape index: {}]   ;;  %s11386_s9 = inlined_call_operand.vmem [shape: f32[1,400], index: 9, kind: input, shape index: {}]   ;;  %s11387_s10 = inlined_call_operand.vmem [shape: bf16[400,896], index: 10, kind: input, shape index: {}]   ;;  %s11388_s11 = inlined_call_operand.vmem [shape: f32[1,896], index: 11, kind: input, shape index: {}]   ;;  %s11389_s12 = inlined_call_operand.hbm [shape: f32[2,256], index: 12, kind: output, shape index: {0}]   ;;  %s11390_s13 = inlined_call_operand.hbm [shape: f32[2,896], index: 13, kind: output, shape index: {1}]  }
   0x1   :  { %v4939_v0 = vld [vmem:[%s11379_s2 + $0xe0] sm:$0xf]  ;;  %v7091_v1 = vld [vmem:[%s11379_s2 + $0xec] sm:$0xf0] }
   0x2   :  { %v5067_v2 = vld [vmem:[%s11379_s2 + $0x1e0] sm:$0xf]  ;;  %v4940_v3 = vor.u32 %v7091_v1, %v4939_v0  ;;  %v7123_v4 = vld [vmem:[%s11379_s2 + $0x1ec] sm:$0xf0] }
   0x3   :  { %v5195_v5 = vld [vmem:[%s11379_s2 + $0x2e0] sm:$0xf]  ;;  %v7155_v6 = vld [vmem:[%s11379_s2 + $0x2ec] sm:$0xf0]  ;;  %v5068_v7 = vor.u32 %v7123_v4, %v5067_v2 }
   0x4   :  { %v5196_v8 = vor.u32 %v7155_v6, %v5195_v5  ;;  %v5323_v9 = vld [vmem:[%s11379_s2 + $0x3e0] sm:$0xf]  ;;  %v7187_v10 = vld [vmem:[%s11379_s2 + $0x3ec] sm:$0xf0]  ;;  %1264 = vmatpush.bf16.msra.mxu0 %v4940_v3 }
   0x5   :  { %v4923_v11 = vld [vmem:[%s11379_s2 + $0xc0] sm:$0xf]  ;;  %v5324_v12 = vor.u32 %v7187_v10, %v5323_v9  ;;  %v7087_v13 = vld [vmem:[%s11379_s2 + $0xcc] sm:$0xf0]  ;;  %1277 = vmatpush.bf16.msra.mxu1 %v5068_v7 }
   0x6   :  { %v5051_v14 = vld [vmem:[%s11379_s2 + $0x1c0] sm:$0xf]  ;;  %v7119_v15 = vld [vmem:[%s11379_s2 + $0x1cc] sm:$0xf0]  ;;  %1290 = vmatpush.bf16.msra.mxu2 %v5196_v8  ;;  %v4924_v16 = vor.u32 %v7087_v13, %v4923_v11 }
   0x7   :  { %v5052_v17 = vor.u32 %v7119_v15, %v5051_v14  ;;  %v5179_v18 = vld [vmem:[%s11379_s2 + $0x2c0] sm:$0xf]  ;;  %v7151_v19 = vld [vmem:[%s11379_s2 + $0x2cc] sm:$0xf0]  ;;  %1303 = vmatpush.bf16.msra.mxu3 %v5324_v12 }
   0x8   :  { %v5307_v20 = vld [vmem:[%s11379_s2 + $0x3c0] sm:$0xf]  ;;  %v5180_v21 = vor.u32 %v7151_v19, %v5179_v18  ;;  %v7183_v22 = vld [vmem:[%s11379_s2 + $0x3cc] sm:$0xf0]  ;;  %1265 = vmatpush.bf16.msra.mxu0 %v4924_v16 }
   0x9   :  { %v4907_v23 = vld [vmem:[%s11379_s2 + $0xa0] sm:$0xf]  ;;  %v7083_v24 = vld [vmem:[%s11379_s2 + $0xac] sm:$0xf0]  ;;  %v5308_v25 = vor.u32 %v7183_v22, %v5307_v20  ;;  %1278 = vmatpush.bf16.msra.mxu1 %v5052_v17 }
   0xa   :  { %v5035_v26 = vld [vmem:[%s11379_s2 + $0x1a0] sm:$0xf]  ;;  %v7115_v27 = vld [vmem:[%s11379_s2 + $0x1ac] sm:$0xf0]  ;;  %v4908_v29 = vor.u32 %v7083_v24, %v4907_v23  ;;  %1291 = vmatpush.bf16.msra.mxu2 %v5180_v21 }
   0xb   :  { %v5163_v28 = vld [vmem:[%s11379_s2 + $0x2a0] sm:$0xf]  ;;  %v7147_v30 = vld [vmem:[%s11379_s2 + $0x2ac] sm:$0xf0]  ;;  %v5036_v33 = vor.u32 %v7115_v27, %v5035_v26  ;;  %1304 = vmatpush.bf16.msra.mxu3 %v5308_v25 }
   0xc   :  { %v5291_v31 = vld [vmem:[%s11379_s2 + $0x3a0] sm:$0xf]  ;;  %v7179_v32 = vld [vmem:[%s11379_s2 + $0x3ac] sm:$0xf0]  ;;  %v5164_v34 = vor.u32 %v7147_v30, %v5163_v28  ;;  %1266 = vmatpush.bf16.msra.mxu0 %v4908_v29 }
   0xd   :  { %v4891_v35 = vld [vmem:[%s11379_s2 + $0x80] sm:$0xf]  ;;  %v7079_v36 = vld [vmem:[%s11379_s2 + $0x8c] sm:$0xf0]  ;;  %v5292_v38 = vor.u32 %v7179_v32, %v5291_v31  ;;  %1279 = vmatpush.bf16.msra.mxu1 %v5036_v33 }
   0xe   :  { %v5019_v37 = vld [vmem:[%s11379_s2 + $0x180] sm:$0xf]  ;;  %v7111_v39 = vld [vmem:[%s11379_s2 + $0x18c] sm:$0xf0]  ;;  %v4892_v44 = vor.u32 %v7079_v36, %v4891_v35  ;;  %1292 = vmatpush.bf16.msra.mxu2 %v5164_v34  ;;  %v7089_v34 = vld [vmem:[%s11379_s2 + $0xe4] sm:$0xf] }
   0xf   :  { %v5147_v40 = vld [vmem:[%s11379_s2 + $0x280] sm:$0xf]  ;;  %v7143_v41 = vld [vmem:[%s11379_s2 + $0x28c] sm:$0xf0]  ;;  %v5020_v45 = vor.u32 %v7111_v39, %v5019_v37  ;;  %1305 = vmatpush.bf16.msra.mxu3 %v5292_v38  ;;  %v4941_v35 = vld [vmem:[%s11379_s2 + $0xf0] sm:$0xf0] }
  0x10   :  { %v5275_v42 = vld [vmem:[%s11379_s2 + $0x380] sm:$0xf]  ;;  %v7175_v43 = vld [vmem:[%s11379_s2 + $0x38c] sm:$0xf0]  ;;  %v5148_v46 = vor.u32 %v7143_v41, %v5147_v40  ;;  %1267 = vmatpush.bf16.msra.mxu0 %v4892_v44  ;;  %v7121_v40 = vld [vmem:[%s11379_s2 + $0x1e4] sm:$0xf] }
  0x11   :  { %v4875_v47 = vld [vmem:[%s11379_s2 + $0x60] sm:$0xf]  ;;  %v7075_v48 = vld [vmem:[%s11379_s2 + $0x6c] sm:$0xf0]  ;;  %v5276_v50 = vor.u32 %v7175_v43, %v5275_v42  ;;  %1280 = vmatpush.bf16.msra.mxu1 %v5020_v45  ;;  %v5069_v41 = vld [vmem:[%s11379_s2 + $0x1f0] sm:$0xf0] }
  0x12   :  { %v5003_v49 = vld [vmem:[%s11379_s2 + $0x160] sm:$0xf]  ;;  %v7107_v51 = vld [vmem:[%s11379_s2 + $0x16c] sm:$0xf0]  ;;  %v4876_v56 = vor.u32 %v7075_v48, %v4875_v47  ;;  %1293 = vmatpush.bf16.msra.mxu2 %v5148_v46  ;;  %v4944_v48 = vor.u32 %v7089_v34, %v4941_v35 }
  0x13   :  { %v5131_v52 = vld [vmem:[%s11379_s2 + $0x260] sm:$0xf]  ;;  %v7139_v53 = vld [vmem:[%s11379_s2 + $0x26c] sm:$0xf0]  ;;  %v5004_v57 = vor.u32 %v7107_v51, %v5003_v49  ;;  %1306 = vmatpush.bf16.msra.mxu3 %v5276_v50  ;;  %v7085_v50 = vld [vmem:[%s11379_s2 + $0xc4] sm:$0xf] }
  0x14   :  { %v5259_v54 = vld [vmem:[%s11379_s2 + $0x360] sm:$0xf]  ;;  %v7171_v55 = vld [vmem:[%s11379_s2 + $0x36c] sm:$0xf0]  ;;  %v5132_v58 = vor.u32 %v7139_v53, %v5131_v52  ;;  %1268 = vmatpush.bf16.msra.mxu0 %v4876_v56  ;;  %v4925_v51 = vld [vmem:[%s11379_s2 + $0xd0] sm:$0xf0] }
  0x15   :  { %v4859_v59 = vld [vmem:[%s11379_s2 + $0x40] sm:$0xf]  ;;  %v7071_v60 = vld [vmem:[%s11379_s2 + $0x4c] sm:$0xf0]  ;;  %v5260_v62 = vor.u32 %v7171_v55, %v5259_v54  ;;  %1281 = vmatpush.bf16.msra.mxu1 %v5004_v57 }
  0x16   :  { %v4987_v61 = vld [vmem:[%s11379_s2 + $0x140] sm:$0xf]  ;;  %v7103_v63 = vld [vmem:[%s11379_s2 + $0x14c] sm:$0xf0]  ;;  %v4860_v4 = vor.u32 %v7071_v60, %v4859_v59  ;;  %1294 = vmatpush.bf16.msra.mxu2 %v5132_v58  ;;  %v5072_v59 = vor.u32 %v7121_v40, %v5069_v41 }
  0x17   :  { %v5115_v0 = vld [vmem:[%s11379_s2 + $0x240] sm:$0xf]  ;;  %v7135_v1 = vld [vmem:[%s11379_s2 + $0x24c] sm:$0xf0]  ;;  %v4988_v6 = vor.u32 %v7103_v63, %v4987_v61  ;;  %1307 = vmatpush.bf16.msra.mxu3 %v5260_v62  ;;  %v7117_v61 = vld [vmem:[%s11379_s2 + $0x1c4] sm:$0xf] }
  0x18   :  { %v5243_v2 = vld [vmem:[%s11379_s2 + $0x340] sm:$0xf]  ;;  %v7167_v3 = vld [vmem:[%s11379_s2 + $0x34c] sm:$0xf0]  ;;  %v5116_v7 = vor.u32 %v7135_v1, %v5115_v0  ;;  %1269 = vmatpush.bf16.msra.mxu0 %v4860_v4  ;;  %v5053_v62 = vld [vmem:[%s11379_s2 + $0x1d0] sm:$0xf0]  ;;  %v4928_v1 = vor.u32 %v7085_v50, %v4925_v51 }
  0x19   :  { %v4843_v5 = vld [vmem:[%s11379_s2 + $0x20] sm:$0xf]  ;;  %v7067_v8 = vld [vmem:[%s11379_s2 + $0x2c] sm:$0xf0]  ;;  %v5244_v11 = vor.u32 %v7167_v3, %v5243_v2  ;;  %1282 = vmatpush.bf16.msra.mxu1 %v4988_v6  ;;  %v7081_v6 = vld [vmem:[%s11379_s2 + $0xa4] sm:$0xf] }
  0x1a   :  { %v4971_v9 = vld [vmem:[%s11379_s2 + $0x120] sm:$0xf]  ;;  %v7099_v10 = vld [vmem:[%s11379_s2 + $0x12c] sm:$0xf0]  ;;  %v4844_v18 = vor.u32 %v7067_v8, %v4843_v5  ;;  %1295 = vmatpush.bf16.msra.mxu2 %v5116_v7  ;;  %v4909_v7 = vld [vmem:[%s11379_s2 + $0xb0] sm:$0xf0] }
  0x1b   :  { %v5099_v12 = vld [vmem:[%s11379_s2 + $0x220] sm:$0xf]  ;;  %v7131_v13 = vld [vmem:[%s11379_s2 + $0x22c] sm:$0xf0]  ;;  %v4972_v22 = vor.u32 %v7099_v10, %v4971_v9  ;;  %1308 = vmatpush.bf16.msra.mxu3 %v5244_v11  ;;  %v5056_v9 = vor.u32 %v7117_v61, %v5053_v62  ;;  %v7113_v11 = vld [vmem:[%s11379_s2 + $0x1a4] sm:$0xf] }
  0x1c   :  { %v5227_v14 = vld [vmem:[%s11379_s2 + $0x320] sm:$0xf]  ;;  %v7163_v15 = vld [vmem:[%s11379_s2 + $0x32c] sm:$0xf0]  ;;  %v5100_v23 = vor.u32 %v7131_v13, %v5099_v12  ;;  %1270 = vmatpush.bf16.msra.mxu0 %v4844_v18  ;;  %v5037_v12 = vld [vmem:[%s11379_s2 + $0x1b0] sm:$0xf0] }
  0x1d   :  { %v4827_v16 = vld [vmem:[%s11379_s2] sm:$0xf]  ;;  %v7063_v17 = vld [vmem:[%s11379_s2 + $0xc] sm:$0xf0]  ;;  %v5228_v26 = vor.u32 %v7163_v15, %v5227_v14  ;;  %1283 = vmatpush.bf16.msra.mxu1 %v4972_v22  ;;  %v4912_v14 = vor.u32 %v7081_v6, %v4909_v7  ;;  %v5040_v22 = vor.u32 %v7113_v11, %v5037_v12  ;;  %v7097_v62 = vld [vmem:[%s11379_s2 + $0x124] sm:$0xf] }
  0x1e   :  { %v4955_v19 = vld [vmem:[%s11379_s2 + $0x100] sm:$0xf]  ;;  %v7095_v20 = vld [vmem:[%s11379_s2 + $0x10c] sm:$0xf0]  ;;  %v4828_v33 = vor.u32 %v7063_v17, %v4827_v16  ;;  %1296 = vmatpush.bf16.msra.mxu2 %v5100_v23  ;;  %v4829_v11 = vld [vmem:[%s11379_s2 + $0x10] sm:$0xf0] }
  0x1f   :  { %v46_v21 = vld [vmem:[%s11377_s0] sm:$0xff]  ;;  %v7127_v25 = vld [vmem:[%s11379_s2 + $0x20c] sm:$0xf0]  ;;  %v4956_v37 = vor.u32 %v7095_v20, %v4955_v19  ;;  %1309 = vmatpush.bf16.msra.mxu3 %v5228_v26  ;;  %v4893_v20 = vld [vmem:[%s11379_s2 + $0x90] sm:$0xf0] }
  0x20   :  { %v5083_v24 = vld [vmem:[%s11379_s2 + $0x200] sm:$0xf]  ;;  %50 = vst [vmem:[#allocation1] ss:$4 sm:$0xff] %v46_v21  ;;  %v7159_v28 = vld [vmem:[%s11379_s2 + $0x30c] sm:$0xf0]  ;;  %1271 = vmatpush.bf16.msra.mxu0 %v4828_v33 }
  0x21   :  { %v5211_v27 = vld [vmem:[%s11379_s2 + $0x300] sm:$0xf]  ;;  %v7219_v30 = vld [vmem:[%s11379_s2 + $0x4ec] sm:$0xf0]  ;;  %v5084_v38 = vor.u32 %v7127_v25, %v5083_v24  ;;  %1284 = vmatpush.bf16.msra.mxu1 %v4956_v37  ;;  %v7077_v19 = vld [vmem:[%s11379_s2 + $0x84] sm:$0xf] }
  0x22   :  { %v5451_v29 = vld [vmem:[%s11379_s2 + $0x4e0] sm:$0xf]  ;;  %v7251_v32 = vld [vmem:[%s11379_s2 + $0x5ec] sm:$0xf0]  ;;  %v5212_v42 = vor.u32 %v7159_v28, %v5211_v27  ;;  %v7109_v21 = vld [vmem:[%s11379_s2 + $0x184] sm:$0xf]  ;;  %v4896_v28 = vor.u32 %v7077_v19, %v4893_v20 }
  0x23   :  { %v5579_v31 = vld [vmem:[%s11379_s2 + $0x5e0] sm:$0xf]  ;;  %v7255_v39 = vld [vmem:[%s11379_s2 + $0x60c] sm:$0xf0]  ;;  %v5452_v43 = vor.u32 %v7219_v30, %v5451_v29  ;;  %1297 = vmatpush.bf16.msra.mxu2 %v5084_v38  ;;  %v5021_v24 = vld [vmem:[%s11379_s2 + $0x190] sm:$0xf0] }
  0x24   :  { %v5595_v36 = vld [vmem:[%s11379_s2 + $0x600] sm:$0xf]  ;;  %v7215_v45 = vld [vmem:[%s11379_s2 + $0x4cc] sm:$0xf0]  ;;  %v5580_v47 = vor.u32 %v7251_v32, %v5579_v31  ;;  %1310 = vmatpush.bf16.msra.mxu3 %v5212_v42  ;;  %v47_v31 = vld [vmem:[%s11377_s0 + $0x8] sm:$0x3f]  ;;  %v5024_v34 = vor.u32 %v7109_v21, %v5021_v24 }
  0x25   :  { %v5435_v44 = vld [vmem:[%s11379_s2 + $0x4c0] sm:$0xf]  ;;  %v7247_v49 = vld [vmem:[%s11379_s2 + $0x5cc] sm:$0xf0]  ;;  %v5596_v55 = vor.u32 %v7255_v39, %v5595_v36  ;;  %1316 = vmatpush.bf16.msrb.mxu0 %v5452_v43  ;;  %v7073_v32 = vld [vmem:[%s11379_s2 + $0x64] sm:$0xf] }
  0x26   :  { %v5563_v46 = vld [vmem:[%s11379_s2 + $0x5c0] sm:$0xf]  ;;  %v5436_v60 = vor.u32 %v7215_v45, %v5435_v44  ;;  %1329 = vmatpush.bf16.msrb.mxu1 %v5580_v47  ;;  %v7211_v3 = vld [vmem:[%s11379_s2 + $0x4ac] sm:$0xf0]  ;;  %v4877_v33 = vld [vmem:[%s11379_s2 + $0x70] sm:$0xf0] }
  0x27   :  { %v55_v52 = vld.sshfl [vmem:[#allocation1 + $0x10] sm:$0xff pattern:$0x73625140]  ;;  %v53_v53 = vld.sshfl [vmem:[#allocation1] sm:$0xff pattern:$0x73625140]  ;;  %v5564_v0 = vor.u32 %v7247_v49, %v5563_v46  ;;  %1349 = vmatpush.bf16.msrb.mxu2 %v5596_v55  ;;  %v4880_v39 = vor.u32 %v7073_v32, %v4877_v33 }
  0x28   :  { %v8013_v54 = vpack.c.bf16 %v55_v52, %v55_v52  ;;  %v8015_v56 = vpack.c.bf16 %v53_v53, %v53_v53  ;;  %v56_v57 = vld.sshfl [vmem:[#allocation1 + $0x18] sm:$0xff pattern:$0x73625140]  ;;  %v54_v58 = vld.sshfl [vmem:[#allocation1 + $0x8] sm:$0xff pattern:$0x73625140]  ;;  %1355 = vmatpush.bf16.msrb.mxu3 %v4944_v48 }
  0x29   :  { %v8023_v63 = vpack.c.bf16 %v56_v57, %v56_v57  ;;  %v5419_v2 = vld [vmem:[%s11379_s2 + $0x4a0] sm:$0xf]  ;;  %v7243_v5 = vld [vmem:[%s11379_s2 + $0x5ac] sm:$0xf0]  ;;  %v8045_v8 = vpack.c.bf16 %v54_v58, %v54_v58  ;;  %1317 = vmatpush.bf16.msrb.mxu0 %v5436_v60  ;;  %52 = vst [vmem:[#allocation1 + $0x20] ss:$4 sm:$0xff] %v47_v31 }
  0x2a   :  { %v5547_v4 = vld [vmem:[%s11379_s2 + $0x5a0] sm:$0xf]  ;;  %1298 = vmatmul.bf16.vlgmr.msra.gmra.mxu2 %v8013_v54  ;;  %1272 = vmatmul.bf16.vlgmr.msra.gmra.mxu0 %v8015_v56  ;;  %v5420_v10 = vor.u32 %v7211_v3, %v5419_v2  ;;  %v7207_v16 = vld [vmem:[%s11379_s2 + $0x48c] sm:$0xf0]  ;;  %v7105_v36 = vld [vmem:[%s11379_s2 + $0x164] sm:$0xf] }
  0x2b   :  { %1311 = vmatmul.bf16.vlgmr.msra.gmra.mxu3 %v8023_v63  ;;  %1368 = vmatpush.bf16.msra.mxu2 %v5072_v59  ;;  %v5548_v13 = vor.u32 %v7243_v5, %v5547_v4  ;;  %v5403_v15 = vld [vmem:[%s11379_s2 + $0x480] sm:$0xf]  ;;  %v7239_v18 = vld [vmem:[%s11379_s2 + $0x58c] sm:$0xf0]  ;;  %v5005_v37 = vld [vmem:[%s11379_s2 + $0x170] sm:$0xf0] }
  0x2c   :  { %1330 = vmatpush.bf16.msrb.mxu1 %v5564_v0  ;;  %1356 = vmatpush.bf16.msrb.mxu3 %v4928_v1  ;;  %v5531_v17 = vld [vmem:[%s11379_s2 + $0x580] sm:$0xf]  ;;  %v5404_v23 = vor.u32 %v7207_v16, %v5403_v15  ;;  %v7203_v26 = vld [vmem:[%s11379_s2 + $0x46c] sm:$0xf0]  ;;  %v7069_v44 = vld [vmem:[%s11379_s2 + $0x44] sm:$0xf]  ;;  %v5008_v47 = vor.u32 %v7105_v36, %v5005_v37 }
  0x2d   :  { %1285 = vmatmul.bf16.vlgmr.msra.gmra.mxu1 %v8045_v8  ;;  %1318 = vmatpush.bf16.msrb.mxu0 %v5420_v10  ;;  %v5387_v25 = vld [vmem:[%s11379_s2 + $0x460] sm:$0xf]  ;;  %v5532_v27 = vor.u32 %v7239_v18, %v5531_v17  ;;  %v7235_v30 = vld [vmem:[%s11379_s2 + $0x56c] sm:$0xf0]  ;;  %v4861_v45 = vld [vmem:[%s11379_s2 + $0x50] sm:$0xf0] }
  0x2e   :  { %v5515_v29 = vld [vmem:[%s11379_s2 + $0x560] sm:$0xf]  ;;  %v5388_v35 = vor.u32 %v7203_v26, %v5387_v25  ;;  %v7199_v41 = vld [vmem:[%s11379_s2 + $0x44c] sm:$0xf0]  ;;  %v7101_v46 = vld [vmem:[%s11379_s2 + $0x144] sm:$0xf]  ;;  %v4864_v53 = vor.u32 %v7069_v44, %v4861_v45 }
  0x2f   :  { %1369 = vmatpush.bf16.msra.mxu2 %v5056_v9  ;;  %v5516_v38 = vor.u32 %v7235_v30, %v5515_v29  ;;  %v5371_v40 = vld [vmem:[%s11379_s2 + $0x440] sm:$0xf]  ;;  %v7231_v43 = vld [vmem:[%s11379_s2 + $0x54c] sm:$0xf0]  ;;  %v4989_v49 = vld [vmem:[%s11379_s2 + $0x150] sm:$0xf0] }
  0x30   :  { %1331 = vmatpush.bf16.msrb.mxu1 %v5548_v13  ;;  %1357 = vmatpush.bf16.msrb.mxu3 %v4912_v14  ;;  %v5499_v42 = vld [vmem:[%s11379_s2 + $0x540] sm:$0xf]  ;;  %v5372_v48 = vor.u32 %v7199_v41, %v5371_v40  ;;  %v7195_v51 = vld [vmem:[%s11379_s2 + $0x42c] sm:$0xf0]  ;;  %v7065_v59 = vld [vmem:[%s11379_s2 + $0x24] sm:$0xf]  ;;  %v4992_v1 = vor.u32 %v7101_v46, %v4989_v49 }
  0x31   :  { %1319 = vmatpush.bf16.msrb.mxu0 %v5404_v23  ;;  %v5355_v50 = vld [vmem:[%s11379_s2 + $0x420] sm:$0xf]  ;;  %v5500_v52 = vor.u32 %v7231_v43, %v5499_v42  ;;  %v59_v57 = vld.sshfl [vmem:[#allocation1 + $0x30] sm:$0xff pattern:$0x73625140] }
  0x32   :  { %v5483_v55 = vld [vmem:[%s11379_s2 + $0x520] sm:$0xf]  ;;  %v7227_v58 = vld [vmem:[%s11379_s2 + $0x52c] sm:$0xf0]  ;;  %v4845_v60 = vld [vmem:[%s11379_s2 + $0x30] sm:$0xf0]  ;;  %v8148_v61 = vpack.c.bf16 %v59_v57, %v59_v57  ;;  %v5356_v2 = vor.u32 %v7195_v51, %v5355_v50 }
  0x33   :  { %1370 = vmatpush.bf16.msra.mxu2 %v5040_v22  ;;  %v4973_v0 = vld [vmem:[%s11379_s2 + $0x130] sm:$0xf0]  ;;  %v5339_v3 = vld [vmem:[%s11379_s2 + $0x400] sm:$0xf]  ;;  %v7191_v4 = vld [vmem:[%s11379_s2 + $0x40c] sm:$0xf0]  ;;  %v5484_v6 = vor.u32 %v7227_v58, %v5483_v55  ;;  %v4848_v7 = vor.u32 %v7065_v59, %v4845_v60 }
  0x34   :  { %1332 = vmatpush.bf16.msrb.mxu1 %v5532_v27  ;;  %1358 = vmatpush.bf16.msrb.mxu3 %v4896_v28  ;;  %v5467_v5 = vld [vmem:[%s11379_s2 + $0x500] sm:$0xf]  ;;  %v7223_v9 = vld [vmem:[%s11379_s2 + $0x50c] sm:$0xf0]  ;;  %v7061_v10 = vld [vmem:[%s11379_s2 + $0x4] sm:$0xf]  ;;  %v4976_v18 = vor.u32 %v7097_v62, %v4973_v0  ;;  %v5340_v19 = vor.u32 %v7191_v4, %v5339_v3 }
  0x35   :  { %1320 = vmatpush.bf16.msrb.mxu0 %v5388_v35  ;;  %v7153_v12 = vld [vmem:[%s11379_s2 + $0x2e4] sm:$0xf]  ;;  %v5197_v13 = vld [vmem:[%s11379_s2 + $0x2f0] sm:$0xf0]  ;;  %v5468_v22 = vor.u32 %v7223_v9, %v5467_v5  ;;  %v4832_v23 = vor.u32 %v7061_v10, %v4829_v11 }
  0x36   :  { %v7185_v14 = vld [vmem:[%s11379_s2 + $0x3e4] sm:$0xf]  ;;  %v5325_v15 = vld [vmem:[%s11379_s2 + $0x3f0] sm:$0xf0]  ;;  %v5200_v26 = vor.u32 %v7153_v12, %v5197_v13 }
  0x37   :  { %1371 = vmatpush.bf16.msra.mxu2 %v5024_v34  ;;  %v7217_v16 = vld [vmem:[%s11379_s2 + $0x4e4] sm:$0xf]  ;;  %v5453_v17 = vld [vmem:[%s11379_s2 + $0x4f0] sm:$0xf0]  ;;  %v5328_v27 = vor.u32 %v7185_v14, %v5325_v15 }
  0x38   :  { %1333 = vmatpush.bf16.msrb.mxu1 %v5516_v38  ;;  %1359 = vmatpush.bf16.msrb.mxu3 %v4880_v39  ;;  %v57_v20 = vld.sshfl [vmem:[#allocation1 + $0x20] sm:$0xff pattern:$0x73625140]  ;;  %v4957_v24 = vld [vmem:[%s11379_s2 + $0x110] sm:$0xf0]  ;;  %v5456_v31 = vor.u32 %v7217_v16, %v5453_v17 }
  0x39   :  { %1321 = vmatpush.bf16.msrb.mxu0 %v5372_v48  ;;  %v7093_v21 = vld [vmem:[%s11379_s2 + $0x104] sm:$0xf]  ;;  %v58_v25 = vld.sshfl [vmem:[#allocation1 + $0x28] sm:$0xff pattern:$0x73625140]  ;;  %v8209_v32 = vpack.c.bf16 %v57_v20, %v57_v20 }
  0x3a   :  { %5609 = vmatmul.msk.bf16.vlgmr.msrb.gmra.mxu2 %vm1260_vm0, %v8148_v61  ;;  %v7249_v28 = vld [vmem:[%s11379_s2 + $0x5e4] sm:$0xf]  ;;  %v5581_v29 = vld [vmem:[%s11379_s2 + $0x5f0] sm:$0xf0]  ;;  %v4960_v36 = vor.u32 %v7093_v21, %v4957_v24  ;;  %v8220_v37 = vpack.c.bf16 %v58_v25, %v58_v25 }
  0x3b   :  { %1372 = vmatpush.bf16.msra.mxu2 %v5008_v47  ;;  %v7149_v30 = vld [vmem:[%s11379_s2 + $0x2c4] sm:$0xf]  ;;  %v5181_v33 = vld [vmem:[%s11379_s2 + $0x2d0] sm:$0xf0]  ;;  %v5584_v40 = vor.u32 %v7249_v28, %v5581_v29 }
  0x3c   :  { %1334 = vmatpush.bf16.msrb.mxu1 %v5500_v52  ;;  %1360 = vmatpush.bf16.msrb.mxu3 %v4864_v53  ;;  %v7181_v34 = vld [vmem:[%s11379_s2 + $0x3c4] sm:$0xf]  ;;  %v5309_v35 = vld [vmem:[%s11379_s2 + $0x3d0] sm:$0xf0]  ;;  %v5184_v41 = vor.u32 %v7149_v30, %v5181_v33 }
  0x3d   :  { %1322 = vmatpush.bf16.msrb.mxu0 %v5356_v2  ;;  %v7213_v38 = vld [vmem:[%s11379_s2 + $0x4c4] sm:$0xf]  ;;  %v5437_v39 = vld [vmem:[%s11379_s2 + $0x4d0] sm:$0xf0]  ;;  %v5312_v42 = vor.u32 %v7181_v34, %v5309_v35 }
  0x3e   :  { %v7245_v43 = vld [vmem:[%s11379_s2 + $0x5c4] sm:$0xf]  ;;  %v5565_v44 = vld [vmem:[%s11379_s2 + $0x5d0] sm:$0xf0]  ;;  %v5440_v46 = vor.u32 %v7213_v38, %v5437_v39 }
  0x3f   :  { %1373 = vmatpush.bf16.msra.mxu2 %v4992_v1  ;;  %v7145_v45 = vld [vmem:[%s11379_s2 + $0x2a4] sm:$0xf]  ;;  %v5165_v47 = vld [vmem:[%s11379_s2 + $0x2b0] sm:$0xf0]  ;;  %v5568_v52 = vor.u32 %v7245_v43, %v5565_v44 }
  0x40   :  { %1335 = vmatpush.bf16.msrb.mxu1 %v5484_v6  ;;  %1361 = vmatpush.bf16.msrb.mxu3 %v4848_v7  ;;  %v7177_v48 = vld [vmem:[%s11379_s2 + $0x3a4] sm:$0xf]  ;;  %v5293_v49 = vld [vmem:[%s11379_s2 + $0x3b0] sm:$0xf0]  ;;  %v5168_v53 = vor.u32 %v7145_v45, %v5165_v47 }
  0x41   :  { %1323 = vmatpush.bf16.msrb.mxu0 %v5340_v19  ;;  %v7209_v50 = vld [vmem:[%s11379_s2 + $0x4a4] sm:$0xf]  ;;  %v5421_v51 = vld [vmem:[%s11379_s2 + $0x4b0] sm:$0xf0]  ;;  %v5296_v55 = vor.u32 %v7177_v48, %v5293_v49 }
  0x42   :  { %v7241_v57 = vld [vmem:[%s11379_s2 + $0x5a4] sm:$0xf]  ;;  %v5549_v58 = vld [vmem:[%s11379_s2 + $0x5b0] sm:$0xf0]  ;;  %v5424_v60 = vor.u32 %v7209_v50, %v5421_v51 }
  0x43   :  { %1374 = vmatpush.bf16.msra.mxu2 %v4976_v18  ;;  %v7141_v59 = vld [vmem:[%s11379_s2 + $0x284] sm:$0xf]  ;;  %v5149_v62 = vld [vmem:[%s11379_s2 + $0x290] sm:$0xf0]  ;;  %v5552_v4 = vor.u32 %v7241_v57, %v5549_v58  ;;  %v4947_v57 = vld [vmem:[%s11379_s2 + $0xe8] sm:$0xf] }
  0x44   :  { %1336 = vmatpush.bf16.msrb.mxu1 %v5468_v22  ;;  %1362 = vmatpush.bf16.msrb.mxu3 %v4832_v23  ;;  %v7173_v0 = vld [vmem:[%s11379_s2 + $0x384] sm:$0xf]  ;;  %v5277_v1 = vld [vmem:[%s11379_s2 + $0x390] sm:$0xf0]  ;;  %v5152_v5 = vor.u32 %v7141_v59, %v5149_v62  ;;  %v7092_v58 = vld [vmem:[%s11379_s2 + $0xf4] sm:$0xf0] }
  0x45   :  { %1381 = vmatpush.bf16.msra.mxu0 %v5200_v26  ;;  %v7205_v2 = vld [vmem:[%s11379_s2 + $0x484] sm:$0xf]  ;;  %v5405_v3 = vld [vmem:[%s11379_s2 + $0x490] sm:$0xf0]  ;;  %v5280_v6 = vor.u32 %v7173_v0, %v5277_v1  ;;  %v5075_v59 = vld [vmem:[%s11379_s2 + $0x1e8] sm:$0xf] }
  0x46   :  { %1324 = vmatmul.bf16.vlgmr.msrb.gmra.mxu0 %v8209_v32  ;;  %v7237_v7 = vld [vmem:[%s11379_s2 + $0x584] sm:$0xf]  ;;  %v5533_v9 = vld [vmem:[%s11379_s2 + $0x590] sm:$0xf0]  ;;  %v5408_v11 = vor.u32 %v7205_v2, %v5405_v3  ;;  %v7124_v62 = vld [vmem:[%s11379_s2 + $0x1f4] sm:$0xf0] }
  0x47   :  { %1375 = vmatpush.bf16.msra.mxu2 %v4960_v36  ;;  %1337 = vmatmul.bf16.vlgmr.msrb.gmra.mxu1 %v8220_v37  ;;  %v7137_v10 = vld [vmem:[%s11379_s2 + $0x264] sm:$0xf]  ;;  %v5133_v12 = vld [vmem:[%s11379_s2 + $0x270] sm:$0xf0]  ;;  %v5536_v17 = vor.u32 %v7237_v7, %v5533_v9  ;;  %v4948_v9 = vor.u32 %v7092_v58, %v4947_v57  ;;  %v7076_v57 = vld [vmem:[%s11379_s2 + $0x74] sm:$0xf0] }
  0x48   :  { %1394 = vmatpush.bf16.msra.mxu1 %v5328_v27  ;;  %1407 = vmatpush.bf16.msra.mxu3 %v5456_v31  ;;  %v7169_v13 = vld [vmem:[%s11379_s2 + $0x364] sm:$0xf]  ;;  %v5261_v14 = vld [vmem:[%s11379_s2 + $0x370] sm:$0xf0]  ;;  %v5136_v18 = vor.u32 %v7137_v10, %v5133_v12  ;;  %v7156_v10 = vld [vmem:[%s11379_s2 + $0x2f4] sm:$0xf0] }
  0x49   :  { %1363 = vmatmul.bf16.vlgmr.msrb.gmra.mxu3 %v8015_v56  ;;  %1382 = vmatpush.bf16.msra.mxu0 %v5184_v41  ;;  %v7201_v15 = vld [vmem:[%s11379_s2 + $0x464] sm:$0xf]  ;;  %v5389_v16 = vld [vmem:[%s11379_s2 + $0x470] sm:$0xf0]  ;;  %v5264_v19 = vor.u32 %v7169_v13, %v5261_v14  ;;  %v7188_v12 = vld [vmem:[%s11379_s2 + $0x3f4] sm:$0xf0]  ;;  %v5076_v13 = vor.u32 %v7124_v62, %v5075_v59 }
  0x4a   :  { %1376 = vmatmul.bf16.vlgmr.msra.gmra.mxu2 %v8045_v8  ;;  %v7233_v20 = vld [vmem:[%s11379_s2 + $0x564] sm:$0xf]  ;;  %v5517_v21 = vld [vmem:[%s11379_s2 + $0x570] sm:$0xf0]  ;;  %v5392_v23 = vor.u32 %v7201_v15, %v5389_v16  ;;  %v4931_v15 = vld [vmem:[%s11379_s2 + $0xc8] sm:$0xf] }
  0x4b   :  { %1420 = vmatpush.bf16.msrb.mxu2 %v5584_v40  ;;  %v7133_v22 = vld [vmem:[%s11379_s2 + $0x244] sm:$0xf]  ;;  %v5117_v24 = vld [vmem:[%s11379_s2 + $0x250] sm:$0xf0]  ;;  %v5520_v29 = vor.u32 %v7233_v20, %v5517_v21  ;;  %v7088_v16 = vld [vmem:[%s11379_s2 + $0xd4] sm:$0xf0] }
  0x4c   :  { %1395 = vmatpush.bf16.msra.mxu1 %v5312_v42  ;;  %1408 = vmatpush.bf16.msra.mxu3 %v5440_v46  ;;  %v7165_v25 = vld [vmem:[%s11379_s2 + $0x344] sm:$0xf]  ;;  %v5245_v26 = vld [vmem:[%s11379_s2 + $0x350] sm:$0xf0]  ;;  %v5120_v30 = vor.u32 %v7133_v22, %v5117_v24  ;;  %v5187_v22 = vld [vmem:[%s11379_s2 + $0x2c8] sm:$0xf] }
  0x4d   :  { %1383 = vmatpush.bf16.msra.mxu0 %v5168_v53  ;;  %v7197_v27 = vld [vmem:[%s11379_s2 + $0x444] sm:$0xf]  ;;  %v5373_v28 = vld [vmem:[%s11379_s2 + $0x450] sm:$0xf0]  ;;  %v5248_v31 = vor.u32 %v7165_v25, %v5245_v26  ;;  %v7152_v24 = vld [vmem:[%s11379_s2 + $0x2d4] sm:$0xf0] }
  0x4e   :  { %v7229_v33 = vld [vmem:[%s11379_s2 + $0x544] sm:$0xf]  ;;  %v5501_v34 = vld [vmem:[%s11379_s2 + $0x550] sm:$0xf0]  ;;  %v5376_v36 = vor.u32 %v7197_v27, %v5373_v28  ;;  %v5315_v25 = vld [vmem:[%s11379_s2 + $0x3c8] sm:$0xf] }
  0x4f   :  { %1421 = vmatpush.bf16.msrb.mxu2 %v5568_v52  ;;  %v7129_v35 = vld [vmem:[%s11379_s2 + $0x224] sm:$0xf]  ;;  %v5101_v38 = vld [vmem:[%s11379_s2 + $0x230] sm:$0xf0]  ;;  %v5504_v43 = vor.u32 %v7229_v33, %v5501_v34  ;;  %v7184_v26 = vld [vmem:[%s11379_s2 + $0x3d4] sm:$0xf0]  ;;  %v5188_v33 = vor.u32 %v7152_v24, %v5187_v22 }
  0x50   :  { %1396 = vmatpush.bf16.msra.mxu1 %v5296_v55  ;;  %1409 = vmatpush.bf16.msra.mxu3 %v5424_v60  ;;  %v7161_v39 = vld [vmem:[%s11379_s2 + $0x324] sm:$0xf]  ;;  %v5229_v40 = vld [vmem:[%s11379_s2 + $0x330] sm:$0xf0]  ;;  %v5104_v46 = vor.u32 %v7129_v35, %v5101_v38  ;;  %v4915_v28 = vld [vmem:[%s11379_s2 + $0xa8] sm:$0xf]  ;;  %v5316_v34 = vor.u32 %v7184_v26, %v5315_v25 }
  0x51   :  { %1384 = vmatpush.bf16.msra.mxu0 %v5152_v5  ;;  %v7193_v41 = vld [vmem:[%s11379_s2 + $0x424] sm:$0xf]  ;;  %v5357_v42 = vld [vmem:[%s11379_s2 + $0x430] sm:$0xf0]  ;;  %v5232_v47 = vor.u32 %v7161_v39, %v5229_v40  ;;  %v5171_v35 = vld [vmem:[%s11379_s2 + $0x2a8] sm:$0xf] }
  0x52   :  { %v7225_v44 = vld [vmem:[%s11379_s2 + $0x524] sm:$0xf]  ;;  %v5485_v45 = vld [vmem:[%s11379_s2 + $0x530] sm:$0xf0]  ;;  %v5360_v51 = vor.u32 %v7193_v41, %v5357_v42  ;;  %v7148_v38 = vld [vmem:[%s11379_s2 + $0x2b4] sm:$0xf0] }
  0x53   :  { %1422 = vmatpush.bf16.msrb.mxu2 %v5552_v4  ;;  %v7125_v48 = vld [vmem:[%s11379_s2 + $0x204] sm:$0xf]  ;;  %v5085_v49 = vld [vmem:[%s11379_s2 + $0x210] sm:$0xf0]  ;;  %v5488_v60 = vor.u32 %v7225_v44, %v5485_v45  ;;  %v5299_v39 = vld [vmem:[%s11379_s2 + $0x3a8] sm:$0xf] }
  0x54   :  { %1397 = vmatpush.bf16.msra.mxu1 %v5280_v6  ;;  %1410 = vmatpush.bf16.msra.mxu3 %v5408_v11  ;;  %v7157_v50 = vld [vmem:[%s11379_s2 + $0x304] sm:$0xf]  ;;  %v5213_v52 = vld [vmem:[%s11379_s2 + $0x310] sm:$0xf0]  ;;  %v5088_v2 = vor.u32 %v7125_v48, %v5085_v49  ;;  %v5203_v6 = vld [vmem:[%s11379_s2 + $0x2e8] sm:$0xf] }
  0x55   :  { %1385 = vmatpush.bf16.msra.mxu0 %v5136_v18  ;;  %v7189_v53 = vld [vmem:[%s11379_s2 + $0x404] sm:$0xf]  ;;  %v5341_v55 = vld [vmem:[%s11379_s2 + $0x410] sm:$0xf0]  ;;  %v5216_v3 = vor.u32 %v7157_v50, %v5213_v52  ;;  %v5331_v11 = vld [vmem:[%s11379_s2 + $0x3e8] sm:$0xf]  ;;  %v5204_v20 = vor.u32 %v7156_v10, %v5203_v6 }
  0x56   :  { %v7253_v0 = vld [vmem:[%s11379_s2 + $0x604] sm:$0xf]  ;;  %v5597_v1 = vld [vmem:[%s11379_s2 + $0x610] sm:$0xf0]  ;;  %v5344_v7 = vor.u32 %v7189_v53, %v5341_v55  ;;  %v5059_v18 = vld [vmem:[%s11379_s2 + $0x1c8] sm:$0xf]  ;;  %v5332_v21 = vor.u32 %v7188_v12, %v5331_v11 }
  0x57   :  { %1423 = vmatpush.bf16.msrb.mxu2 %v5536_v17  ;;  %v7221_v4 = vld [vmem:[%s11379_s2 + $0x504] sm:$0xf]  ;;  %v5469_v5 = vld [vmem:[%s11379_s2 + $0x510] sm:$0xf0]  ;;  %v5600_v14 = vor.u32 %v7253_v0, %v5597_v1  ;;  %v7180_v40 = vld [vmem:[%s11379_s2 + $0x3b4] sm:$0xf0] }
  0x58   :  { %1398 = vmatpush.bf16.msra.mxu1 %v5264_v19  ;;  %1411 = vmatpush.bf16.msra.mxu3 %v5392_v23  ;;  %v5472_v17 = vor.u32 %v7221_v4, %v5469_v5  ;;  %v7120_v19 = vld [vmem:[%s11379_s2 + $0x1d4] sm:$0xf0]  ;;  %v4932_v23 = vor.u32 %v7088_v16, %v4931_v15  ;;  %v4899_v42 = vld [vmem:[%s11379_s2 + $0x88] sm:$0xf] }
  0x59   :  { %1386 = vmatpush.bf16.msra.mxu0 %v5120_v30  ;;  %v5060_v27 = vor.u32 %v7120_v19, %v5059_v18  ;;  %v5043_v30 = vld [vmem:[%s11379_s2 + $0x1a8] sm:$0xf]  ;;  %v7112_v45 = vld [vmem:[%s11379_s2 + $0x194] sm:$0xf0] }
  0x5a   :  { %v5027_v44 = vld [vmem:[%s11379_s2 + $0x188] sm:$0xf]  ;;  %v7144_v50 = vld [vmem:[%s11379_s2 + $0x294] sm:$0xf0] }
  0x5b   :  { %1424 = vmatpush.bf16.msrb.mxu2 %v5520_v29  ;;  %v7084_v29 = vld [vmem:[%s11379_s2 + $0xb4] sm:$0xf0]  ;;  %v5155_v48 = vld [vmem:[%s11379_s2 + $0x288] sm:$0xf]  ;;  %v5028_v53 = vor.u32 %v7112_v45, %v5027_v44 }
  0x5c   :  { %1399 = vmatpush.bf16.msra.mxu1 %v5248_v31  ;;  %1412 = vmatpush.bf16.msra.mxu3 %v5376_v36  ;;  %v7116_v31 = vld [vmem:[%s11379_s2 + $0x1b4] sm:$0xf0]  ;;  %v4916_v36 = vor.u32 %v7084_v29, %v4915_v28  ;;  %v4883_v55 = vld [vmem:[%s11379_s2 + $0x68] sm:$0xf] }
  0x5d   :  { %1387 = vmatpush.bf16.msra.mxu0 %v5104_v46  ;;  %v5044_v41 = vor.u32 %v7116_v31, %v5043_v30  ;;  %v5172_v46 = vor.u32 %v7148_v38, %v5171_v35  ;;  %v7176_v52 = vld [vmem:[%s11379_s2 + $0x394] sm:$0xf0]  ;;  %v5011_v58 = vld [vmem:[%s11379_s2 + $0x168] sm:$0xf] }
  0x5e   :  { %v7108_v59 = vld [vmem:[%s11379_s2 + $0x174] sm:$0xf0] }
  0x5f   :  { %1425 = vmatpush.bf16.msrb.mxu2 %v5504_v43  ;;  %v7080_v43 = vld [vmem:[%s11379_s2 + $0x94] sm:$0xf0] }
  0x60   :  { %1400 = vmatpush.bf16.msra.mxu1 %v5232_v47  ;;  %1413 = vmatpush.bf16.msra.mxu3 %v5360_v51  ;;  %v5300_v47 = vor.u32 %v7180_v40, %v5299_v39  ;;  %v4900_v49 = vor.u32 %v7080_v43, %v4899_v42  ;;  %v5283_v51 = vld [vmem:[%s11379_s2 + $0x388] sm:$0xf] }
  0x61   :  { %1388 = vmatpush.bf16.msra.mxu0 %v5088_v2 }
  0x63   :  { %1426 = vmatpush.bf16.msrb.mxu2 %v5488_v60 }
  0x64   :  { %1401 = vmatpush.bf16.msra.mxu1 %v5216_v3  ;;  %1414 = vmatpush.bf16.msra.mxu3 %v5344_v7 }
  0x65   :  { %1440 = vmatpush.bf16.msrb.mxu0 %v5600_v14 }
  0x66   :  { %1389 = vmatmul.bf16.vlgmr.msra.gmra.mxu0 %v8013_v54 }
  0x67   :  { %1427 = vmatpush.bf16.msrb.mxu2 %v5472_v17  ;;  %1415 = vmatmul.bf16.vlgmr.msra.gmra.mxu3 %v8209_v32 }
  0x68   :  { %1446 = vmatpush.bf16.msrb.mxu1 %v4948_v9  ;;  %1459 = vmatpush.bf16.msrb.mxu3 %v5076_v13 }
  0x69   :  { %1472 = vmatpush.bf16.msra.mxu0 %v5204_v20  ;;  %1402 = vmatmul.bf16.vlgmr.msra.gmra.mxu1 %v8023_v63 }
  0x6a   :  { %1428 = vmatmul.bf16.vlgmr.msrb.gmra.mxu2 %v8220_v37 }
  0x6b   :  { %1485 = vmatpush.bf16.msra.mxu2 %v5332_v21 }
  0x6c   :  { %1447 = vmatpush.bf16.msrb.mxu1 %v4932_v23  ;;  %1460 = vmatpush.bf16.msrb.mxu3 %v5060_v27 }
  0x6d   :  { %1473 = vmatpush.bf16.msra.mxu0 %v5188_v33 }
  0x6f   :  { %1486 = vmatpush.bf16.msra.mxu2 %v5316_v34 }
  0x70   :  { %1448 = vmatpush.bf16.msrb.mxu1 %v4916_v36  ;;  %1461 = vmatpush.bf16.msrb.mxu3 %v5044_v41 }
  0x71   :  { %20 = vsyncpa [#allocation5], 0  ;;  %1474 = vmatpush.bf16.msra.mxu0 %v5172_v46  ;;  %v5156_v60 = vor.u32 %v7144_v50, %v5155_v48  ;;  %v5284_v62 = vor.u32 %v7176_v52, %v5283_v51  ;;  %v5139_v0 = vld [vmem:[%s11379_s2 + $0x268] sm:$0xf]  ;;  %v4884_v1 = vor.u32 %v7076_v57, %v4883_v55  ;;  %v7140_v2 = vld [vmem:[%s11379_s2 + $0x274] sm:$0xf0]  ;;  %v5012_v5 = vor.u32 %v7108_v59, %v5011_v58 }
  0x72   :  { %v5267_v3 = vld [vmem:[%s11379_s2 + $0x368] sm:$0xf]  ;;  %v7172_v4 = vld [vmem:[%s11379_s2 + $0x374] sm:$0xf0]  ;;  %v5140_v11 = vor.u32 %v7140_v2, %v5139_v0  ;;  %v7090_v48 = vld [vmem:[%s11379_s2 + $0xec] sm:$0xf] }
  0x73   :  { %1487 = vmatpush.bf16.msra.mxu2 %v5300_v47  ;;  %v4867_v6 = vld [vmem:[%s11379_s2 + $0x48] sm:$0xf]  ;;  %v7072_v7 = vld [vmem:[%s11379_s2 + $0x54] sm:$0xf0]  ;;  %v5268_v12 = vor.u32 %v7172_v4, %v5267_v3  ;;  %v4949_v51 = vld [vmem:[%s11379_s2 + $0xf8] sm:$0xf0] }
  0x74   :  { %1449 = vmatpush.bf16.msrb.mxu1 %v4900_v49  ;;  %1462 = vmatpush.bf16.msrb.mxu3 %v5028_v53  ;;  %v4995_v9 = vld [vmem:[%s11379_s2 + $0x148] sm:$0xf]  ;;  %v7104_v10 = vld [vmem:[%s11379_s2 + $0x154] sm:$0xf0]  ;;  %v4868_v14 = vor.u32 %v7072_v7, %v4867_v6  ;;  %v7122_v3 = vld [vmem:[%s11379_s2 + $0x1ec] sm:$0xf] }
  0x75   :  { %1475 = vmatpush.bf16.msra.mxu0 %v5156_v60  ;;  %v5123_v13 = vld [vmem:[%s11379_s2 + $0x248] sm:$0xf]  ;;  %v7136_v15 = vld [vmem:[%s11379_s2 + $0x254] sm:$0xf0]  ;;  %v4996_v18 = vor.u32 %v7104_v10, %v4995_v9  ;;  %v5077_v4 = vld [vmem:[%s11379_s2 + $0x1f8] sm:$0xf0] }
  0x76   :  { %v5251_v16 = vld [vmem:[%s11379_s2 + $0x348] sm:$0xf]  ;;  %v7168_v17 = vld [vmem:[%s11379_s2 + $0x354] sm:$0xf0]  ;;  %5610 = vmatmul.msk.bf16.vlgmr.msrb.gmra.mxu0 %vm1260_vm0, %v8148_v61  ;;  %v5124_v23 = vor.u32 %v7136_v15, %v5123_v13  ;;  %v7086_v6 = vld [vmem:[%s11379_s2 + $0xcc] sm:$0xf] }
  0x77   :  { %1488 = vmatpush.bf16.msra.mxu2 %v5284_v62  ;;  %v4851_v19 = vld [vmem:[%s11379_s2 + $0x28] sm:$0xf]  ;;  %v7068_v20 = vld [vmem:[%s11379_s2 + $0x34] sm:$0xf0]  ;;  %v5252_v24 = vor.u32 %v7168_v17, %v5251_v16  ;;  %v4933_v7 = vld [vmem:[%s11379_s2 + $0xd8] sm:$0xf0] }
  0x78   :  { %1450 = vmatpush.bf16.msrb.mxu1 %v4884_v1  ;;  %1463 = vmatpush.bf16.msrb.mxu3 %v5012_v5  ;;  %v4979_v21 = vld [vmem:[%s11379_s2 + $0x128] sm:$0xf]  ;;  %v7100_v22 = vld [vmem:[%s11379_s2 + $0x134] sm:$0xf0]  ;;  %v4852_v27 = vor.u32 %v7068_v20, %v4851_v19  ;;  %v4952_v1 = vor.u32 %v7090_v48, %v4949_v51  ;;  %v4936_v15 = vor.u32 %v7086_v6, %v4933_v7  ;;  %v7118_v16 = vld [vmem:[%s11379_s2 + $0x1cc] sm:$0xf] }
  0x79   :  { %1476 = vmatpush.bf16.msra.mxu0 %v5140_v11  ;;  %v5107_v25 = vld [vmem:[%s11379_s2 + $0x228] sm:$0xf]  ;;  %v7132_v26 = vld [vmem:[%s11379_s2 + $0x234] sm:$0xf0]  ;;  %v4980_v31 = vor.u32 %v7100_v22, %v4979_v21  ;;  %v5061_v17 = vld [vmem:[%s11379_s2 + $0x1d8] sm:$0xf0] }
  0x7a   :  { %v5235_v28 = vld [vmem:[%s11379_s2 + $0x328] sm:$0xf]  ;;  %v7164_v29 = vld [vmem:[%s11379_s2 + $0x334] sm:$0xf0]  ;;  %v5108_v40 = vor.u32 %v7132_v26, %v5107_v25  ;;  %v7082_v19 = vld [vmem:[%s11379_s2 + $0xac] sm:$0xf] }
  0x7b   :  { %1489 = vmatpush.bf16.msra.mxu2 %v5268_v12  ;;  %v4835_v30 = vld [vmem:[%s11379_s2 + $0x8] sm:$0xf]  ;;  %v7064_v33 = vld [vmem:[%s11379_s2 + $0x14] sm:$0xf0]  ;;  %v5236_v41 = vor.u32 %v7164_v29, %v5235_v28  ;;  %v5080_v12 = vor.u32 %v7122_v3, %v5077_v4  ;;  %v4917_v20 = vld [vmem:[%s11379_s2 + $0xb8] sm:$0xf0] }
  0x7c   :  { %1451 = vmatpush.bf16.msrb.mxu1 %v4868_v14  ;;  %1464 = vmatpush.bf16.msrb.mxu3 %v4996_v18  ;;  %v4963_v34 = vld [vmem:[%s11379_s2 + $0x108] sm:$0xf]  ;;  %v7096_v35 = vld [vmem:[%s11379_s2 + $0x114] sm:$0xf0]  ;;  %v4836_v45 = vor.u32 %v7064_v33, %v4835_v30  ;;  %v7114_v28 = vld [vmem:[%s11379_s2 + $0x1ac] sm:$0xf] }
  0x7d   :  { %v5459_v36 = vld [vmem:[%s11379_s2 + $0x4e8] sm:$0xf]  ;;  %v7220_v38 = vld [vmem:[%s11379_s2 + $0x4f4] sm:$0xf0]  ;;  %1477 = vmatpush.bf16.msra.mxu0 %v5124_v23  ;;  %v4964_v49 = vor.u32 %v7096_v35, %v4963_v34  ;;  %v5045_v29 = vld [vmem:[%s11379_s2 + $0x1b8] sm:$0xf0] }
  0x7e   :  { %v5587_v39 = vld [vmem:[%s11379_s2 + $0x5e8] sm:$0xf]  ;;  %v7252_v42 = vld [vmem:[%s11379_s2 + $0x5f4] sm:$0xf0]  ;;  %v5460_v50 = vor.u32 %v7220_v38, %v5459_v36  ;;  %v4901_v33 = vld [vmem:[%s11379_s2 + $0x98] sm:$0xf0]  ;;  %v5048_v38 = vor.u32 %v7114_v28, %v5045_v29 }
  0x7f   :  { %1490 = vmatpush.bf16.msra.mxu2 %v5252_v24  ;;  %v5091_v43 = vld [vmem:[%s11379_s2 + $0x208] sm:$0xf]  ;;  %v7128_v44 = vld [vmem:[%s11379_s2 + $0x214] sm:$0xf0]  ;;  %v5588_v55 = vor.u32 %v7252_v42, %v5587_v39  ;;  %v5064_v24 = vor.u32 %v7118_v16, %v5061_v17  ;;  %v7110_v42 = vld [vmem:[%s11379_s2 + $0x18c] sm:$0xf] }
  0x80   :  { %1452 = vmatpush.bf16.msrb.mxu1 %v4852_v27  ;;  %v5219_v46 = vld [vmem:[%s11379_s2 + $0x308] sm:$0xf]  ;;  %v7160_v47 = vld [vmem:[%s11379_s2 + $0x314] sm:$0xf0]  ;;  %1465 = vmatpush.bf16.msrb.mxu3 %v4980_v31  ;;  %v5092_v59 = vor.u32 %v7128_v44, %v5091_v43  ;;  %v4920_v27 = vor.u32 %v7082_v19, %v4917_v20  ;;  %v7078_v31 = vld [vmem:[%s11379_s2 + $0x8c] sm:$0xf] }
  0x81   :  { %v5603_v52 = vld [vmem:[%s11379_s2 + $0x608] sm:$0xf]  ;;  %v7256_v53 = vld [vmem:[%s11379_s2 + $0x614] sm:$0xf0]  ;;  %1478 = vmatpush.bf16.msra.mxu0 %v5108_v40  ;;  %v5220_v60 = vor.u32 %v7160_v47, %v5219_v46  ;;  %v5029_v43 = vld [vmem:[%s11379_s2 + $0x198] sm:$0xf0] }
  0x82   :  { %v5443_v57 = vld [vmem:[%s11379_s2 + $0x4c8] sm:$0xf]  ;;  %v7216_v58 = vld [vmem:[%s11379_s2 + $0x4d4] sm:$0xf0]  ;;  %v5604_v2 = vor.u32 %v7256_v53, %v5603_v52  ;;  %v4885_v46 = vld [vmem:[%s11379_s2 + $0x78] sm:$0xf0] }
  0x83   :  { %1491 = vmatpush.bf16.msra.mxu2 %v5236_v41  ;;  %v5571_v62 = vld [vmem:[%s11379_s2 + $0x5c8] sm:$0xf]  ;;  %v7248_v0 = vld [vmem:[%s11379_s2 + $0x5d4] sm:$0xf0]  ;;  %v5444_v5 = vor.u32 %v7216_v58, %v5443_v57  ;;  %v4904_v41 = vor.u32 %v7078_v31, %v4901_v33  ;;  %v5013_v57 = vld [vmem:[%s11379_s2 + $0x178] sm:$0xf0] }
  0x84   :  { %1453 = vmatpush.bf16.msrb.mxu1 %v4836_v45  ;;  %1466 = vmatpush.bf16.msrb.mxu3 %v4964_v49  ;;  %v5572_v9 = vor.u32 %v7248_v0, %v5571_v62  ;;  %v5427_v10 = vld [vmem:[%s11379_s2 + $0x4a8] sm:$0xf]  ;;  %v7212_v11 = vld [vmem:[%s11379_s2 + $0x4b4] sm:$0xf0]  ;;  %v7074_v45 = vld [vmem:[%s11379_s2 + $0x6c] sm:$0xf] }
  0x85   :  { %1479 = vmatpush.bf16.msra.mxu0 %v5092_v59  ;;  %v5555_v13 = vld [vmem:[%s11379_s2 + $0x5a8] sm:$0xf]  ;;  %v7244_v14 = vld [vmem:[%s11379_s2 + $0x5b4] sm:$0xf0]  ;;  %v5428_v18 = vor.u32 %v7212_v11, %v5427_v10  ;;  %v4888_v53 = vor.u32 %v7074_v45, %v4885_v46  ;;  %v7070_v59 = vld [vmem:[%s11379_s2 + $0x4c] sm:$0xf] }
  0x86   :  { %v5556_v21 = vor.u32 %v7244_v14, %v5555_v13  ;;  %v5411_v22 = vld [vmem:[%s11379_s2 + $0x488] sm:$0xf]  ;;  %v7208_v23 = vld [vmem:[%s11379_s2 + $0x494] sm:$0xf0]  ;;  %v7102_v6 = vld [vmem:[%s11379_s2 + $0x14c] sm:$0xf] }
  0x87   :  { %1492 = vmatpush.bf16.msra.mxu2 %v5220_v60  ;;  %1467 = vmatmul.bf16.vlgmr.msrb.gmra.mxu3 %v8045_v8  ;;  %v5539_v25 = vld [vmem:[%s11379_s2 + $0x588] sm:$0xf]  ;;  %v7240_v26 = vld [vmem:[%s11379_s2 + $0x594] sm:$0xf0]  ;;  %v5412_v30 = vor.u32 %v7208_v23, %v5411_v22  ;;  %v4869_v60 = vld [vmem:[%s11379_s2 + $0x58] sm:$0xf0] }
  0x88   :  { %1498 = vmatpush.bf16.msra.mxu1 %v5460_v50  ;;  %1511 = vmatpush.bf16.msra.mxu3 %v5588_v55  ;;  %v5540_v34 = vor.u32 %v7240_v26, %v5539_v25  ;;  %v5395_v35 = vld [vmem:[%s11379_s2 + $0x468] sm:$0xf]  ;;  %v7204_v36 = vld [vmem:[%s11379_s2 + $0x474] sm:$0xf0]  ;;  %v5032_v50 = vor.u32 %v7110_v42, %v5029_v43  ;;  %v7106_v55 = vld [vmem:[%s11379_s2 + $0x16c] sm:$0xf] }
  0x89   :  { %1531 = vmatpush.bf16.msrb.mxu0 %v5604_v2  ;;  %1454 = vmatmul.bf16.vlgmr.msrb.gmra.mxu1 %v8015_v56  ;;  %v5523_v39 = vld [vmem:[%s11379_s2 + $0x568] sm:$0xf]  ;;  %v7236_v40 = vld [vmem:[%s11379_s2 + $0x574] sm:$0xf0]  ;;  %v5396_v44 = vor.u32 %v7204_v36, %v5395_v35  ;;  %v5016_v2 = vor.u32 %v7106_v55, %v5013_v57  ;;  %v4997_v7 = vld [vmem:[%s11379_s2 + $0x158] sm:$0xf0] }
  0x8a   :  { %1480 = vmatmul.bf16.vlgmr.msra.gmra.mxu0 %v8013_v54  ;;  %1493 = vmatmul.bf16.vlgmr.msra.gmra.mxu2 %v8023_v63  ;;  %v5524_v47 = vor.u32 %v7236_v40, %v5523_v39  ;;  %v5379_v48 = vld [vmem:[%s11379_s2 + $0x448] sm:$0xf]  ;;  %v7200_v49 = vld [vmem:[%s11379_s2 + $0x454] sm:$0xf0]  ;;  %v7066_v10 = vld [vmem:[%s11379_s2 + $0x2c] sm:$0xf]  ;;  %v5000_v17 = vor.u32 %v7102_v6, %v4997_v7 }
  0x8b   :  { %1537 = vmatpush.bf16.msrb.mxu2 %v4952_v1  ;;  %v5507_v51 = vld [vmem:[%s11379_s2 + $0x548] sm:$0xf]  ;;  %v7232_v52 = vld [vmem:[%s11379_s2 + $0x554] sm:$0xf0]  ;;  %v5380_v58 = vor.u32 %v7200_v49, %v5379_v48  ;;  %v4853_v11 = vld [vmem:[%s11379_s2 + $0x38] sm:$0xf0] }
  0x8c   :  { %1499 = vmatpush.bf16.msra.mxu1 %v5444_v5  ;;  %1512 = vmatpush.bf16.msra.mxu3 %v5572_v9  ;;  %v5508_v62 = vor.u32 %v7232_v52, %v5507_v51  ;;  %v5363_v0 = vld [vmem:[%s11379_s2 + $0x428] sm:$0xf]  ;;  %v7196_v1 = vld [vmem:[%s11379_s2 + $0x434] sm:$0xf0]  ;;  %v4872_v5 = vor.u32 %v7070_v59, %v4869_v60  ;;  %v5205_v19 = vld [vmem:[%s11379_s2 + $0x2f8] sm:$0xf0] }
  0x8d   :  { %1550 = vmatpush.bf16.msra.mxu0 %v5080_v12  ;;  %v5491_v3 = vld [vmem:[%s11379_s2 + $0x528] sm:$0xf]  ;;  %v7228_v4 = vld [vmem:[%s11379_s2 + $0x534] sm:$0xf0]  ;;  %v5364_v9 = vor.u32 %v7196_v1, %v5363_v0  ;;  %v7186_v20 = vld [vmem:[%s11379_s2 + $0x3ec] sm:$0xf] }
  0x8e   :  { %v5347_v12 = vld [vmem:[%s11379_s2 + $0x408] sm:$0xf]  ;;  %v5492_v13 = vor.u32 %v7228_v4, %v5491_v3  ;;  %v7192_v14 = vld [vmem:[%s11379_s2 + $0x414] sm:$0xf0]  ;;  %v5333_v22 = vld [vmem:[%s11379_s2 + $0x3f8] sm:$0xf0] }
  0x8f   :  { %1538 = vmatpush.bf16.msrb.mxu2 %v4936_v15  ;;  %v5475_v15 = vld [vmem:[%s11379_s2 + $0x508] sm:$0xf]  ;;  %v7224_v16 = vld [vmem:[%s11379_s2 + $0x514] sm:$0xf0]  ;;  %v7098_v23 = vld [vmem:[%s11379_s2 + $0x12c] sm:$0xf]  ;;  %v5348_v25 = vor.u32 %v7192_v14, %v5347_v12  ;;  %v5336_v33 = vor.u32 %v7186_v20, %v5333_v22 }
  0x90   :  { %1500 = vmatpush.bf16.msra.mxu1 %v5428_v18  ;;  %1513 = vmatpush.bf16.msra.mxu3 %v5556_v21  ;;  %v7154_v18 = vld [vmem:[%s11379_s2 + $0x2ec] sm:$0xf]  ;;  %v4856_v21 = vor.u32 %v7066_v10, %v4853_v11  ;;  %v5476_v28 = vor.u32 %v7224_v16, %v5475_v15  ;;  %v5461_v31 = vld [vmem:[%s11379_s2 + $0x4f8] sm:$0xf0]  ;;  %vm2881_vm1 = vcmask 1041408   ;;  %s4800_s20 = sshll.u32 %s11389_s12, 4  ;;  %s4801_s20 = int_to_ptr.hbm [resolvable:$true] %s4800_s20 }
  0x91   :  { %1551 = vmatpush.bf16.msra.mxu0 %v5064_v24  ;;  %v4981_v24 = vld [vmem:[%s11379_s2 + $0x138] sm:$0xf0]  ;;  %v7062_v26 = vld [vmem:[%s11379_s2 + $0xc] sm:$0xf]  ;;  %v5208_v29 = vor.u32 %v7154_v18, %v5205_v19  ;;  %s7699_s12 = smov [#allocation4]   ;;  %s4811_s25 = sshll.u32 %s11390_s13, 4  ;;  %s4812_s25 = int_to_ptr.hbm [resolvable:$true] %s4811_s25 }
  0x92   :  { %v7150_v35 = vld [vmem:[%s11379_s2 + $0x2cc] sm:$0xf]  ;;  %v5189_v36 = vld [vmem:[%s11379_s2 + $0x2d8] sm:$0xf0]  ;;  %s4809_s22 = sshll.u32 %s7699_s12, 4  ;;  %s4810_s22 = int_to_ptr.vmem [resolvable:$true] %s4809_s22 }
  0x93   :  { %1539 = vmatpush.bf16.msrb.mxu2 %v4920_v27  ;;  %v4837_v27 = vld [vmem:[%s11379_s2 + $0x18] sm:$0xf0]  ;;  %v5192_v46 = vor.u32 %v7150_v35, %v5189_v36  ;;  %v7146_v51 = vld [vmem:[%s11379_s2 + $0x2ac] sm:$0xf] }
  0x94   :  { %1501 = vmatpush.bf16.msra.mxu1 %v5412_v30  ;;  %1514 = vmatpush.bf16.msra.mxu3 %v5540_v34  ;;  %v7218_v30 = vld [vmem:[%s11379_s2 + $0x4ec] sm:$0xf]  ;;  %v4984_v34 = vor.u32 %v7098_v23, %v4981_v24  ;;  %v4840_v39 = vor.u32 %v7062_v26, %v4837_v27  ;;  %v5317_v40 = vld [vmem:[%s11379_s2 + $0x3d8] sm:$0xf0] }
  0x95   :  { %1552 = vmatpush.bf16.msra.mxu0 %v5048_v38  ;;  %v7182_v38 = vld [vmem:[%s11379_s2 + $0x3cc] sm:$0xf]  ;;  %v4965_v42 = vld [vmem:[%s11379_s2 + $0x118] sm:$0xf0]  ;;  %v5464_v43 = vor.u32 %v7218_v30, %v5461_v31 }
  0x96   :  { %v5589_v45 = vld [vmem:[%s11379_s2 + $0x5f8] sm:$0xf0]  ;;  %v5320_v49 = vor.u32 %v7182_v38, %v5317_v40  ;;  %v7178_v55 = vld [vmem:[%s11379_s2 + $0x3ac] sm:$0xf] }
  0x97   :  { %1540 = vmatpush.bf16.msrb.mxu2 %v4904_v41  ;;  %v7094_v41 = vld [vmem:[%s11379_s2 + $0x10c] sm:$0xf]  ;;  %v5445_v48 = vld [vmem:[%s11379_s2 + $0x4d8] sm:$0xf0] }
  0x98   :  { %1502 = vmatpush.bf16.msra.mxu1 %v5396_v44  ;;  %1515 = vmatpush.bf16.msra.mxu3 %v5524_v47  ;;  %v7250_v44 = vld [vmem:[%s11379_s2 + $0x5ec] sm:$0xf]  ;;  %v5173_v52 = vld [vmem:[%s11379_s2 + $0x2b8] sm:$0xf0] }
  0x99   :  { %1553 = vmatpush.bf16.msra.mxu0 %v5032_v50  ;;  %v7214_v47 = vld [vmem:[%s11379_s2 + $0x4cc] sm:$0xf]  ;;  %v4968_v50 = vor.u32 %v7094_v41, %v4965_v42  ;;  %v5301_v57 = vld [vmem:[%s11379_s2 + $0x3b8] sm:$0xf0] }
  0x9a   :  { %5611 = vmatmul.msk.bf16.vlgmr.msrb.gmra.mxu0 %vm1260_vm0, %v8148_v61  ;;  %v7246_v59 = vld [vmem:[%s11379_s2 + $0x5cc] sm:$0xf]  ;;  %v5573_v60 = vld [vmem:[%s11379_s2 + $0x5d8] sm:$0xf0] }
  0x9b   :  { %1541 = vmatpush.bf16.msrb.mxu2 %v4888_v53  ;;  %v5592_v53 = vor.u32 %v7250_v44, %v5589_v45  ;;  %v7210_v0 = vld [vmem:[%s11379_s2 + $0x4ac] sm:$0xf]  ;;  %v5429_v1 = vld [vmem:[%s11379_s2 + $0x4b8] sm:$0xf0] }
  0x9c   :  { %1503 = vmatpush.bf16.msra.mxu1 %v5380_v58  ;;  %1516 = vmatpush.bf16.msra.mxu3 %v5508_v62  ;;  %v5448_v58 = vor.u32 %v7214_v47, %v5445_v48  ;;  %v5176_v62 = vor.u32 %v7146_v51, %v5173_v52  ;;  %v7142_v3 = vld [vmem:[%s11379_s2 + $0x28c] sm:$0xf]  ;;  %v5157_v4 = vld [vmem:[%s11379_s2 + $0x298] sm:$0xf0] }
  0x9d   :  { %1554 = vmatpush.bf16.msra.mxu0 %v5016_v2  ;;  %v5304_v2 = vor.u32 %v7178_v55, %v5301_v57  ;;  %v7174_v6 = vld [vmem:[%s11379_s2 + $0x38c] sm:$0xf]  ;;  %v5285_v7 = vld [vmem:[%s11379_s2 + $0x398] sm:$0xf0]  ;;  %v5160_v12 = vor.u32 %v7142_v3, %v5157_v4  ;;  %v5727_v3 = vld [vmem:[%s11381_s4 + $0xe0] sm:$0xf] }
  0x9e   :  { %v7242_v10 = vld [vmem:[%s11379_s2 + $0x5ac] sm:$0xf]  ;;  %v5557_v11 = vld [vmem:[%s11379_s2 + $0x5b8] sm:$0xf0]  ;;  %v5288_v14 = vor.u32 %v7174_v6, %v5285_v7 }
  0x9f   :  { %1542 = vmatpush.bf16.msrb.mxu2 %v4872_v5  ;;  %v5576_v5 = vor.u32 %v7246_v59, %v5573_v60  ;;  %v7138_v15 = vld [vmem:[%s11379_s2 + $0x26c] sm:$0xf]  ;;  %v5141_v16 = vld [vmem:[%s11379_s2 + $0x278] sm:$0xf0] }
  0xa0   :  { %1504 = vmatpush.bf16.msra.mxu1 %v5364_v9  ;;  %1517 = vmatpush.bf16.msra.mxu3 %v5492_v13  ;;  %v5432_v9 = vor.u32 %v7210_v0, %v5429_v1  ;;  %v7206_v13 = vld [vmem:[%s11379_s2 + $0x48c] sm:$0xf]  ;;  %v5541_v22 = vld [vmem:[%s11379_s2 + $0x598] sm:$0xf0]  ;;  %v5144_v23 = vor.u32 %v7138_v15, %v5141_v16 }
  0xa1   :  { %1555 = vmatpush.bf16.msra.mxu0 %v5000_v17  ;;  %v5560_v17 = vor.u32 %v7242_v10, %v5557_v11  ;;  %v7170_v18 = vld [vmem:[%s11379_s2 + $0x36c] sm:$0xf]  ;;  %v5525_v36 = vld [vmem:[%s11379_s2 + $0x578] sm:$0xf0] }
  0xa2   :  { %v7202_v24 = vld [vmem:[%s11379_s2 + $0x46c] sm:$0xf]  ;;  %v5381_v41 = vld [vmem:[%s11379_s2 + $0x458] sm:$0xf0] }
  0xa3   :  { %1543 = vmatpush.bf16.msrb.mxu2 %v4856_v21  ;;  %v7238_v21 = vld [vmem:[%s11379_s2 + $0x58c] sm:$0xf]  ;;  %v5109_v45 = vld [vmem:[%s11379_s2 + $0x238] sm:$0xf0] }
  0xa4   :  { %1505 = vmatpush.bf16.msra.mxu1 %v5348_v25  ;;  %1518 = vmatpush.bf16.msra.mxu3 %v5476_v28  ;;  %v5397_v25 = vld [vmem:[%s11379_s2 + $0x478] sm:$0xf0]  ;;  %v7134_v27 = vld [vmem:[%s11379_s2 + $0x24c] sm:$0xf] }
  0xa5   :  { %1556 = vmatpush.bf16.msra.mxu0 %v4984_v34  ;;  %v5125_v28 = vld [vmem:[%s11379_s2 + $0x258] sm:$0xf0]  ;;  %v7166_v31 = vld [vmem:[%s11379_s2 + $0x34c] sm:$0xf]  ;;  %v5400_v34 = vor.u32 %v7202_v24, %v5397_v25  ;;  %v5855_v24 = vld [vmem:[%s11381_s4 + $0x1e0] sm:$0xf] }
  0xa6   :  { %v7234_v35 = vld [vmem:[%s11379_s2 + $0x56c] sm:$0xf]  ;;  %v5237_v48 = vld [vmem:[%s11379_s2 + $0x338] sm:$0xf0]  ;;  %v7319_v25 = vld [vmem:[%s11381_s4 + $0x1ec] sm:$0xf0] }
  0xa7   :  { %1506 = vmatmul.bf16.vlgmr.msra.gmra.mxu1 %v8209_v32  ;;  %1544 = vmatpush.bf16.msrb.mxu2 %v4840_v39  ;;  %v8896_v19 = vpop.f32.mrf.mxu0  ;;  %v5128_v39 = vor.u32 %v7134_v27, %v5125_v28  ;;  %v7198_v40 = vld [vmem:[%s11379_s2 + $0x44c] sm:$0xf]  ;;  %v5509_v52 = vld [vmem:[%s11379_s2 + $0x558] sm:$0xf0]  ;;  %v5856_v28 = vor.u32 %v7319_v25, %v5855_v24  ;;  %v5743_v24 = vld [vmem:[%s11381_s4 + $0x100] sm:$0xf] }
  0xa8   :  { %1563 = vmatpush.bf16.msrb.mxu1 %v5208_v29  ;;  %1576 = vmatpush.bf16.msrb.mxu3 %v5336_v33  ;;  %v5544_v29 = vor.u32 %v7238_v21, %v5541_v22  ;;  %v5253_v33 = vld [vmem:[%s11379_s2 + $0x358] sm:$0xf0]  ;;  %v7130_v44 = vld [vmem:[%s11379_s2 + $0x22c] sm:$0xf]  ;;  %v5711_v21 = vld [vmem:[%s11381_s4 + $0xc0] sm:$0xf] }
  0xa9   :  { %1519 = vmatmul.bf16.vlgmr.msra.gmra.mxu3 %v8220_v37  ;;  %1557 = vmatpush.bf16.msra.mxu0 %v4968_v50  ;;  %v5256_v42 = vor.u32 %v7166_v31, %v5253_v33  ;;  %v7162_v47 = vld [vmem:[%s11379_s2 + $0x32c] sm:$0xf]  ;;  %v5384_v50 = vor.u32 %v7198_v40, %v5381_v41  ;;  %v5112_v55 = vor.u32 %v7130_v44, %v5109_v45  ;;  %v5221_v1 = vld [vmem:[%s11379_s2 + $0x318] sm:$0xf0]  ;;  %v5695_v33 = vld [vmem:[%s11381_s4 + $0xa0] sm:$0xf] }
  0xaa   :  { %1545 = vmatmul.bf16.vlgmr.msrb.gmra.mxu2 %v8015_v56  ;;  %v5413_v56 = vld [vmem:[%s11379_s2 + $0x498] sm:$0xf0]  ;;  %v8916_v30 = vpop.f32.mrf.mxu1  ;;  %v7230_v51 = vld [vmem:[%s11379_s2 + $0x54c] sm:$0xf]  ;;  %v5240_v60 = vor.u32 %v7162_v47, %v5237_v48  ;;  %v5679_v41 = vld [vmem:[%s11381_s4 + $0x80] sm:$0xf] }
  0xab   :  { %1589 = vmatpush.bf16.msra.mxu2 %v5464_v43  ;;  %v5416_v20 = vor.u32 %v7206_v13, %v5413_v56  ;;  %v7194_v57 = vld [vmem:[%s11379_s2 + $0x42c] sm:$0xf]  ;;  %v5605_v6 = vld [vmem:[%s11379_s2 + $0x618] sm:$0xf0]  ;;  %v5663_v47 = vld [vmem:[%s11381_s4 + $0x60] sm:$0xf] }
  0xac   :  { %1564 = vmatpush.bf16.msrb.mxu1 %v5192_v46  ;;  %1577 = vmatpush.bf16.msrb.mxu3 %v5320_v49  ;;  %v5528_v46 = vor.u32 %v7234_v35, %v5525_v36  ;;  %v7126_v59 = vld [vmem:[%s11379_s2 + $0x20c] sm:$0xf]  ;;  %v5493_v11 = vld [vmem:[%s11379_s2 + $0x538] sm:$0xf0]  ;;  %v7279_v35 = vld [vmem:[%s11381_s4 + $0xac] sm:$0xf0] }
  0xad   :  { %1602 = vmatpush.bf16.msrb.mxu0 %v5592_v53  ;;  %v8930_v38 = vpop.f32.mrf.mxu2  ;;  %v8961_v53 = vld [vmem:[%s11380_s3] sm:$0xf]  ;;  %v7158_v0 = vld [vmem:[%s11379_s2 + $0x30c] sm:$0xf]  ;;  %v5477_v27 = vld [vmem:[%s11379_s2 + $0x518] sm:$0xf0]  ;;  %v5696_v40 = vor.u32 %v7279_v35, %v5695_v33 }
  0xae   :  { %1558 = vmatmul.bf16.vlgmr.msra.gmra.mxu0 %v8045_v8  ;;  %v5269_v8 = vld [vmem:[%s11379_s2 + $0x378] sm:$0xf0]  ;;  %v8938_v43 = vpop.f32.mrf.mxu3  ;;  %v7226_v10 = vld [vmem:[%s11379_s2 + $0x52c] sm:$0xf]  ;;  %v272_v15 = vperm.slane %v8961_v53, 0  ;;  %v5224_v16 = vor.u32 %v7158_v0, %v5221_v1 }
  0xaf   :  { %1590 = vmatpush.bf16.msra.mxu2 %v5448_v58  ;;  %v5272_v26 = vor.u32 %v7170_v18, %v5269_v8  ;;  %v1275_v49 = vpop.f32.mrf.mxu0  ;;  %v5365_v58 = vld [vmem:[%s11379_s2 + $0x438] sm:$0xf0]  ;;  %v7190_v56 = vld [vmem:[%s11379_s2 + $0x40c] sm:$0xf]  ;;  %v7315_v36 = vld [vmem:[%s11381_s4 + $0x1cc] sm:$0xf0] }
  0xb0   :  { %1565 = vmatpush.bf16.msrb.mxu1 %v5176_v62  ;;  %1578 = vmatpush.bf16.msrb.mxu3 %v5304_v2  ;;  %v5093_v62 = vld [vmem:[%s11379_s2 + $0x218] sm:$0xf0]  ;;  %v5512_v2 = vor.u32 %v7230_v51, %v5509_v52  ;;  %v5368_v7 = vor.u32 %v7194_v57, %v5365_v58  ;;  %v7271_v49 = vld [vmem:[%s11381_s4 + $0x6c] sm:$0xf0]  ;;  %v5647_v57 = vld [vmem:[%s11381_s4 + $0x40] sm:$0xf] }
  0xb1   :  { %1603 = vmatpush.bf16.msrb.mxu0 %v5576_v5  ;;  %v7254_v5 = vld [vmem:[%s11379_s2 + $0x60c] sm:$0xf]  ;;  %v5096_v13 = vor.u32 %v7126_v59, %v5093_v62  ;;  %v7267_v59 = vld [vmem:[%s11381_s4 + $0x4c] sm:$0xf0]  ;;  %v5697_v35 = vld [vmem:[%s11381_s4 + $0xb0] sm:$0xf0] }
  0xb2   :  { %v1288_v4 = vpop.f32.mrf.mxu1  ;;  %v7303_v62 = vld [vmem:[%s11381_s4 + $0x16c] sm:$0xf0]  ;;  %v5648_v1 = vor.u32 %v7267_v59, %v5647_v57 }
  0xb3   :  { %1591 = vmatpush.bf16.msra.mxu2 %v5432_v9  ;;  %v7287_v9 = vld [vmem:[%s11381_s4 + $0xec] sm:$0xf0] }
  0xb4   :  { %1566 = vmatpush.bf16.msrb.mxu1 %v5160_v12  ;;  %1579 = vmatpush.bf16.msrb.mxu3 %v5288_v14  ;;  %v5349_v14 = vld [vmem:[%s11379_s2 + $0x418] sm:$0xf0]  ;;  %v5728_v8 = vor.u32 %v7287_v9, %v5727_v3  ;;  %v7263_v4 = vld [vmem:[%s11381_s4 + $0x2c] sm:$0xf0] }
  0xb5   :  { %1604 = vmatpush.bf16.msrb.mxu0 %v5560_v17  ;;  %v1301_v12 = vpop.f32.mrf.mxu2  ;;  %v5608_v17 = vor.u32 %v7254_v5, %v5605_v6  ;;  %v5352_v22 = vor.u32 %v7190_v56, %v5349_v14  ;;  %v7299_v9 = vld [vmem:[%s11381_s4 + $0x14c] sm:$0xf0]  ;;  %v5759_v14 = vld [vmem:[%s11381_s4 + $0x120] sm:$0xf] }
  0xb6   :  { %v1314_v18 = vpop.f32.mrf.mxu3  ;;  %v7259_v56 = vld [vmem:[%s11381_s4 + $0xc] sm:$0xf0] }
  0xb7   :  { %1592 = vmatpush.bf16.msra.mxu2 %v5416_v20  ;;  %v5496_v20 = vor.u32 %v7226_v10, %v5493_v11  ;;  %v7291_v25 = vld [vmem:[%s11381_s4 + $0x10c] sm:$0xf0] }
  0xb8   :  { %1567 = vmatpush.bf16.msrb.mxu1 %v5144_v23  ;;  %1580 = vmatpush.bf16.msrb.mxu3 %v5272_v26  ;;  %v7283_v23 = vld [vmem:[%s11381_s4 + $0xcc] sm:$0xf0]  ;;  %v7222_v26 = vld [vmem:[%s11379_s2 + $0x50c] sm:$0xf] }
  0xb9   :  { %1605 = vmatpush.bf16.msrb.mxu0 %v5544_v29  ;;  %v1274_v29 = vadd.f32 %v8896_v19, %v272_v15  ;;  %v5712_v31 = vor.u32 %v7283_v23, %v5711_v21  ;;  %v5839_v19 = vld [vmem:[%s11381_s4 + $0x1c0] sm:$0xf]  ;;  %v7295_v15 = vld [vmem:[%s11381_s4 + $0x12c] sm:$0xf0] }
  0xba   :  { %v5760_v18 = vor.u32 %v7295_v15, %v5759_v14  ;;  %v7351_v57 = vld [vmem:[%s11381_s4 + $0x2ec] sm:$0xf0]  ;;  %v5847_v15 = vld [vmem:[%s11381_s4 + $0x1c8] sm:$0xf] }
  0xbb   :  { %1593 = vmatpush.bf16.msra.mxu2 %v5400_v34  ;;  %v5480_v34 = vor.u32 %v7222_v26, %v5477_v27  ;;  %v7281_v26 = vld [vmem:[%s11381_s4 + $0xc4] sm:$0xf]  ;;  %v5713_v27 = vld [vmem:[%s11381_s4 + $0xd0] sm:$0xf0] }
  0xbc   :  { %1568 = vmatpush.bf16.msrb.mxu1 %v5128_v39  ;;  %1581 = vmatpush.bf16.msrb.mxu3 %v5256_v42  ;;  %v5840_v39 = vor.u32 %v7315_v36, %v5839_v19  ;;  %v7275_v42 = vld [vmem:[%s11381_s4 + $0x8c] sm:$0xf0]  ;;  %v5716_v33 = vor.u32 %v7281_v26, %v5713_v27 }
  0xbd   :  { %1606 = vmatpush.bf16.msrb.mxu0 %v5528_v46  ;;  %v1351_v44 = vpop.f32.mrf.mxu2  ;;  %v5680_v46 = vor.u32 %v7275_v42, %v5679_v41 }
  0xbf   :  { %1594 = vmatpush.bf16.msra.mxu2 %v5384_v50  ;;  %v5807_v50 = vld [vmem:[%s11381_s4 + $0x180] sm:$0xf] }
  0xc0   :  { %1569 = vmatpush.bf16.msrb.mxu1 %v5112_v55  ;;  %1582 = vmatpush.bf16.msrb.mxu3 %v5240_v60  ;;  %v5664_v55 = vor.u32 %v7271_v49, %v5663_v47  ;;  %v5791_v60 = vld [vmem:[%s11381_s4 + $0x160] sm:$0xf]  ;;  %v5649_v47 = vld [vmem:[%s11381_s4 + $0x50] sm:$0xf0] }
  0xc1   :  { %1607 = vmatpush.bf16.msrb.mxu0 %v5512_v2  ;;  %v5792_v0 = vor.u32 %v7303_v62, %v5791_v60  ;;  %v5631_v2 = vld [vmem:[%s11381_s4 + $0x20] sm:$0xf] }
  0xc2   :  { %v5632_v12 = vor.u32 %v7263_v4, %v5631_v2  ;;  %v5617_v2 = vld [vmem:[%s11381_s4 + $0x10] sm:$0xf0]  ;;  %v5967_v4 = vld [vmem:[%s11381_s4 + $0x2c0] sm:$0xf] }
  0xc3   :  { %1595 = vmatpush.bf16.msra.mxu2 %v5368_v7  ;;  %v1325_v48 = vpop.f32.mrf.mxu0  ;;  %v5775_v7 = vld [vmem:[%s11381_s4 + $0x140] sm:$0xf] }
  0xc4   :  { %1570 = vmatpush.bf16.msrb.mxu1 %v5096_v13  ;;  %1583 = vmatpush.bf16.msrb.mxu3 %v5224_v16  ;;  %v5776_v11 = vor.u32 %v7299_v9, %v5775_v7  ;;  %v7285_v16 = vld [vmem:[%s11381_s4 + $0xe4] sm:$0xf]  ;;  %v5863_v7 = vld [vmem:[%s11381_s4 + $0x1e8] sm:$0xf]  ;;  %v7320_v9 = vld [vmem:[%s11381_s4 + $0x1f4] sm:$0xf0] }
  0xc5   :  { %1608 = vmatpush.bf16.msrb.mxu0 %v5496_v20  ;;  %v5864_v14 = vor.u32 %v7320_v9, %v5863_v7  ;;  %v5767_v9 = vld [vmem:[%s11381_s4 + $0x128] sm:$0xf] }
  0xc7   :  { %1571 = vmatmul.bf16.vlgmr.msrb.gmra.mxu1 %v8013_v54  ;;  %1596 = vmatpush.bf16.msra.mxu2 %v5352_v22  ;;  %v1287_v54 = vadd.f32 %v8916_v30, %v1274_v29  ;;  %v7311_v30 = vld [vmem:[%s11381_s4 + $0x1ac] sm:$0xf0]  ;;  %v273_v29 = vperm.slane %v8961_v53, 1 }
  0xc8   :  { %1622 = vmatpush.bf16.msra.mxu1 %v5608_v17  ;;  %2249 = vmatpush.bf16.msra.mxu3 %v5728_v8  ;;  %v5729_v17 = vld [vmem:[%s11381_s4 + $0xf0] sm:$0xf0] }
  0xc9   :  { %1584 = vmatmul.bf16.vlgmr.msrb.gmra.mxu3 %v8023_v63  ;;  %1609 = vmatpush.bf16.msrb.mxu0 %v5480_v34  ;;  %v5823_v63 = vld [vmem:[%s11381_s4 + $0x1a0] sm:$0xf]  ;;  %v1300_v45 = vadd.f32 %v8930_v38, %v1287_v54  ;;  %v7307_v38 = vld [vmem:[%s11381_s4 + $0x18c] sm:$0xf0]  ;;  %v5732_v22 = vor.u32 %v7285_v16, %v5729_v17  ;;  %v7277_v34 = vld [vmem:[%s11381_s4 + $0xa4] sm:$0xf] }
  0xca   :  { %1597 = vmatmul.bf16.vlgmr.msra.gmra.mxu2 %v8209_v32  ;;  %v5824_v32 = vor.u32 %v7311_v30, %v5823_v63  ;;  %v5808_v51 = vor.u32 %v7307_v38, %v5807_v50  ;;  %v7273_v54 = vld [vmem:[%s11381_s4 + $0x84] sm:$0xf]  ;;  %v5665_v30 = vld [vmem:[%s11381_s4 + $0x70] sm:$0xf0]  ;;  %v7316_v16 = vld [vmem:[%s11381_s4 + $0x1d4] sm:$0xf0] }
  0xcb   :  { %v1313_v52 = vadd.f32 %v8938_v43, %v1300_v45  ;;  %v1353_v43 = vpop.f32.mrf.mxu2  ;;  %v1327_v5 = vpop.f32.mrf.mxu0  ;;  %v7269_v63 = vld [vmem:[%s11381_s4 + $0x64] sm:$0xf] }
  0xcc   :  { %2262 = vmatpush.bf16.msrb.mxu1 %v5856_v28  ;;  %2250 = vmatpush.bf16.msra.mxu3 %v5712_v31  ;;  %v1364_v6 = vpop.f32.mrf.mxu3  ;;  %v5744_v28 = vor.u32 %v7291_v25, %v5743_v24  ;;  %v5668_v45 = vor.u32 %v7269_v63, %v5665_v30  ;;  %v7261_v38 = vld [vmem:[%s11381_s4 + $0x24] sm:$0xf]  ;;  %v5985_v43 = vld [vmem:[%s11381_s4 + $0x2f0] sm:$0xf0]  ;;  %v7347_v5 = vld [vmem:[%s11381_s4 + $0x2cc] sm:$0xf0] }
  0xcd   :  { %1610 = vmatmul.bf16.vlgmr.msrb.gmra.mxu0 %v8220_v37  ;;  %v1338_v37 = vpop.f32.mrf.mxu1  ;;  %v1326_v58 = vadd.f32 %v1325_v48, %v1313_v52  ;;  %v1365_v36 = vadd.f32 %v1364_v6, %v273_v29  ;;  %v7345_v6 = vld [vmem:[%s11381_s4 + $0x2c4] sm:$0xf]  ;;  %v5953_v25 = vld [vmem:[%s11381_s4 + $0x2b0] sm:$0xf0]  ;;  %v5831_v29 = vld [vmem:[%s11381_s4 + $0x1a8] sm:$0xf] }
  0xce   :  { %v7308_v63 = vld [vmem:[%s11381_s4 + $0x194] sm:$0xf0] }
  0xcf   :  { %v1339_v3 = vadd.f32 %v1338_v37, %v1326_v58  ;;  %v5633_v37 = vld [vmem:[%s11381_s4 + $0x30] sm:$0xf0]  ;;  %v7349_v58 = vld [vmem:[%s11381_s4 + $0x2e4] sm:$0xf] }
  0xd0   :  { %2263 = vmatpush.bf16.msrb.mxu1 %v5840_v39  ;;  %2251 = vmatpush.bf16.msra.mxu3 %v5696_v40  ;;  %v5700_v39 = vor.u32 %v7277_v34, %v5697_v35  ;;  %v5681_v40 = vld [vmem:[%s11381_s4 + $0x90] sm:$0xf0]  ;;  %v5935_v34 = vld [vmem:[%s11381_s4 + $0x280] sm:$0xf]  ;;  %v7339_v35 = vld [vmem:[%s11381_s4 + $0x28c] sm:$0xf0] }
  0xd1   :  { %v1352_v13 = vadd.f32 %v1351_v44, %v1339_v3  ;;  %v5684_v42 = vor.u32 %v7273_v54, %v5681_v40  ;;  %v5988_v3 = vor.u32 %v7349_v58, %v5985_v43  ;;  %v5937_v54 = vld [vmem:[%s11381_s4 + $0x290] sm:$0xf0] }
  0xd3   :  { %v1377_v8 = vpop.f32.mrf.mxu2  ;;  %v1628_v21 = vmax.f32 %v1352_v13, 0.0 }
  0xd4   :  { %2264 = vmatpush.bf16.msrb.mxu1 %v5824_v32  ;;  %2252 = vmatpush.bf16.msra.mxu3 %v5680_v46  ;;  %v1366_v23 = vpop.f32.mrf.mxu3  ;;  %v1378_v41 = vadd.f32 %v1377_v8, %v1365_v36  ;;  %v7265_v46 = vld [vmem:[%s11381_s4 + $0x44] sm:$0xf]  ;;  %v5951_v8 = vld [vmem:[%s11381_s4 + $0x2a0] sm:$0xf] }
  0xd5   :  { %v1340_v10 = vpop.f32.mrf.mxu1  ;;  %v9125_v31 = vpack.c.bf16 %v1628_v21, %v1628_v21  ;;  %v5652_v50 = vor.u32 %v7265_v46, %v5649_v47  ;;  %v7341_v21 = vld [vmem:[%s11381_s4 + $0x2a4] sm:$0xf]  ;;  %v5921_v47 = vld [vmem:[%s11381_s4 + $0x270] sm:$0xf0] }
  0xd6   :  { %v5956_v26 = vor.u32 %v7341_v21, %v5953_v25  ;;  %v7350_v21 = vld [vmem:[%s11381_s4 + $0x2ec] sm:$0xf] }
  0xd7   :  { %5612 = vmatmul.msk.bf16.vlgmr.msra.gmra.mxu1 %vm1260_vm0, %v8148_v61  ;;  %v5615_v61 = vld [vmem:[%s11381_s4] sm:$0xf] }
  0xd8   :  { %2265 = vmatpush.bf16.msrb.mxu1 %v5808_v51  ;;  %2253 = vmatpush.bf16.msra.mxu3 %v5664_v55  ;;  %v5616_v20 = vor.u32 %v7259_v56, %v5615_v61  ;;  %v5983_v55 = vld [vmem:[%s11381_s4 + $0x2e0] sm:$0xf] }
  0xd9   :  { %v5984_v62 = vor.u32 %v7351_v57, %v5983_v55  ;;  %v5905_v57 = vld [vmem:[%s11381_s4 + $0x250] sm:$0xf0] }
  0xdb   :  { %v1379_v19 = vpop.f32.mrf.mxu2  ;;  %2275 = vmatpush.bf16.msrb.mxu2 %v5984_v62  ;;  %v7300_v62 = vld [vmem:[%s11381_s4 + $0x154] sm:$0xf0] }
  0xdc   :  { %2266 = vmatpush.bf16.msrb.mxu1 %v5792_v0  ;;  %2254 = vmatpush.bf16.msra.mxu3 %v5648_v1  ;;  %v5636_v0 = vor.u32 %v7261_v38, %v5633_v37  ;;  %v7257_v1 = vld [vmem:[%s11381_s4 + $0x4] sm:$0xf]  ;;  %v7304_v38 = vld [vmem:[%s11381_s4 + $0x174] sm:$0xf0]  ;;  %v5903_v37 = vld [vmem:[%s11381_s4 + $0x240] sm:$0xf] }
  0xdd   :  { %v5620_v56 = vor.u32 %v7257_v1, %v5617_v2  ;;  %v7337_v19 = vld [vmem:[%s11381_s4 + $0x284] sm:$0xf]  ;;  %v7327_v1 = vld [vmem:[%s11381_s4 + $0x22c] sm:$0xf0] }
  0xde   :  { %v5940_v40 = vor.u32 %v7337_v19, %v5937_v54  ;;  %v7325_v2 = vld [vmem:[%s11381_s4 + $0x224] sm:$0xf] }
  0xe0   :  { %2267 = vmatpush.bf16.msrb.mxu1 %v5776_v11  ;;  %2255 = vmatpush.bf16.msra.mxu3 %v5632_v12  ;;  %v5968_v11 = vor.u32 %v7347_v5, %v5967_v4  ;;  %v5969_v12 = vld [vmem:[%s11381_s4 + $0x2d0] sm:$0xf0] }
  0xe1   :  { %v5972_v13 = vor.u32 %v7345_v6, %v5969_v12  ;;  %v5889_v5 = vld [vmem:[%s11381_s4 + $0x230] sm:$0xf0]  ;;  %v7323_v12 = vld [vmem:[%s11381_s4 + $0x20c] sm:$0xf0] }
  0xe2   :  { %2276 = vmatpush.bf16.msrb.mxu2 %v5968_v11  ;;  %v5892_v6 = vor.u32 %v7325_v2, %v5889_v5  ;;  %v5871_v11 = vld [vmem:[%s11381_s4 + $0x200] sm:$0xf]  ;;  %v5809_v5 = vld [vmem:[%s11381_s4 + $0x190] sm:$0xf0] }
  0xe3   :  { %v1390_v44 = vpop.f32.mrf.mxu0 }
  0xe4   :  { %2268 = vmatpush.bf16.msrb.mxu1 %v5760_v18  ;;  %2256 = vmatpush.bf16.msra.mxu3 %v5616_v20  ;;  %v1391_v32 = vadd.f32 %v1390_v44, %v1378_v41  ;;  %v7343_v20 = vld [vmem:[%s11381_s4 + $0x2ac] sm:$0xf0]  ;;  %v5919_v44 = vld [vmem:[%s11381_s4 + $0x260] sm:$0xf] }
  0xe5   :  { %v5952_v24 = vor.u32 %v7343_v20, %v5951_v8  ;;  %v7292_v8 = vld [vmem:[%s11381_s4 + $0x114] sm:$0xf0] }
  0xe6   :  { %v1403_v48 = vpop.f32.mrf.mxu1 }
  0xe7   :  { %2257 = vmatmul.bf16.vlgmr.msra.gmra.mxu3 %v9125_v31  ;;  %v1404_v49 = vadd.f32 %v1403_v48, %v1391_v32  ;;  %2277 = vmatpush.bf16.msrb.mxu2 %v5952_v24  ;;  %v7335_v32 = vld [vmem:[%s11381_s4 + $0x26c] sm:$0xf0] }
  0xe8   :  { %2301 = vmatpush.bf16.msrb.mxu3 %v5732_v22  ;;  %2269 = vmatpush.bf16.msrb.mxu1 %v5744_v28  ;;  %v5848_v28 = vor.u32 %v7316_v16, %v5847_v15  ;;  %v5920_v46 = vor.u32 %v7335_v32, %v5919_v44 }
  0xea   :  { %v1416_v52 = vpop.f32.mrf.mxu3 }
  0xeb   :  { %v1392_v51 = vpop.f32.mrf.mxu0  ;;  %v1417_v59 = vadd.f32 %v1416_v52, %v1404_v49  ;;  %v7329_v52 = vld [vmem:[%s11381_s4 + $0x244] sm:$0xf] }
  0xec   :  { %2302 = vmatpush.bf16.msrb.mxu3 %v5716_v33  ;;  %2327 = vmatpush.bf16.msra.mxu1 %v5988_v3  ;;  %v7312_v33 = vld [vmem:[%s11381_s4 + $0x1b4] sm:$0xf0]  ;;  %v7331_v51 = vld [vmem:[%s11381_s4 + $0x24c] sm:$0xf0]  ;;  %v5908_v58 = vor.u32 %v7329_v52, %v5905_v57  ;;  %v7309_v57 = vld [vmem:[%s11381_s4 + $0x1a4] sm:$0xf] }
  0xed   :  { %v1429_v60 = vpop.f32.mrf.mxu2  ;;  %v5832_v41 = vor.u32 %v7312_v33, %v5831_v29  ;;  %v5904_v55 = vor.u32 %v7331_v51, %v5903_v37  ;;  %v274_v29 = vperm.slane %v8961_v53, 2  ;;  %v5999_v33 = vld [vmem:[%s11381_s4 + $0x300] sm:$0xf]  ;;  %v5945_v37 = vld [vmem:[%s11381_s4 + $0x298] sm:$0xf0] }
  0xee   :  { %v1405_v10 = vpop.f32.mrf.mxu1  ;;  %v1430_v61 = vadd.f32 %v1429_v60, %v1417_v59  ;;  %v5783_v60 = vld [vmem:[%s11381_s4 + $0x148] sm:$0xf] }
  0xef   :  { %v5784_v7 = vor.u32 %v7300_v62, %v5783_v60  ;;  %v7296_v10 = vld [vmem:[%s11381_s4 + $0x134] sm:$0xf0]  ;;  %v5929_v60 = vld [vmem:[%s11381_s4 + $0x278] sm:$0xf0] }
  0xf0   :  { %2303 = vmatpush.bf16.msrb.mxu3 %v5700_v39  ;;  %2328 = vmatpush.bf16.msra.mxu1 %v5972_v13  ;;  %v5936_v39 = vor.u32 %v7339_v35, %v5935_v34  ;;  %v5768_v16 = vor.u32 %v7296_v10, %v5767_v9  ;;  %v7355_v34 = vld [vmem:[%s11381_s4 + $0x30c] sm:$0xf0]  ;;  %v7353_v35 = vld [vmem:[%s11381_s4 + $0x304] sm:$0xf]  ;;  %v7356_v9 = vld [vmem:[%s11381_s4 + $0x314] sm:$0xf0] }
  0xf1   :  { %v6000_v54 = vor.u32 %v7355_v34, %v5999_v33  ;;  %v7322_v33 = vld [vmem:[%s11381_s4 + $0x20c] sm:$0xf]  ;;  %v5881_v34 = vld [vmem:[%s11381_s4 + $0x218] sm:$0xf0] }
  0xf2   :  { %v1418_v18 = vpop.f32.mrf.mxu3  ;;  %2278 = vmatpush.bf16.msrb.mxu2 %v5936_v39 }
  0xf3   :  { %v1442_v17 = vpop.f32.mrf.mxu0  ;;  %v5751_v18 = vld [vmem:[%s11381_s4 + $0x108] sm:$0xf]  ;;  %2295 = vmatpush.bf16.msra.mxu0 %v6000_v54 }
  0xf4   :  { %2304 = vmatpush.bf16.msrb.mxu3 %v5684_v42  ;;  %v1443_v22 = vadd.f32 %v1442_v17, %v1430_v61  ;;  %2329 = vmatpush.bf16.msra.mxu1 %v5956_v26  ;;  %v5815_v42 = vld [vmem:[%s11381_s4 + $0x188] sm:$0xf]  ;;  %v7321_v61 = vld [vmem:[%s11381_s4 + $0x204] sm:$0xf]  ;;  %v5752_v24 = vor.u32 %v7292_v8, %v5751_v18  ;;  %v7346_v26 = vld [vmem:[%s11381_s4 + $0x2cc] sm:$0xf] }
  0xf5   :  { %v1431_v23 = vpop.f32.mrf.mxu2  ;;  %v5816_v49 = vor.u32 %v7308_v63, %v5815_v42  ;;  %v5857_v42 = vld [vmem:[%s11381_s4 + $0x1f0] sm:$0xf0]  ;;  %v7342_v63 = vld [vmem:[%s11381_s4 + $0x2ac] sm:$0xf]  ;;  %v5719_v54 = vld [vmem:[%s11381_s4 + $0xc8] sm:$0xf] }
  0xf6   :  { %v1629_v27 = vmax.f32 %v1443_v22, 0.0  ;;  %2279 = vmatpush.bf16.msrb.mxu2 %v5920_v46  ;;  %v5993_v22 = vld [vmem:[%s11381_s4 + $0x2f8] sm:$0xf0]  ;;  %v7313_v46 = vld [vmem:[%s11381_s4 + $0x1c4] sm:$0xf] }
  0xf7   :  { %v5996_v25 = vor.u32 %v7350_v21, %v5993_v22  ;;  %v5735_v21 = vld [vmem:[%s11381_s4 + $0xe8] sm:$0xf]  ;;  %v7288_v22 = vld [vmem:[%s11381_s4 + $0xf4] sm:$0xf0] }
  0xf8   :  { %2305 = vmatpush.bf16.msrb.mxu3 %v5668_v45  ;;  %v9227_v36 = vpack.c.bf16 %v1629_v27, %v1629_v27  ;;  %2330 = vmatpush.bf16.msra.mxu1 %v5940_v40  ;;  %v7333_v45 = vld [vmem:[%s11381_s4 + $0x264] sm:$0xf]  ;;  %v5977_v27 = vld [vmem:[%s11381_s4 + $0x2d8] sm:$0xf0]  ;;  %v6001_v40 = vld [vmem:[%s11381_s4 + $0x310] sm:$0xf0] }
  0xf9   :  { %v5924_v48 = vor.u32 %v7333_v45, %v5921_v47  ;;  %v5980_v19 = vor.u32 %v7346_v26, %v5977_v27  ;;  %v6004_v32 = vor.u32 %v7353_v35, %v6001_v40  ;;  %v5737_v27 = vld [vmem:[%s11381_s4 + $0xf8] sm:$0xf0] }
  0xfa   :  { %2270 = vmatmul.bf16.vlgmr.msrb.gmra.mxu1 %v9227_v36  ;;  %2280 = vmatpush.bf16.msrb.mxu2 %v5904_v55 }
  0xfb   :  { %v1444_v30 = vpop.f32.mrf.mxu0 }
  0xfc   :  { %2306 = vmatpush.bf16.msrb.mxu3 %v5652_v50  ;;  %v5799_v50 = vld [vmem:[%s11381_s4 + $0x168] sm:$0xf]  ;;  %2331 = vmatpush.bf16.msra.mxu1 %v5924_v48  ;;  %v5961_v30 = vld [vmem:[%s11381_s4 + $0x2b8] sm:$0xf0]  ;;  %v5841_v48 = vld [vmem:[%s11381_s4 + $0x1d0] sm:$0xf0] }
  0xfd   :  { %v5800_v59 = vor.u32 %v7304_v38, %v5799_v50  ;;  %v5964_v50 = vor.u32 %v7342_v63, %v5961_v30  ;;  %v7338_v38 = vld [vmem:[%s11381_s4 + $0x28c] sm:$0xf]  ;;  %v7284_v30 = vld [vmem:[%s11381_s4 + $0xd4] sm:$0xf0] }
  0xfe   :  { %v5948_v52 = vor.u32 %v7338_v38, %v5945_v37  ;;  %v7280_v37 = vld [vmem:[%s11381_s4 + $0xb4] sm:$0xf0] }
 0x100   :  { %2307 = vmatpush.bf16.msrb.mxu3 %v5636_v0  ;;  %2332 = vmatpush.bf16.msra.mxu1 %v5908_v58  ;;  %v5887_v0 = vld [vmem:[%s11381_s4 + $0x220] sm:$0xf]  ;;  %v5825_v58 = vld [vmem:[%s11381_s4 + $0x1b0] sm:$0xf0] }
 0x101   :  { %v5888_v4 = vor.u32 %v7327_v1, %v5887_v0  ;;  %v5828_v62 = vor.u32 %v7309_v57, %v5825_v58  ;;  %v7278_v57 = vld [vmem:[%s11381_s4 + $0xac] sm:$0xf]  ;;  %v5705_v58 = vld [vmem:[%s11381_s4 + $0xb8] sm:$0xf0] }
 0x103   :  { %2281 = vmatpush.bf16.msrb.mxu2 %v5888_v4  ;;  %v7305_v4 = vld [vmem:[%s11381_s4 + $0x184] sm:$0xf] }
 0x104   :  { %2308 = vmatpush.bf16.msrb.mxu3 %v5620_v56  ;;  %2333 = vmatpush.bf16.msra.mxu1 %v5892_v6  ;;  %v5872_v56 = vor.u32 %v7323_v12, %v5871_v11  ;;  %v5812_v6 = vor.u32 %v7305_v4, %v5809_v5  ;;  %v5689_v4 = vld [vmem:[%s11381_s4 + $0x98] sm:$0xf0] }
 0x106   :  { %v1455_v3 = vpop.f32.mrf.mxu1 }
 0x107   :  { %2309 = vmatmul.bf16.vlgmr.msrb.gmra.mxu3 %v9125_v31  ;;  %v9276_v43 = vpop.f32.mrf.mxu0  ;;  %2282 = vmatpush.bf16.msrb.mxu2 %v5872_v56  ;;  %v1456_v47 = vadd.f32 %v1455_v3, %v274_v29  ;;  %v7330_v3 = vld [vmem:[%s11381_s4 + $0x24c] sm:$0xf]  ;;  %v7301_v56 = vld [vmem:[%s11381_s4 + $0x164] sm:$0xf]  ;;  %v5777_v29 = vld [vmem:[%s11381_s4 + $0x150] sm:$0xf0] }
 0x108   :  { %2366 = vmatpush.bf16.msra.mxu3 %v5864_v14  ;;  %v5873_v14 = vld [vmem:[%s11381_s4 + $0x210] sm:$0xf0] }
 0x109   :  { %v5876_v15 = vor.u32 %v7321_v61, %v5873_v14  ;;  %v5793_v14 = vld [vmem:[%s11381_s4 + $0x170] sm:$0xf0] }
 0x10a   :  { %v1468_v13 = vpop.f32.mrf.mxu3  ;;  %v5796_v18 = vor.u32 %v7301_v56, %v5793_v14  ;;  %v7268_v56 = vld [vmem:[%s11381_s4 + $0x54] sm:$0xf0] }
 0x10b   :  { %2334 = vmatpush.bf16.msra.mxu1 %v5876_v15  ;;  %2347 = vmatpush.bf16.msra.mxu2 %v6004_v32  ;;  %v1469_v51 = vadd.f32 %v1468_v13, %v1456_v47  ;;  %v5761_v32 = vld [vmem:[%s11381_s4 + $0x130] sm:$0xf0]  ;;  %v5721_v47 = vld [vmem:[%s11381_s4 + $0xd8] sm:$0xf0] }
 0x10c   :  { %2367 = vmatpush.bf16.msra.mxu3 %v5848_v28 }
 0x10d   :  { %v1494_v20 = vpop.f32.mrf.mxu2  ;;  %v1482_v0 = vadd.f32 %v9276_v43, %v1469_v51  ;;  %v5913_v43 = vld [vmem:[%s11381_s4 + $0x258] sm:$0xf0] }
 0x10e   :  { %v1457_v23 = vpop.f32.mrf.mxu1  ;;  %v5916_v61 = vor.u32 %v7330_v3, %v5913_v43  ;;  %v7274_v3 = vld [vmem:[%s11381_s4 + $0x8c] sm:$0xf]  ;;  %v5671_v43 = vld [vmem:[%s11381_s4 + $0x68] sm:$0xf] }
 0x10f   :  { %v1483_v17 = vpop.f32.mrf.mxu0  ;;  %v1495_v10 = vadd.f32 %v1494_v20, %v1482_v0  ;;  %v7286_v23 = vld [vmem:[%s11381_s4 + $0xec] sm:$0xf]  ;;  %v7276_v0 = vld [vmem:[%s11381_s4 + $0x94] sm:$0xf0] }
 0x110   :  { %2368 = vmatpush.bf16.msra.mxu3 %v5832_v41  ;;  %v7317_v41 = vld [vmem:[%s11381_s4 + $0x1e4] sm:$0xf]  ;;  %v5897_v17 = vld [vmem:[%s11381_s4 + $0x238] sm:$0xf0]  ;;  %v5740_v40 = vor.u32 %v7286_v23, %v5737_v27 }
 0x111   :  { %v5860_v45 = vor.u32 %v7317_v41, %v5857_v42  ;;  %v5884_v42 = vor.u32 %v7322_v33, %v5881_v34  ;;  %v5641_v23 = vld [vmem:[%s11381_s4 + $0x38] sm:$0xf0]  ;;  %v5623_v33 = vld [vmem:[%s11381_s4 + $0x8] sm:$0xf]  ;;  %v7260_v34 = vld [vmem:[%s11381_s4 + $0x14] sm:$0xf0] }
 0x112   :  { %v1470_v28 = vpop.f32.mrf.mxu3 }
 0x113   :  { %2314 = vmatpush.bf16.msrb.mxu0 %v5860_v45  ;;  %v7297_v28 = vld [vmem:[%s11381_s4 + $0x144] sm:$0xf] }
 0x114   :  { %2369 = vmatpush.bf16.msra.mxu3 %v5816_v49  ;;  %v5844_v49 = vor.u32 %v7313_v46, %v5841_v48  ;;  %v5780_v35 = vor.u32 %v7297_v28, %v5777_v29  ;;  %v7282_v46 = vld [vmem:[%s11381_s4 + $0xcc] sm:$0xf] }
 0x115   :  { %v1496_v44 = vpop.f32.mrf.mxu2  ;;  %v5724_v51 = vor.u32 %v7282_v46, %v5721_v47  ;;  %v5991_v47 = vld [vmem:[%s11381_s4 + $0x2e8] sm:$0xf] }
 0x116   :  { %v7293_v44 = vld [vmem:[%s11381_s4 + $0x124] sm:$0xf] }
 0x117   :  { %v9336_v39 = vpop.f32.mrf.mxu0  ;;  %2315 = vmatpush.bf16.msrb.mxu0 %v5844_v49  ;;  %v5764_v48 = vor.u32 %v7293_v44, %v5761_v32  ;;  %v5720_v49 = vor.u32 %v7284_v30, %v5719_v54 }
 0x118   :  { %2370 = vmatpush.bf16.msra.mxu3 %v5800_v59  ;;  %v7334_v59 = vld [vmem:[%s11381_s4 + $0x26c] sm:$0xf] }
 0x119   :  { %v5932_v2 = vor.u32 %v7334_v59, %v5929_v60 }
 0x11b   :  { %2316 = vmatpush.bf16.msrb.mxu0 %v5828_v62  ;;  %v5687_v62 = vld [vmem:[%s11381_s4 + $0x88] sm:$0xf] }
 0x11c   :  { %2371 = vmatpush.bf16.msra.mxu3 %v5784_v7  ;;  %v6007_v7 = vld [vmem:[%s11381_s4 + $0x308] sm:$0xf]  ;;  %v5688_v5 = vor.u32 %v7276_v0, %v5687_v62 }
 0x11d   :  { %v6008_v11 = vor.u32 %v7356_v9, %v6007_v7  ;;  %v7270_v9 = vld [vmem:[%s11381_s4 + $0x6c] sm:$0xf] }
 0x11f   :  { %v1535_v55 = vpop.f32.mrf.mxu0  ;;  %2317 = vmatpush.bf16.msrb.mxu0 %v5812_v6  ;;  %2399 = vmatpush.bf16.msrb.mxu1 %v6008_v11  ;;  %v7272_v6 = vld [vmem:[%s11381_s4 + $0x74] sm:$0xf0] }
 0x120   :  { %2372 = vmatpush.bf16.msra.mxu3 %v5768_v16  ;;  %v7326_v16 = vld [vmem:[%s11381_s4 + $0x22c] sm:$0xf]  ;;  %v5745_v55 = vld [vmem:[%s11381_s4 + $0x110] sm:$0xf0] }
 0x123   :  { %2318 = vmatpush.bf16.msrb.mxu0 %v5796_v18 }
 0x124   :  { %2373 = vmatpush.bf16.msra.mxu3 %v5752_v24  ;;  %v1507_v1 = vpop.f32.mrf.mxu1 }
 0x125   :  { %v1508_v12 = vadd.f32 %v1507_v1, %v1495_v10  ;;  %v5708_v1 = vor.u32 %v7278_v57, %v5705_v58  ;;  %v5673_v10 = vld [vmem:[%s11381_s4 + $0x78] sm:$0xf0]  ;;  %v7348_v57 = vld [vmem:[%s11381_s4 + $0x2d4] sm:$0xf0]  ;;  %v7314_v58 = vld [vmem:[%s11381_s4 + $0x1cc] sm:$0xf] }
 0x126   :  { %v5676_v14 = vor.u32 %v7270_v9, %v5673_v10  ;;  %v5817_v9 = vld [vmem:[%s11381_s4 + $0x198] sm:$0xf0] }
 0x127   :  { %2374 = vmatmul.bf16.vlgmr.msra.gmra.mxu3 %v9227_v36  ;;  %2319 = vmatpush.bf16.msrb.mxu0 %v5780_v35 }
 0x128   :  { %2431 = vmatpush.bf16.msrb.mxu3 %v5996_v25  ;;  %v5900_v25 = vor.u32 %v7326_v16, %v5897_v17  ;;  %v7266_v16 = vld [vmem:[%s11381_s4 + $0x4c] sm:$0xf]  ;;  %v5657_v17 = vld [vmem:[%s11381_s4 + $0x58] sm:$0xf0] }
 0x12b   :  { %v9397_v13 = vpop.f32.mrf.mxu0  ;;  %2320 = vmatpush.bf16.msrb.mxu0 %v5764_v48  ;;  %v7352_v48 = vld [vmem:[%s11381_s4 + $0x2f4] sm:$0xf0] }
 0x12c   :  { %2432 = vmatpush.bf16.msrb.mxu3 %v5980_v19  ;;  %v1520_v15 = vpop.f32.mrf.mxu3  ;;  %v1509_v20 = vpop.f32.mrf.mxu1 }
 0x12d   :  { %v1521_v8 = vadd.f32 %v1520_v15, %v1508_v12  ;;  %v1546_v26 = vpop.f32.mrf.mxu2  ;;  %v5672_v12 = vor.u32 %v7272_v6, %v5671_v43  ;;  %v7264_v20 = vld [vmem:[%s11381_s4 + $0x34] sm:$0xf0]  ;;  %v5943_v6 = vld [vmem:[%s11381_s4 + $0x288] sm:$0xf] }
 0x12f   :  { %v1534_v24 = vadd.f32 %v9336_v39, %v1521_v8  ;;  %v5736_v39 = vor.u32 %v7288_v22, %v5735_v21  ;;  %v5639_v8 = vld [vmem:[%s11381_s4 + $0x28] sm:$0xf]  ;;  %v7262_v22 = vld [vmem:[%s11381_s4 + $0x2c] sm:$0xf] }
 0x130   :  { %2433 = vmatpush.bf16.msrb.mxu3 %v5964_v50  ;;  %v5703_v50 = vld [vmem:[%s11381_s4 + $0xa8] sm:$0xf]  ;;  %v5640_v28 = vor.u32 %v7264_v20, %v5639_v8  ;;  %v5644_v35 = vor.u32 %v7262_v22, %v5641_v23  ;;  %v7332_v8 = vld [vmem:[%s11381_s4 + $0x254] sm:$0xf0]  ;;  %v7298_v20 = vld [vmem:[%s11381_s4 + $0x14c] sm:$0xf] }
 0x131   :  { %v1630_v19 = vmax.f32 %v1534_v24, 0.0  ;;  %v5704_v60 = vor.u32 %v7280_v37, %v5703_v50  ;;  %v5865_v50 = vld [vmem:[%s11381_s4 + $0x1f8] sm:$0xf0]  ;;  %v5992_v37 = vor.u32 %v7352_v48, %v5991_v47  ;;  %v5895_v23 = vld [vmem:[%s11381_s4 + $0x228] sm:$0xf] }
 0x133   :  { %v9439_v41 = vpack.c.bf16 %v1630_v19, %v1630_v19  ;;  %v1561_v63 = vpop.f32.mrf.mxu0  ;;  %v7258_v19 = vld [vmem:[%s11381_s4 + $0xc] sm:$0xf] }
 0x134   :  { %2434 = vmatpush.bf16.msrb.mxu3 %v5948_v52  ;;  %v1522_v45 = vpop.f32.mrf.mxu3  ;;  %v7289_v52 = vld [vmem:[%s11381_s4 + $0x104] sm:$0xf] }
 0x135   :  { %2283 = vmatmul.bf16.vlgmr.msrb.gmra.mxu2 %v9439_v41  ;;  %2335 = vmatmul.bf16.vlgmr.msra.gmra.mxu1 %v9439_v41  ;;  %v1548_v38 = vpop.f32.mrf.mxu2  ;;  %v5748_v59 = vor.u32 %v7289_v52, %v5745_v55  ;;  %v5975_v55 = vld [vmem:[%s11381_s4 + $0x2c8] sm:$0xf] }
 0x136   :  { %2353 = vmatpush.bf16.msrb.mxu2 %v5736_v39  ;;  %2405 = vmatpush.bf16.msra.mxu1 %v5740_v40  ;;  %v5625_v39 = vld [vmem:[%s11381_s4 + $0x18] sm:$0xf0]  ;;  %v5624_v40 = vor.u32 %v7260_v34, %v5623_v33  ;;  %v5976_v62 = vor.u32 %v7348_v57, %v5975_v55  ;;  %v7324_v33 = vld [vmem:[%s11381_s4 + $0x214] sm:$0xf0]  ;;  %v7290_v34 = vld [vmem:[%s11381_s4 + $0x10c] sm:$0xf] }
 0x137   :  { %2321 = vmatpush.bf16.msrb.mxu0 %v5748_v59  ;;  %v5849_v59 = vld [vmem:[%s11381_s4 + $0x1d8] sm:$0xf0]  ;;  %v6051_v57 = vld [vmem:[%s11383_s6 + $0x40] sm:$0xf] }
 0x138   :  { %2435 = vmatpush.bf16.msrb.mxu3 %v5932_v2  ;;  %v275_v2 = vperm.slane %v8961_v53, 3  ;;  %v5692_v53 = vor.u32 %v7274_v3, %v5689_v4  ;;  %v5852_v0 = vor.u32 %v7314_v58, %v5849_v59  ;;  %v7310_v3 = vld [vmem:[%s11381_s4 + $0x1ac] sm:$0xf]  ;;  %v5833_v4 = vld [vmem:[%s11381_s4 + $0x1b8] sm:$0xf0] }
 0x139   :  { %v5836_v43 = vor.u32 %v7310_v3, %v5833_v4  ;;  %v7366_v58 = vld [vmem:[%s11383_s6 + $0x44] sm:$0xf0]  ;;  %v7388_v3 = vld [vmem:[%s11383_s6 + $0xf4] sm:$0xf0] }
 0x13a   :  { %2354 = vmatpush.bf16.msrb.mxu2 %v5720_v49  ;;  %2406 = vmatpush.bf16.msra.mxu1 %v5724_v51  ;;  %v1547_v7 = vadd.f32 %v1546_v26, %v275_v2  ;;  %v7318_v49 = vld [vmem:[%s11381_s4 + $0x1ec] sm:$0xf]  ;;  %v7344_v2 = vld [vmem:[%s11381_s4 + $0x2b4] sm:$0xf0] }
 0x13b   :  { %v5868_v52 = vor.u32 %v7318_v49, %v5865_v50  ;;  %v6075_v49 = vld [vmem:[%s11383_s6 + $0x70] sm:$0xf]  ;;  %v6067_v50 = vld [vmem:[%s11383_s6 + $0x60] sm:$0xf] }
 0x13c   :  { %2436 = vmatpush.bf16.msrb.mxu3 %v5916_v61  ;;  %v5655_v61 = vld [vmem:[%s11381_s4 + $0x48] sm:$0xf]  ;;  %v1560_v15 = vadd.f32 %v9397_v13, %v1547_v7  ;;  %v5660_v13 = vor.u32 %v7266_v16, %v5657_v17  ;;  %v7306_v7 = vld [vmem:[%s11381_s4 + $0x18c] sm:$0xf] }
 0x13d   :  { %v5656_v18 = vor.u32 %v7268_v56, %v5655_v61  ;;  %v7336_v61 = vld [vmem:[%s11381_s4 + $0x274] sm:$0xf0]  ;;  %v7302_v56 = vld [vmem:[%s11381_s4 + $0x16c] sm:$0xf] }
 0x13e   :  { %2355 = vmatpush.bf16.msrb.mxu2 %v5704_v60  ;;  %2407 = vmatpush.bf16.msra.mxu1 %v5708_v1  ;;  %v5959_v1 = vld [vmem:[%s11381_s4 + $0x2a8] sm:$0xf] }
 0x140   :  { %2437 = vmatpush.bf16.msrb.mxu3 %v5900_v25 }
 0x142   :  { %2356 = vmatpush.bf16.msrb.mxu2 %v5688_v5  ;;  %2408 = vmatpush.bf16.msra.mxu1 %v5692_v53  ;;  %v5960_v5 = vor.u32 %v7344_v2, %v5959_v1  ;;  %v7340_v53 = vld [vmem:[%s11381_s4 + $0x294] sm:$0xf0]  ;;  %v6139_v1 = vld [vmem:[%s11383_s6 + $0xf0] sm:$0xf] }
 0x143   :  { %v5944_v10 = vor.u32 %v7340_v53, %v5943_v6  ;;  %v6140_v4 = vor.u32 %v7388_v3, %v6139_v1  ;;  %v6131_v6 = vld [vmem:[%s11383_s6 + $0xe0] sm:$0xf]  ;;  %v7402_v3 = vld [vmem:[%s11383_s6 + $0x164] sm:$0xf0] }
 0x144   :  { %2438 = vmatpush.bf16.msrb.mxu3 %v5884_v42  ;;  %v1572_v11 = vpop.f32.mrf.mxu1  ;;  %v5628_v42 = vor.u32 %v7258_v19, %v5625_v39  ;;  %v7354_v19 = vld [vmem:[%s11381_s4 + $0x30c] sm:$0xf]  ;;  %v6009_v39 = vld [vmem:[%s11381_s4 + $0x318] sm:$0xf0] }
 0x145   :  { %v1573_v21 = vadd.f32 %v1572_v11, %v1560_v15  ;;  %v5820_v11 = vor.u32 %v7306_v7, %v5817_v9  ;;  %v7386_v7 = vld [vmem:[%s11383_s6 + $0xe4] sm:$0xf0] }
 0x146   :  { %2357 = vmatpush.bf16.msrb.mxu2 %v5672_v12  ;;  %2409 = vmatpush.bf16.msra.mxu1 %v5676_v14  ;;  %v5927_v12 = vld [vmem:[%s11381_s4 + $0x268] sm:$0xf]  ;;  %v5801_v14 = vld [vmem:[%s11381_s4 + $0x178] sm:$0xf0]  ;;  %v6132_v9 = vor.u32 %v7386_v7, %v6131_v6  ;;  %v7401_v6 = vld [vmem:[%s11383_s6 + $0x164] sm:$0xf] }
 0x147   :  { %2439 = vmatmul.bf16.vlgmr.msrb.gmra.mxu3 %v9439_v41  ;;  %v5928_v16 = vor.u32 %v7336_v61, %v5927_v12  ;;  %v5804_v17 = vor.u32 %v7302_v56, %v5801_v14  ;;  %v6123_v61 = vld [vmem:[%s11383_s6 + $0xd0] sm:$0xf]  ;;  %v7384_v56 = vld [vmem:[%s11383_s6 + $0xd4] sm:$0xf0] }
 0x14a   :  { %v1611_v25 = vpop.f32.mrf.mxu0  ;;  %2358 = vmatpush.bf16.msrb.mxu2 %v5656_v18  ;;  %2410 = vmatpush.bf16.msra.mxu1 %v5660_v13  ;;  %v5911_v18 = vld [vmem:[%s11381_s4 + $0x248] sm:$0xf]  ;;  %v5785_v13 = vld [vmem:[%s11381_s4 + $0x158] sm:$0xf0] }
 0x14b   :  { %v5788_v22 = vor.u32 %v7298_v20, %v5785_v13  ;;  %v7387_v20 = vld [vmem:[%s11383_s6 + $0xf4] sm:$0xf]  ;;  %v6141_v13 = vld [vmem:[%s11383_s6 + $0xf8] sm:$0xf0] }
 0x14c   :  { %v1585_v24 = vpop.f32.mrf.mxu3  ;;  %v1574_v27 = vpop.f32.mrf.mxu1 }
 0x14d   :  { %v1586_v26 = vadd.f32 %v1585_v24, %v1573_v21  ;;  %v1598_v29 = vpop.f32.mrf.mxu2  ;;  %v5912_v21 = vor.u32 %v7332_v8, %v5911_v18  ;;  %v7328_v24 = vld [vmem:[%s11381_s4 + $0x234] sm:$0xf0]  ;;  %v6115_v18 = vld [vmem:[%s11383_s6 + $0xc0] sm:$0xf]  ;;  %v7382_v8 = vld [vmem:[%s11383_s6 + $0xc4] sm:$0xf0] }
 0x14e   :  { %2359 = vmatpush.bf16.msrb.mxu2 %v5640_v28  ;;  %2411 = vmatpush.bf16.msra.mxu1 %v5644_v35  ;;  %v5896_v27 = vor.u32 %v7328_v24, %v5895_v23  ;;  %v5753_v35 = vld [vmem:[%s11381_s4 + $0x118] sm:$0xf0]  ;;  %v6144_v23 = vor.u32 %v7387_v20, %v6141_v13  ;;  %v6107_v24 = vld [vmem:[%s11383_s6 + $0xb0] sm:$0xf]  ;;  %v7398_v20 = vld [vmem:[%s11383_s6 + $0x144] sm:$0xf0] }
 0x14f   :  { %v1599_v54 = vadd.f32 %v1598_v29, %v1586_v26  ;;  %v5879_v29 = vld [vmem:[%s11381_s4 + $0x208] sm:$0xf] }
 0x151   :  { %v1612_v44 = vadd.f32 %v1611_v25, %v1599_v54  ;;  %v7294_v25 = vld [vmem:[%s11381_s4 + $0x12c] sm:$0xf]  ;;  %v5880_v54 = vor.u32 %v7324_v33, %v5879_v29  ;;  %v6099_v33 = vld [vmem:[%s11383_s6 + $0xa0] sm:$0xf] }
 0x152   :  { %v1613_v30 = vpop.f32.mrf.mxu0  ;;  %2360 = vmatpush.bf16.msrb.mxu2 %v5624_v40  ;;  %2412 = vmatpush.bf16.msra.mxu1 %v5628_v42  ;;  %v5756_v40 = vor.u32 %v7290_v34, %v5753_v35  ;;  %v6012_v42 = vor.u32 %v7354_v19, %v6009_v39  ;;  %v7378_v34 = vld [vmem:[%s11383_s6 + $0xa4] sm:$0xf0]  ;;  %v7383_v39 = vld [vmem:[%s11383_s6 + $0xd4] sm:$0xf] }
 0x153   :  { %v6100_v19 = vor.u32 %v7378_v34, %v6099_v33  ;;  %v7395_v33 = vld [vmem:[%s11383_s6 + $0x134] sm:$0xf]  ;;  %v6173_v34 = vld [vmem:[%s11383_s6 + $0x138] sm:$0xf0] }
 0x154   :  { %v1587_v63 = vpop.f32.mrf.mxu3  ;;  %v1624_v32 = vpop.f32.mrf.mxu1 }
 0x155   :  { %v1625_v45 = vadd.f32 %v1624_v32, %v1612_v44  ;;  %v1600_v46 = vpop.f32.mrf.mxu2  ;;  %v9655_v63 = vld [vmem:[%s11382_s5] sm:$0xf] }
 0x156   :  { %v1738_v30 = vperm.slane %v9655_v63, 0 }
 0x157   :  { %v1631_v38 = vmax.f32 %v1625_v45, 0.0 }
 0x159   :  { %v9551_v51 = vpack.c.bf16 %v1631_v38, %v1631_v38  ;;  %v7370_v38 = vld [vmem:[%s11383_s6 + $0x64] sm:$0xf0] }
 0x15b   :  { %6013 = vmatmul.msk.bf16.vlgmr.msra.gmra.mxu0 %vm1260_vm0, %v9551_v51  ;;  %6014 = vmatmul.msk.bf16.vlgmr.msra.gmra.mxu2 %vm1260_vm0, %v9551_v51 }
 0x15c   :  { %6015 = vmatmul.msk.bf16.vlgmr.msrb.gmra.mxu1 %vm1260_vm0, %v9551_v51  ;;  %v1626_v60 = vpop.f32.mrf.mxu1  ;;  %2379 = vmatpush.bf16.msra.mxu0 %v5992_v37  ;;  %v6068_v37 = vor.u32 %v7370_v38, %v6067_v50  ;;  %v7404_v50 = vld [vmem:[%s11383_s6 + $0x174] sm:$0xf0] }
 0x15d   :  { %2418 = vmatpush.bf16.msra.mxu2 %v5868_v52  ;;  %v7368_v52 = vld [vmem:[%s11383_s6 + $0x54] sm:$0xf0]  ;;  %v6052_v60 = vor.u32 %v7366_v58, %v6051_v57  ;;  %2787 = vmatpush.bf16.msrb.mxu1 %v6140_v4  ;;  %v6109_v58 = vld [vmem:[%s11383_s6 + $0xb8] sm:$0xf0] }
 0x160   :  { %2380 = vmatpush.bf16.msra.mxu0 %v5976_v62  ;;  %v6043_v62 = vld [vmem:[%s11383_s6 + $0x30] sm:$0xf] }
 0x161   :  { %2419 = vmatpush.bf16.msra.mxu2 %v5852_v0  ;;  %v7364_v0 = vld [vmem:[%s11383_s6 + $0x34] sm:$0xf0]  ;;  %2788 = vmatpush.bf16.msrb.mxu1 %v6132_v9  ;;  %v6197_v9 = vld [vmem:[%s11383_s6 + $0x168] sm:$0xf0] }
 0x162   :  { %v6044_v2 = vor.u32 %v7364_v0, %v6043_v62  ;;  %v6205_v62 = vld [vmem:[%s11383_s6 + $0x178] sm:$0xf0] }
 0x164   :  { %2381 = vmatpush.bf16.msra.mxu0 %v5960_v5  ;;  %v6035_v5 = vld [vmem:[%s11383_s6 + $0x20] sm:$0xf] }
 0x165   :  { %2420 = vmatpush.bf16.msra.mxu2 %v5836_v43  ;;  %v7362_v43 = vld [vmem:[%s11383_s6 + $0x24] sm:$0xf0] }
 0x166   :  { %v6036_v53 = vor.u32 %v7362_v43, %v6035_v5  ;;  %v7377_v5 = vld [vmem:[%s11383_s6 + $0xa4] sm:$0xf]  ;;  %v6101_v43 = vld [vmem:[%s11383_s6 + $0xa8] sm:$0xf0] }
 0x167   :  { %v6104_v7 = vor.u32 %v7377_v5, %v6101_v43  ;;  %v6149_v43 = vld [vmem:[%s11383_s6 + $0x108] sm:$0xf0] }
 0x168   :  { %2382 = vmatpush.bf16.msra.mxu0 %v5944_v10  ;;  %v6027_v10 = vld [vmem:[%s11383_s6 + $0x10] sm:$0xf] }
 0x169   :  { %2421 = vmatpush.bf16.msra.mxu2 %v5820_v11  ;;  %v7360_v11 = vld [vmem:[%s11383_s6 + $0x14] sm:$0xf0] }
 0x16a   :  { %v2258_v15 = vpop.f32.mrf.mxu3  ;;  %v6028_v14 = vor.u32 %v7360_v11, %v6027_v10  ;;  %v6200_v10 = vor.u32 %v7401_v6, %v6197_v9  ;;  %v6187_v11 = vld [vmem:[%s11383_s6 + $0x150] sm:$0xf]  ;;  %v7369_v9 = vld [vmem:[%s11383_s6 + $0x64] sm:$0xf] }
 0x16b   :  { %2322 = vmatmul.bf16.vlgmr.msrb.gmra.mxu0 %v9227_v36  ;;  %2361 = vmatmul.bf16.vlgmr.msrb.gmra.mxu2 %v9125_v31  ;;  %v2259_v44 = vadd.f32 %v2258_v15, %v1738_v30  ;;  %v6124_v15 = vor.u32 %v7384_v56, %v6123_v61  ;;  %v6091_v30 = vld [vmem:[%s11383_s6 + $0x90] sm:$0xf]  ;;  %v7375_v56 = vld [vmem:[%s11383_s6 + $0x94] sm:$0xf] }
 0x16c   :  { %2413 = vmatmul.bf16.vlgmr.msra.gmra.mxu1 %v9125_v31  ;;  %2383 = vmatpush.bf16.msra.mxu0 %v5928_v16  ;;  %v5769_v31 = vld [vmem:[%s11381_s4 + $0x138] sm:$0xf0]  ;;  %v6019_v16 = vld [vmem:[%s11383_s6] sm:$0xf] }
 0x16d   :  { %2422 = vmatpush.bf16.msra.mxu2 %v5804_v17  ;;  %v5772_v28 = vor.u32 %v7294_v25, %v5769_v31  ;;  %v7358_v17 = vld [vmem:[%s11383_s6 + $0x4] sm:$0xf0]  ;;  %2789 = vmatpush.bf16.msrb.mxu1 %v6124_v15  ;;  %v7380_v25 = vld [vmem:[%s11383_s6 + $0xb4] sm:$0xf0]  ;;  %v7399_v15 = vld [vmem:[%s11383_s6 + $0x154] sm:$0xf] }
 0x170   :  { %2384 = vmatpush.bf16.msra.mxu0 %v5912_v21  ;;  %v6020_v21 = vor.u32 %v7358_v17, %v6019_v16  ;;  %v6189_v17 = vld [vmem:[%s11383_s6 + $0x158] sm:$0xf0] }
 0x171   :  { %2423 = vmatpush.bf16.msra.mxu2 %v5788_v22  ;;  %v6116_v22 = vor.u32 %v7382_v8, %v6115_v18  ;;  %v6192_v18 = vor.u32 %v7399_v15, %v6189_v17  ;;  %v6179_v8 = vld [vmem:[%s11383_s6 + $0x140] sm:$0xf] }
 0x172   :  { %v2260_v26 = vpop.f32.mrf.mxu3  ;;  %v6180_v13 = vor.u32 %v7398_v20, %v6179_v8  ;;  %v7365_v20 = vld [vmem:[%s11383_s6 + $0x44] sm:$0xf] }
 0x173   :  { %2790 = vmatpush.bf16.msrb.mxu1 %v6116_v22  ;;  %v6108_v26 = vor.u32 %v7380_v25, %v6107_v24  ;;  %v6085_v22 = vld [vmem:[%s11383_s6 + $0x88] sm:$0xf0]  ;;  %v7397_v24 = vld [vmem:[%s11383_s6 + $0x144] sm:$0xf] }
 0x174   :  { %2385 = vmatpush.bf16.msra.mxu0 %v5896_v27  ;;  %v7385_v27 = vld [vmem:[%s11383_s6 + $0xe4] sm:$0xf]  ;;  %v6181_v25 = vld [vmem:[%s11383_s6 + $0x148] sm:$0xf0] }
 0x175   :  { %2424 = vmatpush.bf16.msra.mxu2 %v5772_v28  ;;  %v6133_v28 = vld [vmem:[%s11383_s6 + $0xe8] sm:$0xf0] }
 0x176   :  { %v6136_v29 = vor.u32 %v7385_v27, %v6133_v28  ;;  %v6171_v27 = vld [vmem:[%s11383_s6 + $0x130] sm:$0xf]  ;;  %v7396_v28 = vld [vmem:[%s11383_s6 + $0x134] sm:$0xf0] }
 0x177   :  { %v2271_v32 = vpop.f32.mrf.mxu1  ;;  %2791 = vmatpush.bf16.msrb.mxu1 %v6108_v26  ;;  %v6184_v26 = vor.u32 %v7397_v24, %v6181_v25 }
 0x178   :  { %2386 = vmatpush.bf16.msra.mxu0 %v5880_v54  ;;  %v9660_v45 = vadd.f32 %v2271_v32, %v2259_v44  ;;  %v6125_v54 = vld [vmem:[%s11383_s6 + $0xd8] sm:$0xf0]  ;;  %v7376_v44 = vld [vmem:[%s11383_s6 + $0x94] sm:$0xf0] }
 0x179   :  { %2425 = vmatpush.bf16.msra.mxu2 %v5756_v40  ;;  %v6128_v40 = vor.u32 %v7383_v39, %v6125_v54  ;;  %v6092_v32 = vor.u32 %v7376_v44, %v6091_v30  ;;  %v6163_v39 = vld [vmem:[%s11383_s6 + $0x120] sm:$0xf]  ;;  %v7394_v54 = vld [vmem:[%s11383_s6 + $0x124] sm:$0xf0]  ;;  %v6165_v30 = vld [vmem:[%s11383_s6 + $0x128] sm:$0xf0] }
 0x17b   :  { %2387 = vmatmul.bf16.vlgmr.msra.gmra.mxu0 %v9439_v41  ;;  %v7372_v41 = vld [vmem:[%s11383_s6 + $0x74] sm:$0xf0]  ;;  %2792 = vmatpush.bf16.msrb.mxu1 %v6100_v19  ;;  %v6176_v19 = vor.u32 %v7395_v33, %v6173_v34 }
 0x17c   :  { %2451 = vmatpush.bf16.msrb.mxu0 %v6012_v42  ;;  %2426 = vmatmul.bf16.vlgmr.msra.gmra.mxu2 %v9227_v36  ;;  %v6076_v36 = vor.u32 %v7372_v41, %v6075_v49 }
 0x17f   :  { %v2273_v47 = vpop.f32.mrf.mxu1  ;;  %2793 = vmatpush.bf16.msrb.mxu1 %v6092_v32 }
 0x180   :  { %2774 = vmatpush.bf16.msra.mxu0 %v6076_v36  ;;  %v7381_v47 = vld [vmem:[%s11383_s6 + $0xc4] sm:$0xf]  ;;  %v6203_v36 = vld [vmem:[%s11383_s6 + $0x170] sm:$0xf] }
 0x181   :  { %v6204_v38 = vor.u32 %v7404_v50, %v6203_v36 }
 0x183   :  { %2800 = vmatpush.bf16.msrb.mxu2 %v6204_v38 }
 0x184   :  { %2775 = vmatpush.bf16.msra.mxu0 %v6068_v37  ;;  %v6083_v37 = vld [vmem:[%s11383_s6 + $0x80] sm:$0xf] }
 0x18a   :  { %v9662_v46 = vpop.f32.mrf.mxu3 }
 0x18b   :  { %6016 = vmatmul.msk.bf16.vlgmr.msrb.gmra.mxu0 %vm1260_vm0, %v9551_v51  ;;  %v6059_v51 = vld [vmem:[%s11383_s6 + $0x50] sm:$0xf] }
 0x18c   :  { %v6060_v55 = vor.u32 %v7368_v52, %v6059_v51  ;;  %v7374_v51 = vld [vmem:[%s11383_s6 + $0x84] sm:$0xf0]  ;;  %v7379_v52 = vld [vmem:[%s11383_s6 + $0xb4] sm:$0xf] }
 0x18d   :  { %v6084_v57 = vor.u32 %v7374_v51, %v6083_v37  ;;  %v6112_v0 = vor.u32 %v7379_v52, %v6109_v58  ;;  %v6147_v52 = vld [vmem:[%s11383_s6 + $0x100] sm:$0xf] }
 0x18e   :  { %2776 = vmatpush.bf16.msra.mxu0 %v6060_v55 }
 0x18f   :  { %2794 = vmatpush.bf16.msrb.mxu1 %v6084_v57 }
 0x192   :  { %v2312_v48 = vpop.f32.mrf.mxu3  ;;  %2777 = vmatpush.bf16.msra.mxu0 %v6052_v60  ;;  %v7403_v60 = vld [vmem:[%s11383_s6 + $0x174] sm:$0xf] }
 0x193   :  { %v6117_v48 = vld [vmem:[%s11383_s6 + $0xc8] sm:$0xf0]  ;;  %v6208_v1 = vor.u32 %v7403_v60, %v6205_v62  ;;  %v6211_v60 = vld [vmem:[%s11383_s6 + $0x180] sm:$0xf]  ;;  %v7406_v62 = vld [vmem:[%s11383_s6 + $0x184] sm:$0xf0] }
 0x194   :  { %v6120_v41 = vor.u32 %v7381_v47, %v6117_v48  ;;  %v6155_v48 = vld [vmem:[%s11383_s6 + $0x110] sm:$0xf] }
 0x195   :  { %2852 = vmatpush.bf16.msra.mxu1 %v6208_v1  ;;  %v6212_v1 = vor.u32 %v7406_v62, %v6211_v60 }
 0x196   :  { %2778 = vmatpush.bf16.msra.mxu0 %v6044_v2  ;;  %v6195_v2 = vld [vmem:[%s11383_s6 + $0x160] sm:$0xf] }
 0x197   :  { %v6196_v4 = vor.u32 %v7402_v3, %v6195_v2  ;;  %v7371_v2 = vld [vmem:[%s11383_s6 + $0x74] sm:$0xf]  ;;  %v6077_v3 = vld [vmem:[%s11383_s6 + $0x78] sm:$0xf0]  ;;  %2820 = vmatpush.bf16.msra.mxu3 %v6212_v1 }
 0x198   :  { %v6080_v5 = vor.u32 %v7371_v2, %v6077_v3 }
 0x199   :  { %2801 = vmatpush.bf16.msrb.mxu2 %v6196_v4  ;;  %2853 = vmatpush.bf16.msra.mxu1 %v6200_v10  ;;  %v7389_v4 = vld [vmem:[%s11383_s6 + $0x104] sm:$0xf]  ;;  %v6069_v10 = vld [vmem:[%s11383_s6 + $0x68] sm:$0xf0] }
 0x19a   :  { %2779 = vmatpush.bf16.msra.mxu0 %v6036_v53 }
 0x19b   :  { %2826 = vmatpush.bf16.msrb.mxu3 %v6080_v5 }
 0x19d   :  { %2854 = vmatpush.bf16.msra.mxu1 %v6192_v18 }
 0x19e   :  { %2780 = vmatpush.bf16.msra.mxu0 %v6028_v14  ;;  %v6093_v14 = vld [vmem:[%s11383_s6 + $0x98] sm:$0xf0] }
 0x19f   :  { %v6096_v16 = vor.u32 %v7375_v56, %v6093_v14  ;;  %v7367_v56 = vld [vmem:[%s11383_s6 + $0x54] sm:$0xf]  ;;  %v6061_v14 = vld [vmem:[%s11383_s6 + $0x58] sm:$0xf0] }
 0x1a1   :  { %2855 = vmatpush.bf16.msra.mxu1 %v6184_v26 }
 0x1a2   :  { %2781 = vmatpush.bf16.msra.mxu0 %v6020_v21  ;;  %v7373_v21 = vld [vmem:[%s11383_s6 + $0x84] sm:$0xf] }
 0x1a5   :  { %2856 = vmatpush.bf16.msra.mxu1 %v6176_v19 }
 0x1a6   :  { %2839 = vmatpush.bf16.msrb.mxu0 %v6144_v23  ;;  %v6088_v23 = vor.u32 %v7373_v21, %v6085_v22 }
 0x1aa   :  { %v9690_v59 = vpop.f32.mrf.mxu3  ;;  %2840 = vmatpush.bf16.msrb.mxu0 %v6136_v29  ;;  %v6172_v29 = vor.u32 %v7396_v28, %v6171_v27  ;;  %v7363_v27 = vld [vmem:[%s11383_s6 + $0x34] sm:$0xf] }
 0x1ae   :  { %2841 = vmatpush.bf16.msrb.mxu0 %v6128_v40  ;;  %v6164_v40 = vor.u32 %v7394_v54, %v6163_v39  ;;  %v7361_v54 = vld [vmem:[%s11383_s6 + $0x24] sm:$0xf] }
 0x1b2   :  { %v2377_v12 = vpop.f32.mrf.mxu3  ;;  %v9752_v31 = vpop.f32.mrf.mxu1  ;;  %2842 = vmatpush.bf16.msrb.mxu0 %v6120_v41  ;;  %v7392_v41 = vld [vmem:[%s11383_s6 + $0x114] sm:$0xf0] }
 0x1b3   :  { %v7400_v12 = vld [vmem:[%s11383_s6 + $0x154] sm:$0xf0]  ;;  %v6156_v38 = vor.u32 %v7392_v41, %v6155_v48  ;;  %v7357_v41 = vld [vmem:[%s11383_s6 + $0x4] sm:$0xf] }
 0x1b4   :  { %v6188_v61 = vor.u32 %v7400_v12, %v6187_v11  ;;  %v1739_v11 = vperm.slane %v9655_v63, 1  ;;  %v6072_v12 = vor.u32 %v7369_v9, %v6069_v10  ;;  %v6333_v10 = vld [vmem:[%s11385_s8 + $0xe0] sm:$0xf] }
 0x1b6   :  { %2843 = vmatpush.bf16.msrb.mxu0 %v6112_v0  ;;  %2802 = vmatpush.bf16.msrb.mxu2 %v6188_v61  ;;  %v2311_v15 = vadd.f32 %v9662_v46, %v1739_v11  ;;  %v7405_v46 = vld [vmem:[%s11383_s6 + $0x184] sm:$0xf]  ;;  %v7437_v11 = vld [vmem:[%s11385_s8 + $0xec] sm:$0xf0] }
 0x1b7   :  { %2827 = vmatpush.bf16.msrb.mxu3 %v6072_v12  ;;  %v6334_v12 = vor.u32 %v7437_v11, %v6333_v10  ;;  %v7420_v10 = vld [vmem:[%s11385_s8 + $0x6c] sm:$0xf]  ;;  %v6279_v11 = vld [vmem:[%s11385_s8 + $0x78] sm:$0xf0] }
 0x1b8   :  { %v9766_v35 = vpop.f32.mrf.mxu2 }
 0x1b9   :  { %v2285_v44 = vadd.f32 %v9766_v35, %v9660_v45  ;;  %v7391_v45 = vld [vmem:[%s11383_s6 + $0x114] sm:$0xf]  ;;  %v6157_v35 = vld [vmem:[%s11383_s6 + $0x118] sm:$0xf0] }
 0x1ba   :  { %v2338_v42 = vpop.f32.mrf.mxu1  ;;  %2844 = vmatpush.bf16.msrb.mxu0 %v6104_v7  ;;  %2803 = vmatpush.bf16.msrb.mxu2 %v6180_v13  ;;  %v6160_v51 = vor.u32 %v7391_v45, %v6157_v35  ;;  %v6053_v13 = vld [vmem:[%s11383_s6 + $0x48] sm:$0xf0] }
 0x1bb   :  { %v7393_v42 = vld [vmem:[%s11383_s6 + $0x124] sm:$0xf]  ;;  %v6056_v22 = vor.u32 %v7365_v20, %v6053_v13  ;;  %v7433_v13 = vld [vmem:[%s11385_s8 + $0xcc] sm:$0xf0] }
 0x1bc   :  { %v6168_v32 = vor.u32 %v7393_v42, %v6165_v30  ;;  %v7359_v30 = vld [vmem:[%s11383_s6 + $0x14] sm:$0xf] }
 0x1be   :  { %2845 = vmatpush.bf16.msrb.mxu0 %v6096_v16  ;;  %2804 = vmatpush.bf16.msrb.mxu2 %v6172_v29  ;;  %v6064_v16 = vor.u32 %v7367_v56, %v6061_v14  ;;  %v1740_v29 = vperm.slane %v9655_v63, 2  ;;  %v6341_v56 = vld [vmem:[%s11385_s8 + $0xe8] sm:$0xf]  ;;  %v7438_v14 = vld [vmem:[%s11385_s8 + $0xf4] sm:$0xf0] }
 0x1bf   :  { %2857 = vmatpush.bf16.msra.mxu1 %v6168_v32 }
 0x1c0   :  { %v2286_v55 = vpop.f32.mrf.mxu2  ;;  %2828 = vmatpush.bf16.msrb.mxu3 %v6064_v16  ;;  %v6342_v16 = vor.u32 %v7438_v14, %v6341_v56  ;;  %v7415_v56 = vld [vmem:[%s11385_s8 + $0x44] sm:$0xf] }
 0x1c1   :  { %v7390_v55 = vld [vmem:[%s11383_s6 + $0x104] sm:$0xf0] }
 0x1c2   :  { %2846 = vmatpush.bf16.msrb.mxu0 %v6088_v23  ;;  %2805 = vmatpush.bf16.msrb.mxu2 %v6164_v40  ;;  %v6148_v58 = vor.u32 %v7390_v55, %v6147_v52  ;;  %v6213_v23 = vld [vmem:[%s11383_s6 + $0x188] sm:$0xf0]  ;;  %v1741_v52 = vperm.slane %v9655_v63, 3 }
 0x1c3   :  { %2858 = vmatpush.bf16.msra.mxu1 %v6160_v51  ;;  %v6216_v25 = vor.u32 %v7405_v46, %v6213_v23  ;;  %v6037_v40 = vld [vmem:[%s11383_s6 + $0x28] sm:$0xf0] }
 0x1c4   :  { %2829 = vmatpush.bf16.msrb.mxu3 %v6056_v22  ;;  %v6040_v42 = vor.u32 %v7361_v54, %v6037_v40  ;;  %v6319_v22 = vld [vmem:[%s11385_s8 + $0xd0] sm:$0xf0] }
 0x1c5   :  { %v6303_v40 = vld [vmem:[%s11385_s8 + $0xb0] sm:$0xf0] }
 0x1c6   :  { %2806 = vmatpush.bf16.msrb.mxu2 %v6156_v38 }
 0x1ca   :  { %v9786_v49 = vpop.f32.mrf.mxu3  ;;  %2807 = vmatpush.bf16.msrb.mxu2 %v6148_v58 }
 0x1ce   :  { %2872 = vmatpush.bf16.msra.mxu2 %v6216_v25  ;;  %v7434_v25 = vld [vmem:[%s11385_s8 + $0xd4] sm:$0xf0] }
 0x1d2   :  { %v2442_v53 = vpop.f32.mrf.mxu3 }
 0x1d3   :  { %v6152_v53 = vor.u32 %v7389_v4, %v6149_v43 }
 0x1d5   :  { %2859 = vmatpush.bf16.msra.mxu1 %v6152_v53 }
 0x1d8   :  { %v2297_v47 = vpop.f32.mrf.mxu0 }
 0x1d9   :  { %v2298_v36 = vadd.f32 %v2297_v47, %v2285_v44  ;;  %v9898_v50 = vpop.f32.mrf.mxu1  ;;  %v6029_v44 = vld [vmem:[%s11383_s6 + $0x18] sm:$0xf0] }
 0x1da   :  { %v6032_v47 = vor.u32 %v7359_v30, %v6029_v44  ;;  %v7430_v30 = vld [vmem:[%s11385_s8 + $0xb4] sm:$0xf0] }
 0x1db   :  { %v2457_v37 = vmax.f32 %v2298_v36, 0.0  ;;  %v6021_v36 = vld [vmem:[%s11383_s6 + $0x8] sm:$0xf0] }
 0x1dd   :  { %v9912_v57 = vpack.c.bf16 %v2457_v37, %v2457_v37  ;;  %v6024_v37 = vor.u32 %v7357_v41, %v6021_v36  ;;  %v6285_v36 = vld [vmem:[%s11385_s8 + $0x80] sm:$0xf] }
 0x1de   :  { %v2349_v0 = vpop.f32.mrf.mxu2 }
 0x1df   :  { %2782 = vmatmul.bf16.vlgmr.msra.gmra.mxu0 %v9912_v57 }
 0x1e0   :  { %v2299_v6 = vpop.f32.mrf.mxu0  ;;  %3120 = vmatpush.bf16.msra.mxu0 %v6342_v16  ;;  %v6261_v16 = vld [vmem:[%s11385_s8 + $0x48] sm:$0xf] }
 0x1e1   :  { %v2403_v7 = vpop.f32.mrf.mxu1 }
 0x1e6   :  { %v2351_v61 = vpop.f32.mrf.mxu2 }
 0x1e7   :  { %v6335_v61 = vld [vmem:[%s11385_s8 + $0xf0] sm:$0xf0] }
 0x1e8   :  { %v2323_v17 = vpop.f32.mrf.mxu0 }
 0x1e9   :  { %v2324_v18 = vadd.f32 %v2323_v17, %v2311_v15  ;;  %v2414_v8 = vpop.f32.mrf.mxu1  ;;  %v7436_v17 = vld [vmem:[%s11385_s8 + $0xec] sm:$0xf] }
 0x1eb   :  { %v2337_v21 = vadd.f32 %v9752_v31, %v2324_v18  ;;  %v6045_v31 = vld [vmem:[%s11383_s6 + $0x38] sm:$0xf0] }
 0x1ec   :  { %v6048_v33 = vor.u32 %v7363_v27, %v6045_v31  ;;  %v6343_v18 = vld [vmem:[%s11385_s8 + $0xf8] sm:$0xf0] }
 0x1ed   :  { %v2350_v24 = vadd.f32 %v2349_v0, %v2337_v21  ;;  %v2415_v0 = vadd.f32 %v2414_v8, %v1741_v52  ;;  %v6317_v8 = vld [vmem:[%s11385_s8 + $0xc0] sm:$0xf]  ;;  %v6346_v20 = vor.u32 %v7436_v17, %v6343_v18  ;;  %v7431_v21 = vld [vmem:[%s11385_s8 + $0xc4] sm:$0xf]  ;;  %v6293_v52 = vld [vmem:[%s11385_s8 + $0x88] sm:$0xf] }
 0x1ee   :  { %v2362_v26 = vpop.f32.mrf.mxu2  ;;  %2830 = vmatpush.bf16.msrb.mxu3 %v6048_v33  ;;  %v6318_v46 = vor.u32 %v7433_v13, %v6317_v8  ;;  %v6322_v23 = vor.u32 %v7431_v21, %v6319_v22  ;;  %v6301_v33 = vld [vmem:[%s11385_s8 + $0xa0] sm:$0xf]  ;;  %v7418_v17 = vld [vmem:[%s11385_s8 + $0x54] sm:$0xf0]  ;;  %v6263_v13 = vld [vmem:[%s11385_s8 + $0x58] sm:$0xf0] }
 0x1ef   :  { %v2458_v28 = vmax.f32 %v2350_v24, 0.0  ;;  %v2363_v32 = vadd.f32 %v2362_v26, %v1740_v29  ;;  %v6325_v24 = vld [vmem:[%s11385_s8 + $0xc8] sm:$0xf]  ;;  %v7432_v26 = vld [vmem:[%s11385_s8 + $0xcc] sm:$0xf]  ;;  %v6262_v8 = vor.u32 %v7418_v17, %v6261_v16 }
 0x1f0   :  { %v2325_v34 = vpop.f32.mrf.mxu0  ;;  %v6326_v31 = vor.u32 %v7434_v25, %v6325_v24  ;;  %v6237_v21 = vld [vmem:[%s11385_s8 + $0x20] sm:$0xf]  ;;  %v7411_v24 = vld [vmem:[%s11385_s8 + $0x24] sm:$0xf]  ;;  %v6239_v25 = vld [vmem:[%s11385_s8 + $0x30] sm:$0xf0] }
 0x1f1   :  { %v2462_v19 = vpack.c.bf16 %v2458_v28, %v2458_v28  ;;  %v2416_v39 = vpop.f32.mrf.mxu1  ;;  %v2376_v38 = vadd.f32 %v9690_v59, %v2363_v32  ;;  %v6327_v28 = vld [vmem:[%s11385_s8 + $0xd8] sm:$0xf0]  ;;  %v7429_v34 = vld [vmem:[%s11385_s8 + $0xac] sm:$0xf0]  ;;  %v7533_v16 = vld [vmem:[%s11387_s10 + $0x2f0] sm:$0xf0] }
 0x1f2   :  { %2831 = vmatpush.bf16.msrb.mxu3 %v6040_v42  ;;  %v6330_v29 = vor.u32 %v7432_v26, %v6327_v28  ;;  %3121 = vmatpush.bf16.msra.mxu0 %v6326_v31  ;;  %v6302_v54 = vor.u32 %v7429_v34, %v6301_v33  ;;  %v6309_v42 = vld [vmem:[%s11385_s8 + $0xa8] sm:$0xf]  ;;  %v6242_v31 = vor.u32 %v7411_v24, %v6239_v25  ;;  %v7412_v33 = vld [vmem:[%s11385_s8 + $0x2c] sm:$0xf]  ;;  %v7610_v17 = vld [vmem:[%s11387_s10 + $0x558] sm:$0xf0] }
 0x1f3   :  { %2795 = vmatmul.bf16.vlgmr.msrb.gmra.mxu1 %v2462_v19  ;;  %2847 = vmatmul.bf16.vlgmr.msrb.gmra.mxu0 %v2462_v19  ;;  %v7427_v19 = vld [vmem:[%s11385_s8 + $0xa4] sm:$0xf]  ;;  %v6310_v32 = vor.u32 %v7430_v30, %v6309_v42  ;;  %v6245_v28 = vld [vmem:[%s11385_s8 + $0x28] sm:$0xf]  ;;  %v7409_v42 = vld [vmem:[%s11385_s8 + $0xc] sm:$0xf0] }
 0x1f4   :  { %3133 = vmatpush.bf16.msrb.mxu1 %v6346_v20  ;;  %v6306_v44 = vor.u32 %v7427_v19, %v6303_v40  ;;  %v7416_v20 = vld [vmem:[%s11385_s8 + $0x4c] sm:$0xf]  ;;  %v6221_v40 = vld [vmem:[%s11385_s8] sm:$0xf] }
 0x1f6   :  { %v2364_v48 = vpop.f32.mrf.mxu2  ;;  %2832 = vmatpush.bf16.msrb.mxu3 %v6032_v47  ;;  %v7428_v47 = vld [vmem:[%s11385_s8 + $0xac] sm:$0xf]  ;;  %3122 = vmatpush.bf16.msra.mxu0 %v6310_v32  ;;  %v6223_v32 = vld [vmem:[%s11385_s8 + $0x10] sm:$0xf0] }
 0x1f7   :  { %v6311_v48 = vld [vmem:[%s11385_s8 + $0xb8] sm:$0xf0] }
 0x1f8   :  { %v2388_v45 = vpop.f32.mrf.mxu0  ;;  %3134 = vmatpush.bf16.msrb.mxu1 %v6330_v29  ;;  %v6314_v41 = vor.u32 %v7428_v47, %v6311_v48  ;;  %v7414_v29 = vld [vmem:[%s11385_s8 + $0x34] sm:$0xf0]  ;;  %v6229_v47 = vld [vmem:[%s11385_s8 + $0x8] sm:$0xf]  ;;  %v6222_v48 = vor.u32 %v7409_v42, %v6221_v40 }
 0x1f9   :  { %v2389_v35 = vadd.f32 %v2388_v45, %v2376_v38  ;;  %v7425_v38 = vld [vmem:[%s11385_s8 + $0x8c] sm:$0xf0]  ;;  %v7423_v45 = vld [vmem:[%s11385_s8 + $0x84] sm:$0xf]  ;;  %v6246_v19 = vor.u32 %v7414_v29, %v6245_v28  ;;  %v7526_v28 = vld [vmem:[%s11387_s10 + $0x2b8] sm:$0xf0] }
 0x1fa   :  { %2833 = vmatpush.bf16.msrb.mxu3 %v6024_v37  ;;  %v6286_v37 = vor.u32 %v7425_v38, %v6285_v36  ;;  %v7408_v36 = vld [vmem:[%s11385_s8 + $0xc] sm:$0xf]  ;;  %v6231_v38 = vld [vmem:[%s11385_s8 + $0x18] sm:$0xf0]  ;;  %v6937_v29 = vld [vmem:[%s11387_s10 + $0x498] sm:$0xf] }
 0x1fb   :  { %v2402_v51 = vadd.f32 %v9898_v50, %v2389_v35 }
 0x1fc   :  { %3135 = vmatpush.bf16.msrb.mxu1 %v6314_v41  ;;  %v7410_v41 = vld [vmem:[%s11385_s8 + $0x14] sm:$0xf0] }
 0x1fd   :  { %v2459_v55 = vmax.f32 %v2402_v51, 0.0  ;;  %v6287_v51 = vld [vmem:[%s11385_s8 + $0x90] sm:$0xf0] }
 0x1ff   :  { %v2463_v58 = vpack.c.bf16 %v2459_v55, %v2459_v55  ;;  %v2427_v60 = vpop.f32.mrf.mxu2  ;;  %v7426_v55 = vld [vmem:[%s11385_s8 + $0x94] sm:$0xf0] }
 0x200   :  { %v2390_v62 = vpop.f32.mrf.mxu0  ;;  %v2428_v1 = vadd.f32 %v2427_v60, %v2415_v0  ;;  %v6294_v60 = vor.u32 %v7426_v55, %v6293_v52  ;;  %v6295_v0 = vld [vmem:[%s11385_s8 + $0x98] sm:$0xf0]  ;;  %v6545_v55 = vld [vmem:[%s11387_s10 + $0x188] sm:$0xf] }
 0x201   :  { %2808 = vmatmul.bf16.vlgmr.msrb.gmra.mxu2 %v2463_v58  ;;  %v7424_v62 = vld [vmem:[%s11385_s8 + $0x8c] sm:$0xf] }
 0x202   :  { %v2441_v59 = vadd.f32 %v9786_v49, %v2428_v1  ;;  %3094 = vmatpush.bf16.msrb.mxu2 %v6334_v12  ;;  %v6298_v1 = vor.u32 %v7424_v62, %v6295_v0  ;;  %3123 = vmatpush.bf16.msra.mxu0 %v6294_v60  ;;  %v6253_v12 = vld [vmem:[%s11385_s8 + $0x40] sm:$0xf]  ;;  %v6517_v60 = vld [vmem:[%s11387_s10 + $0x150] sm:$0xf] }
 0x203   :  { %2860 = vmatmul.bf16.vlgmr.msra.gmra.mxu1 %v2463_v58  ;;  %v6290_v58 = vor.u32 %v7423_v45, %v6287_v51  ;;  %v2515_v62 = vld [vmem:[%s11384_s7] sm:$0x3]  ;;  %s7698_s7 = smov [#allocation2]  }
 0x204   :  { %3136 = vmatpush.bf16.msrb.mxu1 %v6298_v1  ;;  %v7484_v1 = vld [vmem:[%s11387_s10 + $0x168] sm:$0xf0]  ;;  %s4798_s21 = sshll.u32 %s7698_s7, 4  ;;  %s4799_s21 = int_to_ptr.vmem [resolvable:$true] %s4798_s21 }
 0x206   :  { %3095 = vmatpush.bf16.msrb.mxu2 %v6318_v46  ;;  %v6266_v46 = vor.u32 %v7416_v20, %v6263_v13  ;;  %v7470_v20 = vld [vmem:[%s11387_s10 + $0xf8] sm:$0xf0] }
 0x207   :  { %v2429_v2 = vpop.f32.mrf.mxu2 }
 0x208   :  { %v2453_v3 = vpop.f32.mrf.mxu0  ;;  %v6269_v2 = vld [vmem:[%s11385_s8 + $0x60] sm:$0xf] }
 0x209   :  { %v2454_v4 = vadd.f32 %v2453_v3, %v2441_v59  ;;  %v7421_v59 = vld [vmem:[%s11385_s8 + $0x6c] sm:$0xf0]  ;;  %v7419_v3 = vld [vmem:[%s11385_s8 + $0x64] sm:$0xf] }
 0x20a   :  { %3096 = vmatpush.bf16.msrb.mxu2 %v6302_v54  ;;  %v6247_v54 = vld [vmem:[%s11385_s8 + $0x38] sm:$0xf0] }
 0x20b   :  { %v2460_v5 = vmax.f32 %v2454_v4, 0.0  ;;  %v6250_v30 = vor.u32 %v7412_v33, %v6247_v54  ;;  %v7463_v54 = vld [vmem:[%s11387_s10 + $0xc0] sm:$0xf0] }
 0x20d   :  { %v2464_v43 = vpack.c.bf16 %v2460_v5, %v2460_v5  ;;  %v6270_v5 = vor.u32 %v7421_v59, %v6269_v2  ;;  %v2518_v2 = vperm.slane %v2515_v62, 1  ;;  %v6769_v59 = vld [vmem:[%s11387_s10 + $0x348] sm:$0xf] }
 0x20e   :  { %3097 = vmatpush.bf16.msrb.mxu2 %v6286_v37  ;;  %v6234_v37 = vor.u32 %v7408_v36, %v6231_v38  ;;  %v7519_v36 = vld [vmem:[%s11387_s10 + $0x280] sm:$0xf0] }
 0x20f   :  { %6217 = vmatmul.msk.bf16.vlgmr.msra.gmra.mxu3 %vm1260_vm0, %v2464_v43 }
 0x210   :  { %v2455_v50 = vpop.f32.mrf.mxu0 }
 0x211   :  { %6218 = vmatmul.msk.bf16.vlgmr.msra.gmra.mxu2 %vm1260_vm0, %v2464_v43  ;;  %v6271_v43 = vld [vmem:[%s11385_s8 + $0x70] sm:$0xf0]  ;;  %v6277_v50 = vld [vmem:[%s11385_s8 + $0x68] sm:$0xf] }
 0x212   :  { %3098 = vmatpush.bf16.msrb.mxu2 %v6270_v5  ;;  %v7547_v5 = vld [vmem:[%s11387_s10 + $0x360] sm:$0xf0] }
 0x21f   :  { %2834 = vmatmul.bf16.vlgmr.msrb.gmra.mxu3 %v9912_v57  ;;  %v7435_v57 = vld [vmem:[%s11385_s8 + $0xe4] sm:$0xf] }
 0x220   :  { %v6338_v15 = vor.u32 %v7435_v57, %v6335_v61  ;;  %v6282_v57 = vor.u32 %v7420_v10, %v6279_v11  ;;  %v7417_v61 = vld [vmem:[%s11385_s8 + $0x4c] sm:$0xf0]  ;;  %v6993_v10 = vld [vmem:[%s11387_s10 + $0x508] sm:$0xf]  ;;  %v7603_v11 = vld [vmem:[%s11387_s10 + $0x520] sm:$0xf0] }
 0x221   :  { %v6254_v14 = vor.u32 %v7417_v61, %v6253_v12  ;;  %v6994_v61 = vor.u32 %v7603_v11, %v6993_v10 }
 0x222   :  { %3107 = vmatpush.bf16.msra.mxu3 %v6338_v15  ;;  %3137 = vmatpush.bf16.msrb.mxu1 %v6282_v57  ;;  %v6255_v15 = vld [vmem:[%s11385_s8 + $0x50] sm:$0xf0] }
 0x223   :  { %v6258_v18 = vor.u32 %v7415_v56, %v6255_v15  ;;  %3099 = vmatpush.bf16.msrb.mxu2 %v6254_v14  ;;  %v7021_v56 = vld [vmem:[%s11387_s10 + $0x540] sm:$0xf]  ;;  %v6713_v15 = vld [vmem:[%s11387_s10 + $0x2d8] sm:$0xf] }
 0x224   :  { %v7022_v13 = vor.u32 %v7610_v17, %v7021_v56  ;;  %v6714_v24 = vor.u32 %v7533_v16, %v6713_v15  ;;  %v7442_v56 = vld [vmem:[%s11387_s10 + $0x18] sm:$0xf0]  ;;  %v6771_v15 = vld [vmem:[%s11387_s10 + $0x364] sm:$0xf0] }
 0x226   :  { %3108 = vmatpush.bf16.msra.mxu3 %v6322_v23  ;;  %v7413_v23 = vld [vmem:[%s11385_s8 + $0x2c] sm:$0xf0]  ;;  %3138 = vmatpush.bf16.msrb.mxu1 %v6266_v46  ;;  %v2517_v46 = vperm.slane %v2515_v62, 0 }
 0x227   :  { %v6238_v26 = vor.u32 %v7413_v23, %v6237_v21  ;;  %v6965_v21 = vld [vmem:[%s11387_s10 + $0x4d0] sm:$0xf]  ;;  %v7596_v23 = vld [vmem:[%s11387_s10 + $0x4e8] sm:$0xf0] }
 0x228   :  { %v6966_v25 = vor.u32 %v7596_v23, %v6965_v21  ;;  %v6825_v21 = vld [vmem:[%s11387_s10 + $0x3b8] sm:$0xf] }
 0x229   :  { %3100 = vmatpush.bf16.msrb.mxu2 %v6238_v26  ;;  %v6685_v26 = vld [vmem:[%s11387_s10 + $0x2a0] sm:$0xf] }
 0x22a   :  { %3109 = vmatpush.bf16.msra.mxu3 %v6306_v44  ;;  %v7407_v44 = vld [vmem:[%s11385_s8 + $0x4] sm:$0xf]  ;;  %3139 = vmatpush.bf16.msrb.mxu1 %v6250_v30 }
 0x22b   :  { %v6226_v45 = vor.u32 %v7407_v44, %v6223_v32  ;;  %v6686_v32 = vor.u32 %v7526_v28, %v6685_v26  ;;  %v6519_v26 = vld [vmem:[%s11387_s10 + $0x16c] sm:$0xf0] }
 0x22d   :  { %3101 = vmatpush.bf16.msrb.mxu2 %v6222_v48 }
 0x22e   :  { %3110 = vmatpush.bf16.msra.mxu3 %v6290_v58  ;;  %3140 = vmatpush.bf16.msrb.mxu1 %v6234_v37  ;;  %v7491_v58 = vld [vmem:[%s11387_s10 + $0x1a0] sm:$0xf0] }
 0x22f   :  { %v6546_v0 = vor.u32 %v7491_v58, %v6545_v55 }
 0x231   :  { %4273 = vmatpush.bf16.msra.mxu2 %v6546_v0  ;;  %v7512_v0 = vld [vmem:[%s11387_s10 + $0x248] sm:$0xf0] }
 0x232   :  { %4319 = vmatpush.bf16.msra.mxu1 %v7022_v13  ;;  %v6995_v13 = vld [vmem:[%s11387_s10 + $0x524] sm:$0xf0] }
 0x25c   :  { %v9992_v63 = vpop.f32.mrf.mxu0 }
 0x25d   :  { %v2784_v42 = vadd.f32 %v9992_v63, %v2517_v46  ;;  %v6657_v63 = vld [vmem:[%s11387_s10 + $0x268] sm:$0xf]  ;;  %v7561_v46 = vld [vmem:[%s11387_s10 + $0x3d0] sm:$0xf0] }
 0x25e   :  { %v6658_v58 = vor.u32 %v7519_v36, %v6657_v63  ;;  %v7523_v63 = vld [vmem:[%s11387_s10 + $0x2a4] sm:$0xf]  ;;  %v6687_v36 = vld [vmem:[%s11387_s10 + $0x2bc] sm:$0xf0] }
 0x264   :  { %v2785_v6 = vpop.f32.mrf.mxu0 }
 0x265   :  { %v7422_v6 = vld [vmem:[%s11385_s8 + $0x74] sm:$0xf0] }
 0x270   :  { %v9994_v53 = vpop.f32.mrf.mxu1  ;;  %v9996_v7 = vpop.f32.mrf.mxu0 }
 0x271   :  { %v2797_v48 = vadd.f32 %v9994_v53, %v2784_v42  ;;  %v6491_v42 = vld [vmem:[%s11387_s10 + $0x134] sm:$0xf0] }
 0x278   :  { %v2798_v9 = vpop.f32.mrf.mxu1  ;;  %v2850_v49 = vpop.f32.mrf.mxu0 }
 0x279   :  { %v6274_v9 = vor.u32 %v7419_v3, %v6271_v43  ;;  %v6278_v49 = vor.u32 %v7422_v6, %v6277_v50  ;;  %v6518_v3 = vor.u32 %v7484_v1, %v6517_v60  ;;  %v7477_v43 = vld [vmem:[%s11387_s10 + $0x130] sm:$0xf0]  ;;  %v6770_v50 = vor.u32 %v7547_v5, %v6769_v59  ;;  %v6741_v6 = vld [vmem:[%s11387_s10 + $0x310] sm:$0xf]  ;;  %v6377_v1 = vld [vmem:[%s11387_s10 + $0x38] sm:$0xf] }
 0x27a   :  { %v6853_v59 = vld [vmem:[%s11387_s10 + $0x3f0] sm:$0xf]  ;;  %v2888_v5 = vld [vmem:[%s11378_s1] sm:$0x3] }
 0x27b   :  { %3111 = vmatpush.bf16.msra.mxu3 %v6274_v9  ;;  %3124 = vmatpush.bf16.msra.mxu0 %v6278_v49  ;;  %v7540_v9 = vld [vmem:[%s11387_s10 + $0x328] sm:$0xf0] }
 0x27c   :  { %v6742_v12 = vor.u32 %v7540_v9, %v6741_v6  ;;  %4274 = vmatpush.bf16.msra.mxu2 %v6518_v3  ;;  %v7568_v3 = vld [vmem:[%s11387_s10 + $0x408] sm:$0xf0]  ;;  %v6601_v6 = vld [vmem:[%s11387_s10 + $0x1f8] sm:$0xf]  ;;  %v7505_v9 = vld [vmem:[%s11387_s10 + $0x210] sm:$0xf0] }
 0x27d   :  { %v6854_v10 = vor.u32 %v7568_v3, %v6853_v59  ;;  %v6602_v16 = vor.u32 %v7505_v9, %v6601_v6  ;;  %v6797_v3 = vld [vmem:[%s11387_s10 + $0x380] sm:$0xf]  ;;  %v7586_v9 = vld [vmem:[%s11387_s10 + $0x49c] sm:$0xf] }
 0x27f   :  { %3112 = vmatpush.bf16.msra.mxu3 %v6258_v18  ;;  %3125 = vmatpush.bf16.msra.mxu0 %v6262_v8  ;;  %v6461_v8 = vld [vmem:[%s11387_s10 + $0xe0] sm:$0xf] }
 0x280   :  { %v10043_v27 = vpop.f32.mrf.mxu1 }
 0x283   :  { %3113 = vmatpush.bf16.msra.mxu3 %v6242_v31  ;;  %3126 = vmatpush.bf16.msra.mxu0 %v6246_v19  ;;  %v6462_v31 = vor.u32 %v7470_v20, %v6461_v8  ;;  %v6433_v19 = vld [vmem:[%s11387_s10 + $0xa8] sm:$0xf]  ;;  %v7498_v8 = vld [vmem:[%s11387_s10 + $0x1d8] sm:$0xf0]  ;;  %v7600_v20 = vld [vmem:[%s11387_s10 + $0x50c] sm:$0xf] }
 0x284   :  { %v10057_v39 = vpop.f32.mrf.mxu2 }
 0x285   :  { %v2810_v37 = vadd.f32 %v10057_v39, %v2797_v48  ;;  %v6629_v39 = vld [vmem:[%s11387_s10 + $0x230] sm:$0xf]  ;;  %v6463_v48 = vld [vmem:[%s11387_s10 + $0xfc] sm:$0xf0] }
 0x287   :  { %3114 = vmatpush.bf16.msra.mxu3 %v6226_v45  ;;  %v6405_v45 = vld [vmem:[%s11387_s10 + $0x70] sm:$0xf] }
 0x288   :  { %v2863_v35 = vpop.f32.mrf.mxu1 }
 0x289   :  { %v6230_v35 = vor.u32 %v7410_v41, %v6229_v47  ;;  %v7582_v47 = vld [vmem:[%s11387_s10 + $0x478] sm:$0xf0]  ;;  %v6434_v41 = vor.u32 %v7463_v54, %v6433_v19  ;;  %v6826_v19 = vor.u32 %v7561_v46, %v6825_v21  ;;  %v6575_v21 = vld [vmem:[%s11387_s10 + $0x1dc] sm:$0xf0] }
 0x28b   :  { %3127 = vmatpush.bf16.msra.mxu0 %v6230_v35  ;;  %4286 = vmatpush.bf16.msrb.mxu3 %v6770_v50  ;;  %v7456_v35 = vld [vmem:[%s11387_s10 + $0x88] sm:$0xf0] }
 0x28c   :  { %v2811_v4 = vpop.f32.mrf.mxu2  ;;  %v6406_v62 = vor.u32 %v7456_v35, %v6405_v45  ;;  %v7460_v45 = vld [vmem:[%s11387_s10 + $0xac] sm:$0xf]  ;;  %v6435_v35 = vld [vmem:[%s11387_s10 + $0xc4] sm:$0xf0] }
 0x28d   :  { %v6489_v4 = vld [vmem:[%s11387_s10 + $0x118] sm:$0xf] }
 0x28e   :  { %v6490_v14 = vor.u32 %v7477_v43, %v6489_v4  ;;  %v6630_v43 = vor.u32 %v7512_v0, %v6629_v39  ;;  %v7593_v39 = vld [vmem:[%s11387_s10 + $0x4d4] sm:$0xf]  ;;  %v6967_v0 = vld [vmem:[%s11387_s10 + $0x4ec] sm:$0xf0] }
 0x28f   :  { %4299 = vmatpush.bf16.msrb.mxu0 %v6994_v61  ;;  %4287 = vmatpush.bf16.msrb.mxu3 %v6742_v12  ;;  %v6547_v12 = vld [vmem:[%s11387_s10 + $0x1a4] sm:$0xf0]  ;;  %v6349_v61 = vld [vmem:[%s11387_s10] sm:$0xf] }
 0x290   :  { %4275 = vmatpush.bf16.msra.mxu2 %v6490_v14  ;;  %v7544_v14 = vld [vmem:[%s11387_s10 + $0x34c] sm:$0xf] }
 0x292   :  { %v10149_v22 = vpop.f32.mrf.mxu3 }
 0x293   :  { %4300 = vmatpush.bf16.msrb.mxu0 %v6966_v25  ;;  %4288 = vmatpush.bf16.msrb.mxu3 %v6714_v24  ;;  %v2823_v60 = vadd.f32 %v10149_v22, %v2810_v37  ;;  %v6350_v24 = vor.u32 %v7442_v56, %v6349_v61  ;;  %v7481_v25 = vld [vmem:[%s11387_s10 + $0x154] sm:$0xf]  ;;  %v6438_v37 = vor.u32 %v7460_v45, %v6435_v35  ;;  %v7023_v56 = vld [vmem:[%s11387_s10 + $0x55c] sm:$0xf0] }
 0x294   :  { %v10169_v34 = vpop.f32.mrf.mxu2  ;;  %4276 = vmatpush.bf16.msra.mxu2 %v6462_v31  ;;  %v6774_v31 = vor.u32 %v7544_v14, %v6771_v15  ;;  %v6522_v54 = vor.u32 %v7481_v25, %v6519_v26  ;;  %v7502_v15 = vld [vmem:[%s11387_s10 + $0x1fc] sm:$0xf]  ;;  %v7565_v25 = vld [vmem:[%s11387_s10 + $0x3f4] sm:$0xf]  ;;  %v6855_v26 = vld [vmem:[%s11387_s10 + $0x40c] sm:$0xf0] }
 0x297   :  { %4289 = vmatpush.bf16.msrb.mxu3 %v6686_v32  ;;  %v6715_v32 = vld [vmem:[%s11387_s10 + $0x2f4] sm:$0xf0] }
 0x298   :  { %4277 = vmatpush.bf16.msra.mxu2 %v6434_v41 }
 0x29a   :  { %v2824_v51 = vpop.f32.mrf.mxu3 }
 0x29b   :  { %v6881_v51 = vld [vmem:[%s11387_s10 + $0x428] sm:$0xf]  ;;  %4290 = vmatpush.bf16.msrb.mxu3 %v6658_v58  ;;  %v7516_v58 = vld [vmem:[%s11387_s10 + $0x26c] sm:$0xf] }
 0x29c   :  { %v2876_v52 = vpop.f32.mrf.mxu2  ;;  %4278 = vmatpush.bf16.msra.mxu2 %v6406_v62 }
 0x29d   :  { %v7575_v52 = vld [vmem:[%s11387_s10 + $0x440] sm:$0xf0] }
 0x29e   :  { %v6882_v22 = vor.u32 %v7575_v52, %v6881_v51  ;;  %v7453_v51 = vld [vmem:[%s11387_s10 + $0x74] sm:$0xf]  ;;  %v6407_v52 = vld [vmem:[%s11387_s10 + $0x8c] sm:$0xf0] }
 0x29f   :  { %4291 = vmatpush.bf16.msrb.mxu3 %v6630_v43  ;;  %v7509_v43 = vld [vmem:[%s11387_s10 + $0x234] sm:$0xf] }
 0x2a2   :  { %v2835_v49 = vpop.f32.mrf.mxu3 }
 0x2a3   :  { %v2836_v57 = vadd.f32 %v2835_v49, %v2518_v2  ;;  %v7449_v2 = vld [vmem:[%s11387_s10 + $0x50] sm:$0xf0]  ;;  %4292 = vmatpush.bf16.msrb.mxu3 %v6602_v16  ;;  %v6603_v16 = vld [vmem:[%s11387_s10 + $0x214] sm:$0xf0] }
 0x2a4   :  { %v6378_v50 = vor.u32 %v7449_v2, %v6377_v1  ;;  %v6970_v1 = vor.u32 %v7593_v39, %v6967_v0  ;;  %v7446_v2 = vld [vmem:[%s11387_s10 + $0x3c] sm:$0xf]  ;;  %v7485_v39 = vld [vmem:[%s11387_s10 + $0x170] sm:$0xf0]  ;;  %v6749_v0 = vld [vmem:[%s11387_s10 + $0x318] sm:$0xf] }
 0x2a5   :  { %v2849_v18 = vadd.f32 %v9996_v7, %v2836_v57  ;;  %v7488_v57 = vld [vmem:[%s11387_s10 + $0x18c] sm:$0xf] }
 0x2a6   :  { %4279 = vmatpush.bf16.msra.mxu2 %v6378_v50  ;;  %v6631_v50 = vld [vmem:[%s11387_s10 + $0x24c] sm:$0xf0] }
 0x2a7   :  { %v2862_v7 = vadd.f32 %v10043_v27, %v2849_v18  ;;  %v7589_v27 = vld [vmem:[%s11387_s10 + $0x4b0] sm:$0xf0]  ;;  %v6573_v18 = vld [vmem:[%s11387_s10 + $0x1c0] sm:$0xf]  ;;  %v6634_v6 = vor.u32 %v7509_v43, %v6631_v50 }
 0x2a8   :  { %v6938_v40 = vor.u32 %v7589_v27, %v6937_v29  ;;  %v6574_v28 = vor.u32 %v7498_v8, %v6573_v18  ;;  %v7537_v29 = vld [vmem:[%s11387_s10 + $0x314] sm:$0xf]  ;;  %v6743_v27 = vld [vmem:[%s11387_s10 + $0x32c] sm:$0xf0]  ;;  %v7579_v18 = vld [vmem:[%s11387_s10 + $0x464] sm:$0xf] }
 0x2a9   :  { %v2875_v33 = vadd.f32 %v10169_v34, %v2862_v7  ;;  %v6909_v34 = vld [vmem:[%s11387_s10 + $0x460] sm:$0xf]  ;;  %v6550_v7 = vor.u32 %v7488_v57, %v6547_v12  ;;  %v7607_v12 = vld [vmem:[%s11387_s10 + $0x544] sm:$0xf] }
 0x2aa   :  { %v2837_v30 = vpop.f32.mrf.mxu3  ;;  %4301 = vmatpush.bf16.msrb.mxu0 %v6938_v40  ;;  %v6910_v53 = vor.u32 %v7582_v47, %v6909_v34  ;;  %4280 = vmatpush.bf16.msra.mxu2 %v6350_v24  ;;  %v7474_v40 = vld [vmem:[%s11387_s10 + $0x11c] sm:$0xf]  ;;  %v7467_v47 = vld [vmem:[%s11387_s10 + $0xe4] sm:$0xf]  ;;  %v6351_v57 = vld [vmem:[%s11387_s10 + $0x1c] sm:$0xf0]  ;;  %v7026_v14 = vor.u32 %v7607_v12, %v7023_v56 }
 0x2ab   :  { %v2885_v44 = vmul.f32 0.5, %v2875_v33  ;;  %v2880_v55 = vrot.slane %v2875_v33, 6  ;;  %v6998_v33 = vor.u32 %v7600_v20, %v6995_v13  ;;  %v6746_v30 = vor.u32 %v7537_v29, %v6743_v27  ;;  %4293 = vmatpush.bf16.msrb.mxu3 %v6574_v28  ;;  %v6911_v8 = vld [vmem:[%s11387_s10 + $0x47c] sm:$0xf0]  ;;  %v7495_v13 = vld [vmem:[%s11387_s10 + $0x1c4] sm:$0xf] }
 0x2ac   :  { %v6494_v34 = vor.u32 %v7474_v40, %v6491_v42  ;;  %v6914_v20 = vor.u32 %v7579_v18, %v6911_v8  ;;  %v6578_v46 = vor.u32 %v7495_v13, %v6575_v21  ;;  %v7558_v28 = vld [vmem:[%s11387_s10 + $0x3bc] sm:$0xf]  ;;  %v6827_v29 = vld [vmem:[%s11387_s10 + $0x3d4] sm:$0xf0]  ;;  %v2924_v40 = vld [vmem:[%s11386_s9] sm:$0xf] }
 0x2ad   :  { %v2886_v38 = vmul.f32 1.442695, %v2885_v44  ;;  %v2882_v4 = vsel %vm2881_vm1, %v2823_v60, %v2880_v55  ;;  %v7530_v44 = vld [vmem:[%s11387_s10 + $0x2dc] sm:$0xf]  ;;  %v6410_v55 = vor.u32 %v7453_v51, %v6407_v52  ;;  %v6830_v27 = vor.u32 %v7558_v28, %v6827_v29  ;;  %v6525_v52 = vld [vmem:[%s11387_s10 + $0x158] sm:$0xf] }
 0x2ae   :  { %4302 = vmatpush.bf16.msrb.mxu0 %v6910_v53  ;;  %2884 = vst [vmem:[#allocation2] sm:$0xf] %v2882_v4  ;;  %v6718_v41 = vor.u32 %v7530_v44, %v6715_v32  ;;  %v6690_v53 = vor.u32 %v7523_v63, %v6687_v36  ;;  %v7554_v4 = vld [vmem:[%s11387_s10 + $0x398] sm:$0xf0]  ;;  %v2928_v42 = vperm.slane %v2924_v40, 2  ;;  %v2927_v45 = vperm.slane %v2924_v40, 1 }
 0x2af   :  { %7616 = vpow2.f32 %v2886_v38  ;;  %v6466_v38 = vor.u32 %v7467_v47, %v6463_v48  ;;  %v6777_v63 = vld [vmem:[%s11387_s10 + $0x350] sm:$0xf]  ;;  %v7548_v36 = vld [vmem:[%s11387_s10 + $0x368] sm:$0xf0]  ;;  %v6721_v12 = vld [vmem:[%s11387_s10 + $0x2e0] sm:$0xf] }
 0x2b0   :  { %v6778_v51 = vor.u32 %v7548_v36, %v6777_v63  ;;  %v7597_v18 = vld [vmem:[%s11387_s10 + $0x4f0] sm:$0xf0]  ;;  %v6469_v13 = vld [vmem:[%s11387_s10 + $0xe8] sm:$0xf]  ;;  %v6889_v36 = vld [vmem:[%s11387_s10 + $0x430] sm:$0xf] }
 0x2b1   :  { %4803 = dma.vmem_to_hbm [thread:$0]  %s4799_s21, 64, %s4801_s20, [#allocation3]  }
 0x2b2   :  { %4303 = vmatpush.bf16.msrb.mxu0 %v6882_v22  ;;  %v6379_v22 = vld [vmem:[%s11387_s10 + $0x54] sm:$0xf0] }
 0x2b3   :  { %v6382_v59 = vor.u32 %v7446_v2, %v6379_v22 }
 0x2b5   :  { %v7617_v49 = vpop.eup %7616 }
 0x2b6   :  { %v2889_v11 = vmul.f32 %v7617_v49, %v2888_v5  ;;  %4304 = vmatpush.bf16.msrb.mxu0 %v6854_v10  ;;  %v6798_v5 = vor.u32 %v7554_v4, %v6797_v3  ;;  %v6939_v49 = vld [vmem:[%s11387_s10 + $0x4b4] sm:$0xf0]  ;;  %v7604_v3 = vld [vmem:[%s11387_s10 + $0x528] sm:$0xf0]  ;;  %v7029_v4 = vld [vmem:[%s11387_s10 + $0x548] sm:$0xf] }
 0x2b7   :  { %v6942_v10 = vor.u32 %v7586_v9, %v6939_v49  ;;  %v6526_v49 = vor.u32 %v7485_v39, %v6525_v52  ;;  %v7450_v52 = vld [vmem:[%s11387_s10 + $0x58] sm:$0xf0] }
 0x2b8   :  { %v2890_v17 = vadd.f32 %v2889_v11, %v2823_v60  ;;  %v6659_v60 = vld [vmem:[%s11387_s10 + $0x284] sm:$0xf0]  ;;  %v7439_v11 = vld [vmem:[%s11387_s10 + $0x4] sm:$0xf] }
 0x2b9   :  { %v6662_v62 = vor.u32 %v7516_v58, %v6659_v60  ;;  %v6354_v61 = vor.u32 %v7439_v11, %v6351_v57  ;;  %v6497_v11 = vld [vmem:[%s11387_s10 + $0x120] sm:$0xf]  ;;  %v7478_v57 = vld [vmem:[%s11387_s10 + $0x138] sm:$0xf0] }
 0x2ba   :  { %v2891_v23 = vpack.c.bf16 %v2890_v17, %v2890_v17  ;;  %4305 = vmatpush.bf16.msrb.mxu0 %v6826_v19  ;;  %v6606_v17 = vor.u32 %v7502_v15, %v6603_v16  ;;  %v6799_v19 = vld [vmem:[%s11387_s10 + $0x39c] sm:$0xf0]  ;;  %v6498_v8 = vor.u32 %v7478_v57, %v6497_v11  ;;  %v7601_v57 = vld [vmem:[%s11387_s10 + $0x514] sm:$0xf] }
 0x2bc   :  { %3102 = vmatmul.bf16.vlgmr.msrb.gmra.mxu2 %v2891_v23  ;;  %3115 = vmatmul.bf16.vlgmr.msra.gmra.mxu3 %v2891_v23 }
 0x2bd   :  { %3128 = vmatmul.bf16.vlgmr.msra.gmra.mxu0 %v2891_v23  ;;  %3141 = vmatmul.bf16.vlgmr.msrb.gmra.mxu1 %v2891_v23  ;;  %v7572_v23 = vld [vmem:[%s11387_s10 + $0x42c] sm:$0xf] }
 0x2be   :  { %4325 = vmatpush.bf16.msrb.mxu1 %v6550_v7  ;;  %4338 = vmatpush.bf16.msrb.mxu2 %v6774_v31  ;;  %v6883_v7 = vld [vmem:[%s11387_s10 + $0x444] sm:$0xf0]  ;;  %v6858_v31 = vor.u32 %v7565_v25, %v6855_v26  ;;  %v6945_v26 = vld [vmem:[%s11387_s10 + $0x4a0] sm:$0xf] }
 0x2bf   :  { %4351 = vmatpush.bf16.msra.mxu3 %v6998_v33  ;;  %4306 = vmatpush.bf16.msrb.mxu0 %v6798_v5  ;;  %v6886_v24 = vor.u32 %v7572_v23, %v6883_v7  ;;  %v7551_v33 = vld [vmem:[%s11387_s10 + $0x384] sm:$0xf]  ;;  %v6693_v7 = vld [vmem:[%s11387_s10 + $0x2a8] sm:$0xf] }
 0x2c0   :  { %v7611_v5 = vld [vmem:[%s11387_s10 + $0x560] sm:$0xf0] }
 0x2c1   :  { %v7030_v16 = vor.u32 %v7611_v5, %v7029_v4  ;;  %v7471_v23 = vld [vmem:[%s11387_s10 + $0x100] sm:$0xf0]  ;;  %v6357_v5 = vld [vmem:[%s11387_s10 + $0x8] sm:$0xf] }
 0x2c2   :  { %4326 = vmatpush.bf16.msrb.mxu1 %v6522_v54  ;;  %4339 = vmatpush.bf16.msrb.mxu2 %v6746_v30  ;;  %v6802_v54 = vor.u32 %v7551_v33, %v6799_v19  ;;  %v2929_v30 = vperm.slane %v2924_v40, 3  ;;  %v6470_v28 = vor.u32 %v7471_v23, %v6469_v13  ;;  %v7464_v33 = vld [vmem:[%s11387_s10 + $0xc8] sm:$0xf0]  ;;  %v6665_v19 = vld [vmem:[%s11387_s10 + $0x270] sm:$0xf] }
 0x2c3   :  { %4352 = vmatpush.bf16.msra.mxu3 %v6970_v1  ;;  %4371 = vmatpush.bf16.msra.mxu0 %v7026_v14  ;;  %v7541_v1 = vld [vmem:[%s11387_s10 + $0x330] sm:$0xf0] }
 0x2c6   :  { %4327 = vmatpush.bf16.msrb.mxu1 %v6494_v34  ;;  %4340 = vmatpush.bf16.msrb.mxu2 %v6718_v41  ;;  %v6553_v34 = vld [vmem:[%s11387_s10 + $0x190] sm:$0xf]  ;;  %v7492_v41 = vld [vmem:[%s11387_s10 + $0x1a8] sm:$0xf0] }
 0x2c7   :  { %4353 = vmatpush.bf16.msra.mxu3 %v6942_v10  ;;  %v6750_v10 = vor.u32 %v7541_v1, %v6749_v0  ;;  %v6861_v1 = vld [vmem:[%s11387_s10 + $0x3f8] sm:$0xf] }
 0x2ca   :  { %4328 = vmatpush.bf16.msrb.mxu1 %v6466_v38  ;;  %4341 = vmatpush.bf16.msrb.mxu2 %v6690_v53  ;;  %v2926_v38 = vperm.slane %v2924_v40, 0 }
 0x2cb   :  { %4354 = vmatpush.bf16.msra.mxu3 %v6914_v20 }
 0x2ce   :  { %4329 = vmatpush.bf16.msrb.mxu1 %v6438_v37  ;;  %4342 = vmatpush.bf16.msrb.mxu2 %v6662_v62  ;;  %v6554_v37 = vor.u32 %v7492_v41, %v6553_v34  ;;  %v6413_v34 = vld [vmem:[%s11387_s10 + $0x78] sm:$0xf]  ;;  %v7513_v41 = vld [vmem:[%s11387_s10 + $0x250] sm:$0xf0] }
 0x2cf   :  { %4355 = vmatpush.bf16.msra.mxu3 %v6886_v24  ;;  %v7527_v24 = vld [vmem:[%s11387_s10 + $0x2c0] sm:$0xf0] }
 0x2d0   :  { %v6694_v29 = vor.u32 %v7527_v24, %v6693_v7  ;;  %v7594_v24 = vld [vmem:[%s11387_s10 + $0x4dc] sm:$0xf] }
 0x2d2   :  { %4330 = vmatpush.bf16.msrb.mxu1 %v6410_v55  ;;  %4343 = vmatpush.bf16.msrb.mxu2 %v6634_v6 }
 0x2d3   :  { %4356 = vmatpush.bf16.msra.mxu3 %v6858_v31  ;;  %v7590_v31 = vld [vmem:[%s11387_s10 + $0x4b8] sm:$0xf0] }
 0x2d4   :  { %v6946_v40 = vor.u32 %v7590_v31, %v6945_v26  ;;  %v6805_v26 = vld [vmem:[%s11387_s10 + $0x388] sm:$0xf]  ;;  %v7555_v31 = vld [vmem:[%s11387_s10 + $0x3a0] sm:$0xf0] }
 0x2d6   :  { %4331 = vmatpush.bf16.msrb.mxu1 %v6382_v59  ;;  %4344 = vmatpush.bf16.msrb.mxu2 %v6606_v17  ;;  %v7001_v59 = vld [vmem:[%s11387_s10 + $0x510] sm:$0xf]  ;;  %v6973_v17 = vld [vmem:[%s11387_s10 + $0x4d8] sm:$0xf] }
 0x2d7   :  { %4357 = vmatpush.bf16.msra.mxu3 %v6830_v27  ;;  %v7002_v15 = vor.u32 %v7604_v3, %v7001_v59  ;;  %v6974_v25 = vor.u32 %v7597_v18, %v6973_v17  ;;  %v6441_v27 = vld [vmem:[%s11387_s10 + $0xb0] sm:$0xf]  ;;  %v6527_v59 = vld [vmem:[%s11387_s10 + $0x174] sm:$0xf0]  ;;  %v6499_v17 = vld [vmem:[%s11387_s10 + $0x13c] sm:$0xf0] }
 0x2da   :  { %4332 = vmatpush.bf16.msrb.mxu1 %v6354_v61  ;;  %4345 = vmatpush.bf16.msrb.mxu2 %v6578_v46  ;;  %v7534_v61 = vld [vmem:[%s11387_s10 + $0x2f8] sm:$0xf0] }
 0x2db   :  { %4358 = vmatpush.bf16.msra.mxu3 %v6802_v54  ;;  %v6722_v20 = vor.u32 %v7534_v61, %v6721_v12  ;;  %v7520_v54 = vld [vmem:[%s11387_s10 + $0x288] sm:$0xf0]  ;;  %v7003_v12 = vld [vmem:[%s11387_s10 + $0x52c] sm:$0xf0]  ;;  %v6833_v61 = vld [vmem:[%s11387_s10 + $0x3c0] sm:$0xf] }
 0x2dc   :  { %v7006_v13 = vor.u32 %v7601_v57, %v7003_v12  ;;  %v7510_v12 = vld [vmem:[%s11387_s10 + $0x23c] sm:$0xf] }
 0x33a   :  { %v3129_v44 = vpop.f32.mrf.mxu0  ;;  %v3142_v32 = vpop.f32.mrf.mxu1 }
 0x33b   :  { %v3130_v47 = vadd.f32 %v3129_v44, %v2928_v42  ;;  %v3143_v48 = vadd.f32 %v3142_v32, %v2929_v30  ;;  %v6917_v42 = vld [vmem:[%s11387_s10 + $0x468] sm:$0xf]  ;;  %v7583_v30 = vld [vmem:[%s11387_s10 + $0x480] sm:$0xf0]  ;;  %v6442_v44 = vor.u32 %v7464_v33, %v6441_v27  ;;  %v6666_v32 = vor.u32 %v7520_v54, %v6665_v19  ;;  %v7608_v27 = vld [vmem:[%s11387_s10 + $0x54c] sm:$0xf] }
 0x33c   :  { %v6918_v63 = vor.u32 %v7583_v30, %v6917_v42  ;;  %v7031_v33 = vld [vmem:[%s11387_s10 + $0x564] sm:$0xf0]  ;;  %v6806_v42 = vor.u32 %v7555_v31, %v6805_v26  ;;  %v6611_v26 = vld [vmem:[%s11387_s10 + $0x21c] sm:$0xf0]  ;;  %v7559_v31 = vld [vmem:[%s11387_s10 + $0x3c4] sm:$0xf] }
 0x33d   :  { %v3148_v35 = vmax.f32 %v3130_v47, 0.0  ;;  %v3149_v53 = vmax.f32 %v3143_v48, 0.0  ;;  %v7457_v47 = vld [vmem:[%s11387_s10 + $0x90] sm:$0xf0]  ;;  %v6637_v48 = vld [vmem:[%s11387_s10 + $0x238] sm:$0xf] }
 0x33f   :  { %v10530_v55 = vpack.c.bf16 %v3148_v35, %v3148_v35  ;;  %v10532_v58 = vpack.c.bf16 %v3149_v53, %v3149_v53  ;;  %v3103_v60 = vpop.f32.mrf.mxu2  ;;  %v3116_v62 = vpop.f32.mrf.mxu3  ;;  %v6555_v35 = vld [vmem:[%s11387_s10 + $0x1ac] sm:$0xf0]  ;;  %v6414_v53 = vor.u32 %v7457_v47, %v6413_v34  ;;  %v6947_v34 = vld [vmem:[%s11387_s10 + $0x4bc] sm:$0xf0]  ;;  %v7034_v47 = vor.u32 %v7608_v27, %v7031_v33 }
 0x340   :  { %v3104_v2 = vadd.f32 %v3103_v60, %v2926_v38  ;;  %v3117_v22 = vadd.f32 %v3116_v62, %v2927_v45  ;;  %v7576_v38 = vld [vmem:[%s11387_s10 + $0x448] sm:$0xf0]  ;;  %v7489_v45 = vld [vmem:[%s11387_s10 + $0x194] sm:$0xf]  ;;  %v6609_v60 = vld [vmem:[%s11387_s10 + $0x200] sm:$0xf] }
 0x341   :  { %4307 = vmatmul.bf16.vlgmr.msrb.gmra.mxu0 %v10530_v55  ;;  %7047 = vmatmul.msk.bf16.vlgmr.msra.gmra.mxu1 %vm1260_vm0, %v10532_v58  ;;  %v7506_v62 = vld [vmem:[%s11387_s10 + $0x218] sm:$0xf0]  ;;  %v6890_v39 = vor.u32 %v7576_v38, %v6889_v36  ;;  %v6558_v0 = vor.u32 %v7489_v45, %v6555_v35  ;;  %v7493_v36 = vld [vmem:[%s11387_s10 + $0x1b0] sm:$0xf0]  ;;  %v7524_v35 = vld [vmem:[%s11387_s10 + $0x2ac] sm:$0xf] }
 0x342   :  { %v3146_v43 = vmax.f32 %v3104_v2, 0.0  ;;  %v3147_v50 = vmax.f32 %v3117_v22, 0.0  ;;  %4377 = vmatpush.bf16.msrb.mxu0 %v6554_v37  ;;  %4390 = vmatpush.bf16.msra.mxu1 %v6778_v51  ;;  %v3131_v6 = vpop.f32.mrf.mxu0  ;;  %v3144_v9 = vpop.f32.mrf.mxu1  ;;  %v6638_v37 = vor.u32 %v7513_v41, %v6637_v48  ;;  %v6385_v51 = vld [vmem:[%s11387_s10 + $0x40] sm:$0xf]  ;;  %v7569_v2 = vld [vmem:[%s11387_s10 + $0x410] sm:$0xf0]  ;;  %v6610_v4 = vor.u32 %v7506_v62, %v6609_v60 }
 0x343   :  { %v7482_v22 = vld [vmem:[%s11387_s10 + $0x15c] sm:$0xf]  ;;  %v6386_v3 = vor.u32 %v7450_v52, %v6385_v51  ;;  %v7499_v6 = vld [vmem:[%s11387_s10 + $0x1e0] sm:$0xf0]  ;;  %v7545_v9 = vld [vmem:[%s11387_s10 + $0x354] sm:$0xf] }
 0x344   :  { %v10570_v56 = vpack.c.bf16 %v3146_v43, %v3146_v43  ;;  %v10572_v14 = vpack.c.bf16 %v3147_v50, %v3147_v50  ;;  %v7443_v43 = vld [vmem:[%s11387_s10 + $0x20] sm:$0xf0]  ;;  %v6581_v50 = vld [vmem:[%s11387_s10 + $0x1c8] sm:$0xf]  ;;  %v6530_v11 = vor.u32 %v7482_v22, %v6527_v59  ;;  %v7461_v48 = vld [vmem:[%s11387_s10 + $0xb4] sm:$0xf] }
 0x345   :  { %v6358_v18 = vor.u32 %v7443_v43, %v6357_v5  ;;  %v6443_v41 = vld [vmem:[%s11387_s10 + $0xcc] sm:$0xf0]  ;;  %v6919_v51 = vld [vmem:[%s11387_s10 + $0x484] sm:$0xf0]  ;;  %v7454_v62 = vld [vmem:[%s11387_s10 + $0x7c] sm:$0xf] }
 0x346   :  { %4378 = vmatpush.bf16.msrb.mxu0 %v6526_v49  ;;  %4391 = vmatpush.bf16.msra.mxu1 %v6750_v10  ;;  %v6779_v49 = vld [vmem:[%s11387_s10 + $0x36c] sm:$0xf0]  ;;  %v6862_v10 = vor.u32 %v7569_v2, %v6861_v1  ;;  %v6446_v52 = vor.u32 %v7461_v48, %v6443_v41  ;;  %v7486_v1 = vld [vmem:[%s11387_s10 + $0x178] sm:$0xf0]  ;;  %v7517_v59 = vld [vmem:[%s11387_s10 + $0x274] sm:$0xf] }
 0x347   :  { %4281 = vmatmul.bf16.vlgmr.msra.gmra.mxu2 %v10570_v56  ;;  %4294 = vmatmul.bf16.vlgmr.msrb.gmra.mxu3 %v10572_v14  ;;  %v3105_v21 = vpop.f32.mrf.mxu2  ;;  %v3118_v46 = vpop.f32.mrf.mxu3  ;;  %v6891_v5 = vld [vmem:[%s11387_s10 + $0x44c] sm:$0xf0]  ;;  %v6807_v48 = vld [vmem:[%s11387_s10 + $0x3a4] sm:$0xf0]  ;;  %v7009_v41 = vld [vmem:[%s11387_s10 + $0x518] sm:$0xf] }
 0x348   :  { %4403 = vmatpush.bf16.msra.mxu2 %v7002_v15  ;;  %4423 = vmatpush.bf16.msrb.mxu3 %v7030_v16  ;;  %v7562_v15 = vld [vmem:[%s11387_s10 + $0x3d8] sm:$0xf0]  ;;  %v7475_v16 = vld [vmem:[%s11387_s10 + $0x124] sm:$0xf]  ;;  %v6751_v46 = vld [vmem:[%s11387_s10 + $0x334] sm:$0xf0] }
 0x349   :  { %v7538_v21 = vld [vmem:[%s11387_s10 + $0x31c] sm:$0xf]  ;;  %v6834_v23 = vor.u32 %v7562_v15, %v6833_v61  ;;  %v6502_v7 = vor.u32 %v7475_v16, %v6499_v17  ;;  %v6639_v61 = vld [vmem:[%s11387_s10 + $0x254] sm:$0xf0] }
 0x34a   :  { %4379 = vmatpush.bf16.msrb.mxu0 %v6498_v8  ;;  %4392 = vmatpush.bf16.msra.mxu1 %v6722_v20  ;;  %v6582_v8 = vor.u32 %v7499_v6, %v6581_v50  ;;  %v6782_v20 = vor.u32 %v7545_v9, %v6779_v49  ;;  %v6754_v19 = vor.u32 %v7538_v21, %v6751_v46  ;;  %v7447_v6 = vld [vmem:[%s11387_s10 + $0x44] sm:$0xf]  ;;  %v6387_v9 = vld [vmem:[%s11387_s10 + $0x5c] sm:$0xf0]  ;;  %v6505_v49 = vld [vmem:[%s11387_s10 + $0x128] sm:$0xf] }
 0x34b   :  { %v7566_v15 = vld [vmem:[%s11387_s10 + $0x3fc] sm:$0xf]  ;;  %v6863_v16 = vld [vmem:[%s11387_s10 + $0x414] sm:$0xf0]  ;;  %v6390_v17 = vor.u32 %v7447_v6, %v6387_v9  ;;  %v7472_v21 = vld [vmem:[%s11387_s10 + $0x108] sm:$0xf0]  ;;  %v6642_v46 = vor.u32 %v7510_v12, %v6639_v61 }
 0x34c   :  { %4404 = vmatpush.bf16.msra.mxu2 %v6974_v25  ;;  %v6975_v25 = vld [vmem:[%s11387_s10 + $0x4f4] sm:$0xf0]  ;;  %v7528_v6 = vld [vmem:[%s11387_s10 + $0x2c8] sm:$0xf0]  ;;  %v6953_v12 = vld [vmem:[%s11387_s10 + $0x4a8] sm:$0xf] }
 0x34d   :  { %v6978_v54 = vor.u32 %v7594_v24, %v6975_v25  ;;  %v7549_v24 = vld [vmem:[%s11387_s10 + $0x370] sm:$0xf0]  ;;  %v7503_v25 = vld [vmem:[%s11387_s10 + $0x204] sm:$0xf] }
 0x34e   :  { %4380 = vmatpush.bf16.msrb.mxu0 %v6470_v28  ;;  %4393 = vmatpush.bf16.msra.mxu1 %v6694_v29  ;;  %v7468_v28 = vld [vmem:[%s11387_s10 + $0xec] sm:$0xf]  ;;  %v6471_v29 = vld [vmem:[%s11387_s10 + $0x104] sm:$0xf0]  ;;  %v7591_v61 = vld [vmem:[%s11387_s10 + $0x4c0] sm:$0xf0] }
 0x34f   :  { %v6474_v30 = vor.u32 %v7468_v28, %v6471_v29  ;;  %v6835_v28 = vld [vmem:[%s11387_s10 + $0x3dc] sm:$0xf0] }
 0x350   :  { %4405 = vmatpush.bf16.msra.mxu2 %v6946_v40  ;;  %v7531_v40 = vld [vmem:[%s11387_s10 + $0x2e4] sm:$0xf] }
 0x351   :  { %4333 = vmatmul.bf16.vlgmr.msrb.gmra.mxu1 %v10570_v56  ;;  %7048 = vmatmul.msk.bf16.vlgmr.msra.gmra.mxu0 %vm1260_vm0, %v10532_v58 }
 0x352   :  { %4381 = vmatpush.bf16.msrb.mxu0 %v6442_v44  ;;  %4394 = vmatpush.bf16.msra.mxu1 %v6666_v32  ;;  %v6723_v44 = vld [vmem:[%s11387_s10 + $0x2fc] sm:$0xf0]  ;;  %v7587_v32 = vld [vmem:[%s11387_s10 + $0x4a4] sm:$0xf] }
 0x353   :  { %v6726_v38 = vor.u32 %v7531_v40, %v6723_v44  ;;  %v6950_v45 = vor.u32 %v7587_v32, %v6947_v34  ;;  %v6757_v40 = vld [vmem:[%s11387_s10 + $0x320] sm:$0xf]  ;;  %v7542_v44 = vld [vmem:[%s11387_s10 + $0x338] sm:$0xf0]  ;;  %v7496_v32 = vld [vmem:[%s11387_s10 + $0x1cc] sm:$0xf] }
 0x354   :  { %4406 = vmatpush.bf16.msra.mxu2 %v6918_v63  ;;  %v6561_v63 = vld [vmem:[%s11387_s10 + $0x198] sm:$0xf]  ;;  %v6583_v34 = vld [vmem:[%s11387_s10 + $0x1e4] sm:$0xf0] }
 0x355   :  { %v6562_v60 = vor.u32 %v7493_v36, %v6561_v63  ;;  %v7605_v36 = vld [vmem:[%s11387_s10 + $0x530] sm:$0xf0] }
 0x356   :  { %4382 = vmatpush.bf16.msrb.mxu0 %v6414_v53  ;;  %4395 = vmatpush.bf16.msra.mxu1 %v6638_v37  ;;  %v6695_v53 = vld [vmem:[%s11387_s10 + $0x2c4] sm:$0xf0]  ;;  %v7580_v37 = vld [vmem:[%s11387_s10 + $0x46c] sm:$0xf] }
 0x357   :  { %4346 = vmatmul.bf16.vlgmr.msrb.gmra.mxu2 %v10572_v14  ;;  %4359 = vmatmul.bf16.vlgmr.msra.gmra.mxu3 %v10530_v55  ;;  %v6698_v2 = vor.u32 %v7524_v35, %v6695_v53  ;;  %v6922_v22 = vor.u32 %v7580_v37, %v6919_v51  ;;  %v6758_v35 = vor.u32 %v7542_v44, %v6757_v40  ;;  %v6421_v53 = vld [vmem:[%s11387_s10 + $0x80] sm:$0xf]  ;;  %v7458_v37 = vld [vmem:[%s11387_s10 + $0x98] sm:$0xf0] }
 0x358   :  { %4407 = vmatpush.bf16.msra.mxu2 %v6890_v39  ;;  %4429 = vmatpush.bf16.msra.mxu3 %v6558_v0  ;;  %v6415_v39 = vld [vmem:[%s11387_s10 + $0x94] sm:$0xf0]  ;;  %v6533_v0 = vld [vmem:[%s11387_s10 + $0x160] sm:$0xf]  ;;  %v6586_v51 = vor.u32 %v7496_v32, %v6583_v34 }
 0x359   :  { %v6418_v43 = vor.u32 %v7454_v62, %v6415_v39  ;;  %v6534_v50 = vor.u32 %v7486_v1, %v6533_v0  ;;  %v7535_v62 = vld [vmem:[%s11387_s10 + $0x300] sm:$0xf0]  ;;  %v7010_v39 = vor.u32 %v7605_v36, %v7009_v41  ;;  %v7490_v1 = vld [vmem:[%s11387_s10 + $0x19c] sm:$0xf]  ;;  %v6897_v34 = vld [vmem:[%s11387_s10 + $0x438] sm:$0xf] }
 0x35a   :  { %4383 = vmatpush.bf16.msrb.mxu0 %v6386_v3  ;;  %4396 = vmatpush.bf16.msra.mxu1 %v6610_v4  ;;  %v6667_v3 = vld [vmem:[%s11387_s10 + $0x28c] sm:$0xf0]  ;;  %v7573_v4 = vld [vmem:[%s11387_s10 + $0x434] sm:$0xf]  ;;  %v7507_v41 = vld [vmem:[%s11387_s10 + $0x220] sm:$0xf0] }
 0x35b   :  { %v6894_v57 = vor.u32 %v7573_v4, %v6891_v5  ;;  %v6393_v5 = vld [vmem:[%s11387_s10 + $0x48] sm:$0xf] }
 0x35c   :  { %4408 = vmatpush.bf16.msra.mxu2 %v6862_v10  ;;  %4430 = vmatpush.bf16.msra.mxu3 %v6530_v11  ;;  %v7479_v10 = vld [vmem:[%s11387_s10 + $0x140] sm:$0xf0]  ;;  %v6670_v11 = vor.u32 %v7517_v59, %v6667_v3  ;;  %v6981_v59 = vld [vmem:[%s11387_s10 + $0x4e0] sm:$0xf]  ;;  %v7598_v3 = vld [vmem:[%s11387_s10 + $0x4f8] sm:$0xf0] }
 0x35d   :  { %v6731_v36 = vld [vmem:[%s11387_s10 + $0x304] sm:$0xf0] }
 0x35e   :  { %4384 = vmatpush.bf16.msrb.mxu0 %v6358_v18  ;;  %4397 = vmatpush.bf16.msra.mxu1 %v6582_v8  ;;  %v6506_v18 = vor.u32 %v7479_v10, %v6505_v49  ;;  %v7440_v8 = vld [vmem:[%s11387_s10 + $0xc] sm:$0xf]  ;;  %v6982_v49 = vor.u32 %v7598_v3, %v6981_v59  ;;  %v7483_v10 = vld [vmem:[%s11387_s10 + $0x164] sm:$0xf]  ;;  %v7011_v59 = vld [vmem:[%s11387_s10 + $0x534] sm:$0xf0] }
 0x360   :  { %4409 = vmatpush.bf16.msra.mxu2 %v6834_v23  ;;  %4431 = vmatpush.bf16.msra.mxu3 %v6502_v7  ;;  %v6866_v23 = vor.u32 %v7566_v15, %v6863_v16  ;;  %v6785_v7 = vld [vmem:[%s11387_s10 + $0x358] sm:$0xf]  ;;  %v6365_v16 = vld [vmem:[%s11387_s10 + $0x10] sm:$0xf] }
 0x361   :  { %4385 = vmatmul.bf16.vlgmr.msrb.gmra.mxu0 %v10570_v56  ;;  %4398 = vmatmul.bf16.vlgmr.msra.gmra.mxu1 %v10572_v14  ;;  %v6786_v33 = vor.u32 %v7549_v24, %v6785_v7  ;;  %v7476_v7 = vld [vmem:[%s11387_s10 + $0x12c] sm:$0xf]  ;;  %v6507_v24 = vld [vmem:[%s11387_s10 + $0x144] sm:$0xf0] }
 0x362   :  { %4442 = vmatpush.bf16.msra.mxu0 %v6782_v20  ;;  %4455 = vmatpush.bf16.msrb.mxu1 %v7006_v13  ;;  %v6359_v20 = vld [vmem:[%s11387_s10 + $0x24] sm:$0xf0]  ;;  %v6477_v13 = vld [vmem:[%s11387_s10 + $0xf0] sm:$0xf] }
 0x363   :  { %v6362_v29 = vor.u32 %v7440_v8, %v6359_v20  ;;  %v6478_v27 = vor.u32 %v7472_v21, %v6477_v13  ;;  %v7521_v8 = vld [vmem:[%s11387_s10 + $0x290] sm:$0xf0]  ;;  %v7546_v20 = vld [vmem:[%s11387_s10 + $0x35c] sm:$0xf]  ;;  %v6787_v13 = vld [vmem:[%s11387_s10 + $0x374] sm:$0xf0] }
 0x364   :  { %4410 = vmatpush.bf16.msra.mxu2 %v6806_v42  ;;  %4432 = vmatpush.bf16.msra.mxu3 %v6474_v30  ;;  %v6614_v42 = vor.u32 %v7503_v25, %v6611_v26  ;;  %v6838_v30 = vor.u32 %v7559_v31, %v6835_v28  ;;  %v6790_v26 = vor.u32 %v7546_v20, %v6787_v13  ;;  %v6925_v31 = vld [vmem:[%s11387_s10 + $0x470] sm:$0xf]  ;;  %v7584_v28 = vld [vmem:[%s11387_s10 + $0x488] sm:$0xf0]  ;;  %v7511_v13 = vld [vmem:[%s11387_s10 + $0x244] sm:$0xf] }
 0x365   :  { %v6926_v40 = vor.u32 %v7584_v28, %v6925_v31  ;;  %v7556_v20 = vld [vmem:[%s11387_s10 + $0x3a8] sm:$0xf0]  ;;  %v7441_v28 = vld [vmem:[%s11387_s10 + $0x14] sm:$0xf] }
 0x366   :  { %4443 = vmatpush.bf16.msra.mxu0 %v6754_v19  ;;  %4456 = vmatpush.bf16.msrb.mxu1 %v6978_v54  ;;  %v6449_v19 = vld [vmem:[%s11387_s10 + $0xb8] sm:$0xf]  ;;  %v7465_v54 = vld [vmem:[%s11387_s10 + $0xd0] sm:$0xf0] }
 0x367   :  { %4411 = vmatmul.bf16.vlgmr.msra.gmra.mxu2 %v10530_v55  ;;  %7049 = vmatmul.msk.bf16.vlgmr.msrb.gmra.mxu3 %vm1260_vm0, %v10532_v58  ;;  %v6450_v63 = vor.u32 %v7465_v54, %v6449_v19  ;;  %v6759_v19 = vld [vmem:[%s11387_s10 + $0x33c] sm:$0xf0]  ;;  %v6510_v54 = vor.u32 %v7476_v7, %v6507_v24  ;;  %v7039_v7 = vld [vmem:[%s11387_s10 + $0x56c] sm:$0xf0] }
 0x368   :  { %4475 = vmatpush.bf16.msrb.mxu2 %v7034_v47  ;;  %4433 = vmatpush.bf16.msra.mxu3 %v6446_v52  ;;  %v7552_v47 = vld [vmem:[%s11387_s10 + $0x38c] sm:$0xf] }
 0x369   :  { %v6810_v52 = vor.u32 %v7552_v47, %v6807_v48  ;;  %v7577_v47 = vld [vmem:[%s11387_s10 + $0x450] sm:$0xf0]  ;;  %v6617_v48 = vld [vmem:[%s11387_s10 + $0x208] sm:$0xf] }
 0x36a   :  { %4444 = vmatpush.bf16.msra.mxu0 %v6726_v38  ;;  %4457 = vmatpush.bf16.msrb.mxu1 %v6950_v45  ;;  %v7037_v38 = vld [vmem:[%s11387_s10 + $0x550] sm:$0xf]  ;;  %v7612_v45 = vld [vmem:[%s11387_s10 + $0x568] sm:$0xf0] }
 0x36b   :  { %v7038_v0 = vor.u32 %v7612_v45, %v7037_v38  ;;  %v6898_v45 = vor.u32 %v7577_v47, %v6897_v34  ;;  %v7581_v47 = vld [vmem:[%s11387_s10 + $0x474] sm:$0xf] }
 0x36c   :  { %4481 = vmatpush.bf16.msra.mxu2 %v6562_v60  ;;  %4434 = vmatpush.bf16.msra.mxu3 %v6418_v43  ;;  %v6729_v60 = vld [vmem:[%s11387_s10 + $0x2e8] sm:$0xf]  ;;  %v7451_v43 = vld [vmem:[%s11387_s10 + $0x60] sm:$0xf0] }
 0x36d   :  { %v6730_v4 = vor.u32 %v7535_v62, %v6729_v60  ;;  %v7570_v60 = vld [vmem:[%s11387_s10 + $0x418] sm:$0xf0]  ;;  %v6589_v62 = vld [vmem:[%s11387_s10 + $0x1d0] sm:$0xf] }
 0x36e   :  { %4445 = vmatpush.bf16.msra.mxu0 %v6698_v2  ;;  %4458 = vmatpush.bf16.msrb.mxu1 %v6922_v22  ;;  %v6422_v2 = vor.u32 %v7458_v37, %v6421_v53  ;;  %v6563_v22 = vld [vmem:[%s11387_s10 + $0x1b4] sm:$0xf0]  ;;  %v6618_v37 = vor.u32 %v7507_v41, %v6617_v48  ;;  %v6927_v48 = vld [vmem:[%s11387_s10 + $0x48c] sm:$0xf0] }
 0x36f   :  { %v6566_v9 = vor.u32 %v7490_v1, %v6563_v22  ;;  %v6451_v53 = vld [vmem:[%s11387_s10 + $0xd4] sm:$0xf0]  ;;  %v6703_v1 = vld [vmem:[%s11387_s10 + $0x2cc] sm:$0xf0]  ;;  %v7602_v22 = vld [vmem:[%s11387_s10 + $0x51c] sm:$0xf] }
 0x370   :  { %4482 = vmatpush.bf16.msra.mxu2 %v6534_v50  ;;  %4435 = vmatpush.bf16.msra.mxu3 %v6390_v17  ;;  %v6701_v50 = vld [vmem:[%s11387_s10 + $0x2b0] sm:$0xf]  ;;  %v7444_v17 = vld [vmem:[%s11387_s10 + $0x28] sm:$0xf0] }
 0x371   :  { %v6702_v15 = vor.u32 %v7528_v6, %v6701_v50  ;;  %v6841_v6 = vld [vmem:[%s11387_s10 + $0x3c8] sm:$0xf] }
 0x372   :  { %4446 = vmatpush.bf16.msra.mxu0 %v6670_v11  ;;  %4459 = vmatpush.bf16.msrb.mxu1 %v6894_v57  ;;  %v6394_v11 = vor.u32 %v7451_v43, %v6393_v5  ;;  %v6535_v57 = vld [vmem:[%s11387_s10 + $0x17c] sm:$0xf0] }
 0x373   :  { %v6538_v21 = vor.u32 %v7483_v10, %v6535_v57  ;;  %v6423_v5 = vld [vmem:[%s11387_s10 + $0x9c] sm:$0xf0]  ;;  %v7518_v10 = vld [vmem:[%s11387_s10 + $0x27c] sm:$0xf] }
 0x374   :  { %4483 = vmatpush.bf16.msra.mxu2 %v6506_v18  ;;  %4436 = vmatpush.bf16.msra.mxu3 %v6362_v29  ;;  %v6673_v18 = vld [vmem:[%s11387_s10 + $0x278] sm:$0xf]  ;;  %v6645_v29 = vld [vmem:[%s11387_s10 + $0x240] sm:$0xf] }
 0x375   :  { %v6674_v25 = vor.u32 %v7521_v8, %v6673_v18  ;;  %v6813_v8 = vld [vmem:[%s11387_s10 + $0x390] sm:$0xf] }
 0x376   :  { %4447 = vmatpush.bf16.msra.mxu0 %v6642_v46  ;;  %4460 = vmatpush.bf16.msrb.mxu1 %v6866_v23  ;;  %v6954_v46 = vor.u32 %v7591_v61, %v6953_v12  ;;  %v6366_v23 = vor.u32 %v7444_v17, %v6365_v16  ;;  %v7595_v12 = vld [vmem:[%s11387_s10 + $0x4e4] sm:$0xf]  ;;  %v6983_v61 = vld [vmem:[%s11387_s10 + $0x4fc] sm:$0xf0]  ;;  %v7448_v16 = vld [vmem:[%s11387_s10 + $0x4c] sm:$0xf]  ;;  %v6814_v31 = vor.u32 %v7556_v20, %v6813_v8 }
 0x377   :  { %4437 = vmatmul.bf16.vlgmr.msra.gmra.mxu3 %v10570_v56  ;;  %7050 = vmatmul.msk.bf16.vlgmr.msrb.gmra.mxu2 %vm1260_vm0, %v10532_v58  ;;  %v6395_v17 = vld [vmem:[%s11387_s10 + $0x64] sm:$0xf0]  ;;  %v7560_v8 = vld [vmem:[%s11387_s10 + $0x3cc] sm:$0xf] }
 0x378   :  { %4484 = vmatpush.bf16.msra.mxu2 %v6478_v27  ;;  %4494 = vmatpush.bf16.msrb.mxu3 %v6786_v33  ;;  %v7514_v27 = vld [vmem:[%s11387_s10 + $0x258] sm:$0xf0]  ;;  %v7539_v33 = vld [vmem:[%s11387_s10 + $0x324] sm:$0xf]  ;;  %v6398_v24 = vor.u32 %v7448_v16, %v6395_v17  ;;  %v6709_v17 = vld [vmem:[%s11387_s10 + $0x2b8] sm:$0xf] }
 0x379   :  { %v6646_v44 = vor.u32 %v7514_v27, %v6645_v29  ;;  %v6762_v32 = vor.u32 %v7539_v33, %v6759_v19  ;;  %v6367_v29 = vld [vmem:[%s11387_s10 + $0x2c] sm:$0xf0]  ;;  %v6569_v27 = vld [vmem:[%s11387_s10 + $0x1a0] sm:$0xf]  ;;  %v6843_v20 = vld [vmem:[%s11387_s10 + $0x3e4] sm:$0xf0] }
 0x37a   :  { %4448 = vmatpush.bf16.msra.mxu0 %v6614_v42  ;;  %4461 = vmatpush.bf16.msrb.mxu1 %v6838_v30  ;;  %v7469_v42 = vld [vmem:[%s11387_s10 + $0xf4] sm:$0xf]  ;;  %v6479_v30 = vld [vmem:[%s11387_s10 + $0x10c] sm:$0xf0]  ;;  %v6370_v34 = vor.u32 %v7441_v28, %v6367_v29  ;;  %v7522_v28 = vld [vmem:[%s11387_s10 + $0x298] sm:$0xf0] }
 0x37b   :  { %v6482_v38 = vor.u32 %v7469_v42, %v6479_v30  ;;  %v7550_v42 = vld [vmem:[%s11387_s10 + $0x378] sm:$0xf0]  ;;  %v7553_v29 = vld [vmem:[%s11387_s10 + $0x394] sm:$0xf] }
 0x37c   :  { %4485 = vmatpush.bf16.msra.mxu2 %v6450_v63  ;;  %4495 = vmatpush.bf16.msrb.mxu3 %v6758_v35  ;;  %v7532_v63 = vld [vmem:[%s11387_s10 + $0x2ec] sm:$0xf]  ;;  %v7462_v35 = vld [vmem:[%s11387_s10 + $0xbc] sm:$0xf] }
 0x37e   :  { %4449 = vmatpush.bf16.msra.mxu0 %v6586_v51  ;;  %4462 = vmatpush.bf16.msrb.mxu1 %v6810_v52  ;;  %v6734_v51 = vor.u32 %v7532_v63, %v6731_v36  ;;  %v6869_v52 = vld [vmem:[%s11387_s10 + $0x400] sm:$0xf]  ;;  %v6541_v36 = vld [vmem:[%s11387_s10 + $0x168] sm:$0xf] }
 0x37f   :  { %v6870_v3 = vor.u32 %v7570_v60, %v6869_v52  ;;  %v6591_v52 = vld [vmem:[%s11387_s10 + $0x1ec] sm:$0xf0]  ;;  %v7574_v60 = vld [vmem:[%s11387_s10 + $0x43c] sm:$0xf] }
 0x380   :  { %4486 = vmatpush.bf16.msra.mxu2 %v6422_v2  ;;  %4496 = vmatpush.bf16.msrb.mxu3 %v6730_v4  ;;  %v6454_v2 = vor.u32 %v7462_v35, %v6451_v53  ;;  %v7455_v4 = vld [vmem:[%s11387_s10 + $0x84] sm:$0xf]  ;;  %v6765_v35 = vld [vmem:[%s11387_s10 + $0x328] sm:$0xf] }
 0x381   :  { %4450 = vmatmul.bf16.vlgmr.msra.gmra.mxu0 %v10572_v14  ;;  %4463 = vmatmul.bf16.vlgmr.msrb.gmra.mxu1 %v10530_v55  ;;  %v6426_v57 = vor.u32 %v7455_v4, %v6423_v5  ;;  %v7543_v53 = vld [vmem:[%s11387_s10 + $0x340] sm:$0xf0] }
 0x382   :  { %4507 = vmatpush.bf16.msrb.mxu0 %v7010_v39  ;;  %4527 = vmatpush.bf16.msra.mxu1 %v7038_v0  ;;  %v7500_v39 = vld [vmem:[%s11387_s10 + $0x1e8] sm:$0xf0]  ;;  %v7525_v0 = vld [vmem:[%s11387_s10 + $0x2b4] sm:$0xf] }
 0x383   :  { %v6590_v43 = vor.u32 %v7500_v39, %v6589_v62  ;;  %v6706_v50 = vor.u32 %v7525_v0, %v6703_v1  ;;  %v6899_v62 = vld [vmem:[%s11387_s10 + $0x454] sm:$0xf0]  ;;  %v7017_v39 = vld [vmem:[%s11387_s10 + $0x520] sm:$0xf]  ;;  %v7606_v0 = vld [vmem:[%s11387_s10 + $0x538] sm:$0xf0] }
 0x384   :  { %4487 = vmatpush.bf16.msra.mxu2 %v6394_v11  ;;  %4497 = vmatpush.bf16.msrb.mxu3 %v6702_v15  ;;  %v6675_v11 = vld [vmem:[%s11387_s10 + $0x294] sm:$0xf0]  ;;  %v6902_v4 = vor.u32 %v7574_v60, %v6899_v62  ;;  %v7018_v5 = vor.u32 %v7606_v0, %v7017_v39  ;;  %v7508_v60 = vld [vmem:[%s11387_s10 + $0x228] sm:$0xf0]  ;;  %v6877_v62 = vld [vmem:[%s11387_s10 + $0x408] sm:$0xf] }
 0x385   :  { %v6678_v18 = vor.u32 %v7518_v10, %v6675_v11  ;;  %v7599_v10 = vld [vmem:[%s11387_s10 + $0x500] sm:$0xf0] }
 0x386   :  { %4533 = vmatpush.bf16.msrb.mxu1 %v6566_v9  ;;  %4508 = vmatpush.bf16.msrb.mxu0 %v6982_v49  ;;  %v7563_v9 = vld [vmem:[%s11387_s10 + $0x3e0] sm:$0xf0]  ;;  %v7014_v49 = vor.u32 %v7602_v22, %v7011_v59  ;;  %v6513_v59 = vld [vmem:[%s11387_s10 + $0x130] sm:$0xf] }
 0x387   :  { %v6842_v15 = vor.u32 %v7563_v9, %v6841_v6  ;;  %v7567_v6 = vld [vmem:[%s11387_s10 + $0x404] sm:$0xf]  ;;  %v6871_v9 = vld [vmem:[%s11387_s10 + $0x41c] sm:$0xf0] }
 0x388   :  { %4488 = vmatpush.bf16.msra.mxu2 %v6366_v23  ;;  %4498 = vmatpush.bf16.msrb.mxu3 %v6674_v25  ;;  %v7609_v23 = vld [vmem:[%s11387_s10 + $0x554] sm:$0xf]  ;;  %v7588_v25 = vld [vmem:[%s11387_s10 + $0x4ac] sm:$0xf]  ;;  %v7571_v39 = vld [vmem:[%s11387_s10 + $0x420] sm:$0xf0] }
 0x389   :  { %v7042_v19 = vor.u32 %v7609_v23, %v7039_v7  ;;  %v6457_v7 = vld [vmem:[%s11387_s10 + $0xc0] sm:$0xf] }
 0x38a   :  { %4534 = vmatpush.bf16.msrb.mxu1 %v6538_v21  ;;  %4509 = vmatpush.bf16.msrb.mxu0 %v6954_v46  ;;  %v6986_v21 = vor.u32 %v7595_v12, %v6983_v61  ;;  %v6647_v46 = vld [vmem:[%s11387_s10 + $0x25c] sm:$0xf0]  ;;  %v6485_v12 = vld [vmem:[%s11387_s10 + $0xf8] sm:$0xf]  ;;  %v7473_v61 = vld [vmem:[%s11387_s10 + $0x110] sm:$0xf0] }
 0x38b   :  { %4489 = vmatmul.bf16.vlgmr.msra.gmra.mxu2 %v10570_v56  ;;  %v6650_v33 = vor.u32 %v7511_v13, %v6647_v46  ;;  %v6961_v13 = vld [vmem:[%s11387_s10 + $0x4b0] sm:$0xf]  ;;  %v6486_v46 = vor.u32 %v7473_v61, %v6485_v12  ;;  %v11311_v61 = vld [vmem:[%s11388_s11] sm:$0xff] }
 0x38c   :  { %4546 = vmatpush.bf16.msrb.mxu2 %v6790_v26  ;;  %4499 = vmatpush.bf16.msrb.mxu3 %v6646_v44  ;;  %v6955_v26 = vld [vmem:[%s11387_s10 + $0x4c4] sm:$0xf0]  ;;  %v7504_v44 = vld [vmem:[%s11387_s10 + $0x20c] sm:$0xf] }
 0x38d   :  { %v6958_v30 = vor.u32 %v7588_v25, %v6955_v26  ;;  %v6846_v25 = vor.u32 %v7560_v8, %v6843_v20 }
 0x38e   :  { %4535 = vmatpush.bf16.msrb.mxu1 %v6510_v54  ;;  %4510 = vmatpush.bf16.msrb.mxu0 %v6926_v40  ;;  %v7494_v54 = vld [vmem:[%s11387_s10 + $0x1b8] sm:$0xf0]  ;;  %v6793_v40 = vld [vmem:[%s11387_s10 + $0x360] sm:$0xf] }
 0x38f   :  { %v6570_v41 = vor.u32 %v7494_v54, %v6569_v27  ;;  %v6794_v63 = vor.u32 %v7550_v42, %v6793_v40  ;;  %v6815_v27 = vld [vmem:[%s11387_s10 + $0x3ac] sm:$0xf0]  ;;  %v7045_v40 = vld [vmem:[%s11387_s10 + $0x558] sm:$0xf]  ;;  %v7613_v42 = vld [vmem:[%s11387_s10 + $0x570] sm:$0xf0] }
 0x390   :  { %4547 = vmatpush.bf16.msrb.mxu2 %v6762_v32  ;;  %4500 = vmatpush.bf16.msrb.mxu3 %v6618_v37  ;;  %v6619_v32 = vld [vmem:[%s11387_s10 + $0x224] sm:$0xf0]  ;;  %v6930_v37 = vor.u32 %v7581_v47, %v6927_v48 }
 0x391   :  { %7051 = vmatmul.msk.bf16.vlgmr.msra.gmra.mxu1 %vm1260_vm0, %v10532_v58  ;;  %v6653_v48 = vld [vmem:[%s11387_s10 + $0x248] sm:$0xf] }
 0x392   :  { %4536 = vmatpush.bf16.msrb.mxu1 %v6482_v38  ;;  %4511 = vmatpush.bf16.msrb.mxu0 %v6898_v45  ;;  %v6622_v38 = vor.u32 %v7504_v44, %v6619_v32  ;;  %v7487_v45 = vld [vmem:[%s11387_s10 + $0x180] sm:$0xf0]  ;;  %v6429_v44 = vld [vmem:[%s11387_s10 + $0x88] sm:$0xf] }
 0x393   :  { %v6542_v1 = vor.u32 %v7487_v45, %v6541_v36  ;;  %v7459_v32 = vld [vmem:[%s11387_s10 + $0xa0] sm:$0xf0]  ;;  %v7578_v36 = vld [vmem:[%s11387_s10 + $0x458] sm:$0xf0] }
 0x394   :  { %4548 = vmatpush.bf16.msrb.mxu2 %v6734_v51  ;;  %4501 = vmatpush.bf16.msrb.mxu3 %v6590_v43  ;;  %v7497_v51 = vld [vmem:[%s11387_s10 + $0x1d4] sm:$0xf]  ;;  %v6737_v43 = vld [vmem:[%s11387_s10 + $0x2f0] sm:$0xf]  ;;  %v6430_v45 = vor.u32 %v7459_v32, %v6429_v44 }
 0x395   :  { %v6594_v22 = vor.u32 %v7497_v51, %v6591_v52  ;;  %v6625_v52 = vld [vmem:[%s11387_s10 + $0x210] sm:$0xf] }
 0x396   :  { %4537 = vmatpush.bf16.msrb.mxu1 %v6454_v2  ;;  %4512 = vmatpush.bf16.msrb.mxu0 %v6870_v3  ;;  %v6766_v2 = vor.u32 %v7543_v53, %v6765_v35  ;;  %v7480_v3 = vld [vmem:[%s11387_s10 + $0x148] sm:$0xf0]  ;;  %v6401_v53 = vld [vmem:[%s11387_s10 + $0x50] sm:$0xf] }
 0x397   :  { %4502 = vmatmul.bf16.vlgmr.msrb.gmra.mxu3 %v10572_v14  ;;  %v6514_v11 = vor.u32 %v7480_v3, %v6513_v59  ;;  %v6878_v59 = vor.u32 %v7571_v39, %v6877_v62  ;;  %v6597_v3 = vld [vmem:[%s11387_s10 + $0x1d8] sm:$0xf] }
 0x398   :  { %4549 = vmatpush.bf16.msrb.mxu2 %v6706_v50  ;;  %4559 = vmatpush.bf16.msra.mxu3 %v7014_v49  ;;  %v7536_v50 = vld [vmem:[%s11387_s10 + $0x308] sm:$0xf0]  ;;  %v6989_v49 = vld [vmem:[%s11387_s10 + $0x4e8] sm:$0xf] }
 0x399   :  { %v6990_v16 = vor.u32 %v7599_v10, %v6989_v49  ;;  %v6821_v49 = vld [vmem:[%s11387_s10 + $0x398] sm:$0xf]  ;;  %v7557_v10 = vld [vmem:[%s11387_s10 + $0x3b0] sm:$0xf0] }
 0x39a   :  { %4538 = vmatpush.bf16.msrb.mxu1 %v6426_v57  ;;  %4513 = vmatpush.bf16.msrb.mxu0 %v6842_v15  ;;  %v6738_v57 = vor.u32 %v7536_v50, %v6737_v43  ;;  %v6874_v15 = vor.u32 %v7567_v6, %v6871_v9  ;;  %v7564_v43 = vld [vmem:[%s11387_s10 + $0x3e8] sm:$0xf0] }
 0x39c   :  { %4550 = vmatpush.bf16.msrb.mxu2 %v6678_v18  ;;  %4560 = vmatpush.bf16.msra.mxu3 %v6986_v21  ;;  %v7529_v18 = vld [vmem:[%s11387_s10 + $0x2d0] sm:$0xf0]  ;;  %v7592_v21 = vld [vmem:[%s11387_s10 + $0x4c8] sm:$0xf0] }
 0x39d   :  { %v6710_v23 = vor.u32 %v7529_v18, %v6709_v17  ;;  %v6962_v26 = vor.u32 %v7592_v21, %v6961_v13  ;;  %v3356_v17 = vperm.slane %v11311_v61, 0 }
 0x39e   :  { %4539 = vmatpush.bf16.msrb.mxu1 %v6398_v24  ;;  %4514 = vmatpush.bf16.msrb.mxu0 %v6814_v31  ;;  %v7466_v24 = vld [vmem:[%s11387_s10 + $0xd8] sm:$0xf0]  ;;  %v6681_v31 = vld [vmem:[%s11387_s10 + $0x280] sm:$0xf] }
 0x39f   :  { %v6458_v54 = vor.u32 %v7466_v24, %v6457_v7 }
 0x3a0   :  { %4551 = vmatpush.bf16.msrb.mxu2 %v6650_v33  ;;  %4561 = vmatpush.bf16.msra.mxu3 %v6958_v30  ;;  %v6933_v33 = vld [vmem:[%s11387_s10 + $0x478] sm:$0xf]  ;;  %v6682_v30 = vor.u32 %v7522_v28, %v6681_v31 }
 0x3a1   :  { %4515 = vmatmul.bf16.vlgmr.msrb.gmra.mxu0 %v10530_v55 }
 0x3a2   :  { %4579 = vmatpush.bf16.msra.mxu0 %v7042_v19  ;;  %4540 = vmatpush.bf16.msrb.mxu1 %v6370_v34  ;;  %v7585_v19 = vld [vmem:[%s11387_s10 + $0x490] sm:$0xf0]  ;;  %v6818_v34 = vor.u32 %v7553_v29, %v6815_v27 }
 0x3a3   :  { %v6934_v47 = vor.u32 %v7585_v19, %v6933_v33  ;;  %v3358_v33 = vperm.slane %v11311_v61, 2 }
 0x3a4   :  { %4552 = vmatpush.bf16.msrb.mxu2 %v6622_v38  ;;  %4562 = vmatpush.bf16.msra.mxu3 %v6930_v37  ;;  %v7046_v38 = vor.u32 %v7613_v42, %v7045_v40  ;;  %v7452_v37 = vld [vmem:[%s11387_s10 + $0x68] sm:$0xf0] }
 0x3a5   :  { %4541 = vmatmul.bf16.vlgmr.msrb.gmra.mxu1 %v10570_v56  ;;  %v6402_v0 = vor.u32 %v7452_v37, %v6401_v53 }
 0x3a6   :  { %4585 = vmatpush.bf16.msrb.mxu0 %v6570_v41  ;;  %4598 = vmatpush.bf16.msra.mxu1 %v6794_v63  ;;  %v7515_v41 = vld [vmem:[%s11387_s10 + $0x260] sm:$0xf0]  ;;  %v6905_v63 = vld [vmem:[%s11387_s10 + $0x440] sm:$0xf] }
 0x3a7   :  { %v6654_v35 = vor.u32 %v7515_v41, %v6653_v48  ;;  %v6906_v51 = vor.u32 %v7578_v36, %v6905_v63 }
 0x3a8   :  { %4553 = vmatpush.bf16.msrb.mxu2 %v6594_v22  ;;  %4563 = vmatpush.bf16.msra.mxu3 %v6902_v4  ;;  %v7445_v22 = vld [vmem:[%s11387_s10 + $0x30] sm:$0xf0] }
 0x3a9   :  { %v7501_v4 = vld [vmem:[%s11387_s10 + $0x1f0] sm:$0xf0] }
 0x3aa   :  { %4586 = vmatpush.bf16.msrb.mxu0 %v6542_v1  ;;  %4599 = vmatpush.bf16.msra.mxu1 %v6766_v2  ;;  %v6626_v1 = vor.u32 %v7508_v60, %v6625_v52  ;;  %v6373_v2 = vld [vmem:[%s11387_s10 + $0x18] sm:$0xf]  ;;  %v6598_v6 = vor.u32 %v7501_v4, %v6597_v3 }
 0x3ab   :  { %4554 = vmatmul.bf16.vlgmr.msrb.gmra.mxu2 %v10572_v14  ;;  %v6374_v50 = vor.u32 %v7445_v22, %v6373_v2 }
 0x3ac   :  { %4611 = vmatpush.bf16.msra.mxu2 %v7018_v5  ;;  %4564 = vmatpush.bf16.msra.mxu3 %v6874_v15  ;;  %v6849_v5 = vld [vmem:[%s11387_s10 + $0x3d0] sm:$0xf] }
 0x3ad   :  { %v6850_v9 = vor.u32 %v7564_v43, %v6849_v5 }
 0x3ae   :  { %4587 = vmatpush.bf16.msrb.mxu0 %v6514_v11  ;;  %4600 = vmatpush.bf16.msra.mxu1 %v6738_v57  ;;  %v6822_v11 = vor.u32 %v7557_v10, %v6821_v49 }
 0x3b0   :  { %4612 = vmatpush.bf16.msra.mxu2 %v6990_v16  ;;  %4565 = vmatpush.bf16.msra.mxu3 %v6846_v25 }
 0x3b1   :  { %7052 = vmatmul.msk.bf16.vlgmr.msra.gmra.mxu0 %vm1260_vm0, %v10532_v58 }
 0x3b2   :  { %4588 = vmatpush.bf16.msrb.mxu0 %v6486_v46  ;;  %4601 = vmatpush.bf16.msra.mxu1 %v6710_v23 }
 0x3b4   :  { %4613 = vmatpush.bf16.msra.mxu2 %v6962_v26  ;;  %4566 = vmatpush.bf16.msra.mxu3 %v6818_v34  ;;  %v3357_v26 = vperm.slane %v11311_v61, 1 }
 0x3b6   :  { %4589 = vmatpush.bf16.msrb.mxu0 %v6458_v54  ;;  %4602 = vmatpush.bf16.msra.mxu1 %v6682_v30 }
 0x3b7   :  { %4567 = vmatmul.bf16.vlgmr.msra.gmra.mxu3 %v10530_v55 }
 0x3b8   :  { %4614 = vmatpush.bf16.msra.mxu2 %v6934_v47  ;;  %4631 = vmatpush.bf16.msrb.mxu3 %v7046_v38 }
 0x3ba   :  { %4590 = vmatpush.bf16.msrb.mxu0 %v6430_v45  ;;  %4603 = vmatpush.bf16.msra.mxu1 %v6654_v35 }
 0x3bc   :  { %4615 = vmatpush.bf16.msra.mxu2 %v6906_v51  ;;  %v3359_v51 = vperm.slane %v11311_v61, 3 }
 0x3be   :  { %4591 = vmatpush.bf16.msrb.mxu0 %v6402_v0  ;;  %4604 = vmatpush.bf16.msra.mxu1 %v6626_v1  ;;  %v4308_v57 = vpop.f32.mrf.mxu0  ;;  %v4321_v12 = vpop.f32.mrf.mxu1 }
 0x3c0   :  { %4616 = vmatpush.bf16.msra.mxu2 %v6878_v59 }
 0x3c2   :  { %4592 = vmatpush.bf16.msrb.mxu0 %v6374_v50  ;;  %4605 = vmatpush.bf16.msra.mxu1 %v6598_v6 }
 0x3c4   :  { %4617 = vmatpush.bf16.msra.mxu2 %v6850_v9 }
 0x3c5   :  { %4593 = vmatmul.bf16.vlgmr.msrb.gmra.mxu0 %v10570_v56  ;;  %4606 = vmatmul.bf16.vlgmr.msra.gmra.mxu1 %v10572_v14 }
 0x3c6   :  { %v4310_v15 = vpop.f32.mrf.mxu0  ;;  %v4323_v16 = vpop.f32.mrf.mxu1 }
 0x3c7   :  { %7053 = vmatmul.msk.bf16.vlgmr.msrb.gmra.mxu3 %vm1260_vm0, %v10532_v58 }
 0x3c8   :  { %4618 = vmatpush.bf16.msra.mxu2 %v6822_v11 }
 0x3ca   :  { %v4282_v56 = vpop.f32.mrf.mxu2  ;;  %v4295_v18 = vpop.f32.mrf.mxu3 }
 0x3cb   :  { %4619 = vmatmul.bf16.vlgmr.msra.gmra.mxu2 %v10530_v55  ;;  %v4283_v14 = vadd.f32 %v4282_v56, %v3356_v17 }
 0x3cd   :  { %v4296_v8 = vadd.f32 %v4295_v18, %v4283_v14 }
 0x3ce   :  { %v4334_v20 = vpop.f32.mrf.mxu1  ;;  %v4373_v13 = vpop.f32.mrf.mxu0 }
 0x3cf   :  { %v4309_v21 = vadd.f32 %v4308_v57, %v4296_v8  ;;  %v4335_v29 = vadd.f32 %v4334_v20, %v3357_v26 }
 0x3d1   :  { %v4322_v55 = vadd.f32 %v4321_v12, %v4309_v21 }
 0x3d2   :  { %v4284_v46 = vpop.f32.mrf.mxu2  ;;  %v4297_v23 = vpop.f32.mrf.mxu3 }
 0x3d3   :  { %v7054_v45 = vmul.f32 -1.442695, %v4322_v55 }
 0x3d6   :  { %v4336_v58 = vpop.f32.mrf.mxu1  ;;  %v4375_v7 = vpop.f32.mrf.mxu0 }
 0x3da   :  { %v4347_v24 = vpop.f32.mrf.mxu2  ;;  %v4360_v25 = vpop.f32.mrf.mxu3 }
 0x3db   :  { %v4348_v27 = vadd.f32 %v4347_v24, %v4335_v29 }
 0x3dd   :  { %v4361_v40 = vadd.f32 %v4360_v25, %v4348_v27 }
 0x3de   :  { %v4386_v31 = vpop.f32.mrf.mxu0  ;;  %v4399_v28 = vpop.f32.mrf.mxu1 }
 0x3df   :  { %v4387_v42 = vadd.f32 %v4386_v31, %v3358_v33  ;;  %v4374_v32 = vadd.f32 %v4373_v13, %v4361_v40 }
 0x3e1   :  { %v4400_v34 = vadd.f32 %v4399_v28, %v4387_v42  ;;  %v7055_v63 = vmul.f32 -1.442695, %v4374_v32 }
 0x3e2   :  { %v4349_v19 = vpop.f32.mrf.mxu2  ;;  %v4362_v54 = vpop.f32.mrf.mxu3 }
 0x3e3   :  { %7618 = vpow2.f32 %v7055_v63 }
 0x3e6   :  { %v4388_v30 = vpop.f32.mrf.mxu0  ;;  %v4401_v44 = vpop.f32.mrf.mxu1 }
 0x3e9   :  { %v7619_v37 = vpop.eup %7618 }
 0x3ea   :  { %v4412_v47 = vpop.f32.mrf.mxu2  ;;  %v4425_v48 = vpop.f32.mrf.mxu3  ;;  %v4659_v60 = vadd.f32 1.0, %v7619_v37 }
 0x3eb   :  { %v4413_v41 = vadd.f32 %v4412_v47, %v4400_v34 }
 0x3ec   :  { %v4689_v26 = vand.u32 2147483647, %v4659_v60  ;;  %v4691_v31 = vand.u32 2147483648, %v4659_v60  ;;  %vm4685_vm4 = vweird.f32 %v4659_v60 }
 0x3ed   :  { %v4426_v36 = vadd.f32 %v4425_v48, %v4413_v41 }
 0x3ee   :  { %vm4690_vm9 = vcmp.eq.f32.partialorder %v4689_v26, 8.507059e+37  ;;  %v4692_v47 = vor.u32 1.1754944e-38, %v4691_v31 }
 0x3ef   :  { %v7056_v38 = vmul.f32 -1.442695, %v4426_v36 }
 0x3f1   :  { %7620 = vpow2.f32 %v7056_v38 }
 0x3f2   :  { %v4414_v35 = vpop.f32.mrf.mxu2  ;;  %v4427_v53 = vpop.f32.mrf.mxu3  ;;  %7622 = vpow2.f32 %v7054_v45 }
 0x3f3   :  { %7624 = vrcp.f32 %v4659_v60 }
 0x3f7   :  { %v7621_v52 = vpop.eup %7620 }
 0x3f8   :  { %v7623_v22 = vpop.eup %7622  ;;  %v11320_v59 = vadd.f32 1.0, %v7621_v52 }
 0x3f9   :  { %v11322_v4 = vadd.f32 1.0, %v7623_v22  ;;  %v7625_v11 = vpop.eup %7624 }
 0x3fa   :  { %v4438_v62 = vpop.f32.mrf.mxu3  ;;  %v4477_v2 = vpop.f32.mrf.mxu2  ;;  %7626 = vrcp.f32 %v11320_v59  ;;  %v4681_v12 = vmul.f32 %v7625_v11, %v4659_v60  ;;  %vm4686_vm2 = vweird.f32 %v7625_v11  ;;  %v4706_v27 = vand.u32 2147483648, %v11320_v59 }
 0x3fb   :  { %v4439_v0 = vadd.f32 %v4438_v62, %v3359_v51  ;;  %7628 = vrcp.f32 %v11322_v4  ;;  %vm11338_vm6 = vmor %vm4685_vm4, %vm4686_vm2  ;;  %vm4700_vm7 = vweird.f32 %v11320_v59  ;;  %v4704_v42 = vand.u32 2147483647, %v11320_v59 }
 0x3fc   :  { %v4682_v56 = vsub.f32 1.0, %v4681_v12  ;;  %v4707_v36 = vor.u32 1.1754944e-38, %v4706_v27  ;;  %vm4670_vm11 = vweird.f32 %v11322_v4  ;;  %v4676_v38 = vand.u32 2147483648, %v11322_v4 }
 0x3fd   :  { %v4674_v37 = vand.u32 2147483647, %v11322_v4  ;;  %vm4705_vm14 = vcmp.eq.f32.partialorder %v4704_v42, 8.507059e+37  ;;  %vm4783_vm2 = vcmask 1045508   ;;  %vm4785_vm4 = vcmask 1043456  }
 0x3fe   :  { %v4451_v39 = vpop.f32.mrf.mxu0  ;;  %v4464_v1 = vpop.f32.mrf.mxu1  ;;  %v4683_v21 = vmul.f32 %v7625_v11, %v4682_v56 }
 0x3ff   :  { %v4452_v3 = vadd.f32 %v4451_v39, %v4439_v0 }
 0x400   :  { %v7627_v57 = vpop.eup %7626  ;;  %v4684_v7 = vadd.f32 %v7625_v11, %v4683_v21 }
 0x401   :  { %v4465_v5 = vadd.f32 %v4464_v1, %v4452_v3  ;;  %v11326_v15 = vpop.eup %7628  ;;  %v4696_v16 = vmul.f32 %v7627_v57, %v11320_v59  ;;  %vm4701_vm3 = vweird.f32 %v7627_v57  ;;  %v4677_v1 = vor.u32 1.1754944e-38, %v4676_v38 }
 0x402   :  { %v4440_v50 = vpop.f32.mrf.mxu3  ;;  %v4479_v10 = vpop.f32.mrf.mxu2  ;;  %v4666_v8 = vmul.f32 %v11326_v15, %v11322_v4  ;;  %vm4671_vm5 = vweird.f32 %v11326_v15  ;;  %v4688_v40 = vsel %vm11338_vm6, %v7625_v11, %v4684_v7  ;;  %vm11346_vm8 = vmor %vm4700_vm7, %vm4701_vm3  ;;  %vm4675_vm3 = vcmp.eq.f32.partialorder %v4674_v37, 8.507059e+37 }
 0x403   :  { %v4478_v43 = vadd.f32 %v4477_v2, %v4465_v5  ;;  %v4697_v13 = vsub.f32 1.0, %v4696_v16  ;;  %v4693_v45 = vsel %vm4690_vm9, %v4692_v47, %v4688_v40  ;;  %vm11357_vm13 = vmor %vm4670_vm11, %vm4671_vm5 }
 0x404   :  { %v4667_v55 = vsub.f32 1.0, %v4666_v8  ;;  %v4777_v39 = vrot.slane %v4693_v45, 6 }
 0x405   :  { %v7057_v9 = vmul.f32 -1.442695, %v4478_v43  ;;  %v4698_v46 = vmul.f32 %v7627_v57, %v4697_v13 }
 0x406   :  { %v4453_v6 = vpop.f32.mrf.mxu0  ;;  %v4466_v49 = vpop.f32.mrf.mxu1  ;;  %v4668_v25 = vmul.f32 %v11326_v15, %v4667_v55 }
 0x407   :  { %7630 = vpow2.f32 %v7057_v9  ;;  %v4699_v29 = vadd.f32 %v7627_v57, %v4698_v46  ;;  %v3360_v49 = vperm.slane %v11311_v61, 4 }
 0x408   :  { %v4669_v34 = vadd.f32 %v11326_v15, %v4668_v25 }
 0x409   :  { %v4703_v41 = vsel %vm11346_vm8, %v7627_v57, %v4699_v29 }
 0x40a   :  { %v4708_v60 = vsel %vm4705_vm14, %v4707_v36, %v4703_v41  ;;  %v4673_v62 = vsel %vm11357_vm13, %v11326_v15, %v4669_v34  ;;  %v3361_v15 = vperm.slane %v11311_v61, 5 }
 0x40b   :  { %v4778_v59 = vrot.slane %v4708_v60, 4  ;;  %v4678_v5 = vsel %vm4675_vm3, %v4677_v1, %v4673_v62 }
 0x40c   :  { %v4782_v43 = vsel %vm2881_vm1, %v4678_v5, %v4777_v39 }
 0x40d   :  { %v7631_v17 = vpop.eup %7630 }
 0x40e   :  { %v11329_v18 = vpop.f32.mrf.mxu2  ;;  %v11331_v14 = vpop.f32.mrf.mxu1  ;;  %v4661_v20 = vadd.f32 1.0, %v7631_v17 }
 0x40f   :  { %v4491_v57 = vadd.f32 %v11329_v18, %v3360_v49  ;;  %v3362_v18 = vperm.slane %v11311_v61, 6 }
 0x410   :  { %7632 = vrcp.f32 %v4661_v20  ;;  %v4721_v44 = vand.u32 2147483648, %v4661_v20  ;;  %v4719_v63 = vand.u32 2147483647, %v4661_v20  ;;  %vm4715_vm12 = vweird.f32 %v4661_v20 }
 0x412   :  { %v4722_v52 = vor.u32 1.1754944e-38, %v4721_v44  ;;  %vm4720_vm0 = vcmp.eq.f32.partialorder %v4719_v63, 8.507059e+37 }
 0x416   :  { %v4492_v23 = vpop.f32.mrf.mxu2  ;;  %v4531_v58 = vpop.f32.mrf.mxu1 }
 0x417   :  { %v7633_v24 = vpop.eup %7632 }
 0x418   :  { %v4711_v28 = vmul.f32 %v7633_v24, %v4661_v20  ;;  %vm4716_vm10 = vweird.f32 %v7633_v24 }
 0x419   :  { %vm4717_vm15 = vmor %vm4715_vm12, %vm4716_vm10 }
 0x41a   :  { %v4712_v19 = vsub.f32 1.0, %v4711_v28  ;;  %v4503_v54 = vpop.f32.mrf.mxu3 }
 0x41b   :  { %v4504_v12 = vadd.f32 %v4503_v54, %v4491_v57 }
 0x41c   :  { %v4713_v48 = vmul.f32 %v7633_v24, %v4712_v19 }
 0x41e   :  { %v4516_v32 = vpop.f32.mrf.mxu0  ;;  %v4714_v51 = vadd.f32 %v7633_v24, %v4713_v48 }
 0x41f   :  { %v4517_v17 = vadd.f32 %v4516_v32, %v4504_v12 }
 0x420   :  { %v4718_v0 = vsel %vm4717_vm15, %v7633_v24, %v4714_v51 }
 0x421   :  { %v4723_v2 = vsel %vm4720_vm0, %v4722_v52, %v4718_v0  ;;  %v4530_v13 = vadd.f32 %v11331_v14, %v4517_v17 }
 0x422   :  { %v4542_v35 = vpop.f32.mrf.mxu1  ;;  %v4505_v22 = vpop.f32.mrf.mxu3  ;;  %v4779_v3 = vrot.slane %v4723_v2, 2 }
 0x423   :  { %v4543_v8 = vadd.f32 %v4542_v35, %v3361_v15  ;;  %v7058_v23 = vmul.f32 -1.442695, %v4530_v13 }
 0x424   :  { %v4784_v50 = vsel %vm4783_vm2, %v4778_v59, %v4779_v3 }
 0x425   :  { %v4786_v6 = vsel %vm4785_vm4, %v4782_v43, %v4784_v50 }
 0x426   :  { %v4518_v4 = vpop.f32.mrf.mxu0  ;;  %4791 = vst [vmem:[#allocation4] sm:$0xff] %v4786_v6 }
 0x42a   :  { %v4544_v9 = vpop.f32.mrf.mxu1 }
 0x42e   :  { %v4555_v10 = vpop.f32.mrf.mxu2  ;;  %v4581_v11 = vpop.f32.mrf.mxu0 }
 0x42f   :  { %v4556_v20 = vadd.f32 %v4555_v10, %v4543_v8 }
 0x436   :  { %v4557_v16 = vpop.f32.mrf.mxu2  ;;  %v4583_v56 = vpop.f32.mrf.mxu0 }
 0x43a   :  { %v4568_v21 = vpop.f32.mrf.mxu3 }
 0x43b   :  { %v4569_v55 = vadd.f32 %v4568_v21, %v4556_v20 }
 0x43d   :  { %v4582_v46 = vadd.f32 %v4581_v11, %v4569_v55 }
 0x43f   :  { %v7059_v7 = vmul.f32 -1.442695, %v4582_v46 }
 0x441   :  { %7634 = vpow2.f32 %v7059_v7 }
 0x442   :  { %v4594_v58 = vpop.f32.mrf.mxu0  ;;  %v4607_v24 = vpop.f32.mrf.mxu1  ;;  %7636 = vpow2.f32 %v7058_v23 }
 0x443   :  { %v4570_v25 = vpop.f32.mrf.mxu3  ;;  %v4595_v26 = vadd.f32 %v4594_v58, %v3362_v18 }
 0x445   :  { %v4608_v19 = vadd.f32 %v4607_v24, %v4595_v26 }
 0x447   :  { %v7635_v28 = vpop.eup %7634 }
 0x448   :  { %v7637_v27 = vpop.eup %7636  ;;  %v4663_v33 = vadd.f32 1.0, %v7635_v28 }
 0x449   :  { %v4662_v40 = vadd.f32 1.0, %v7637_v27 }
 0x44a   :  { %v4596_v31 = vpop.f32.mrf.mxu0  ;;  %v4609_v29 = vpop.f32.mrf.mxu1  ;;  %7638 = vrcp.f32 %v4663_v33  ;;  %v4751_v37 = vand.u32 2147483648, %v4663_v33  ;;  %vm4745_vm6 = vweird.f32 %v4663_v33  ;;  %v4749_v60 = vand.u32 2147483647, %v4663_v33 }
 0x44b   :  { %v4633_v54 = vpop.f32.mrf.mxu3  ;;  %7640 = vrcp.f32 %v4662_v40  ;;  %v4736_v1 = vand.u32 2147483648, %v4662_v40  ;;  %vm4730_vm11 = vweird.f32 %v4662_v40  ;;  %v4734_v43 = vand.u32 2147483647, %v4662_v40 }
 0x44c   :  { %v4752_v2 = vor.u32 1.1754944e-38, %v4751_v37  ;;  %vm4750_vm9 = vcmp.eq.f32.partialorder %v4749_v60, 8.507059e+37 }
 0x44d   :  { %v4737_v10 = vor.u32 1.1754944e-38, %v4736_v1  ;;  %vm4735_vm0 = vcmp.eq.f32.partialorder %v4734_v43, 8.507059e+37 }
 0x44e   :  { %v4620_v14 = vpop.f32.mrf.mxu2 }
 0x44f   :  { %v4621_v42 = vadd.f32 %v4620_v14, %v4608_v19 }
 0x450   :  { %v7639_v32 = vpop.eup %7638 }
 0x451   :  { %v4634_v30 = vadd.f32 %v4633_v54, %v4621_v42  ;;  %v4741_v61 = vmul.f32 %v7639_v32, %v4663_v33  ;;  %v7641_v48 = vpop.eup %7640  ;;  %vm4746_vm5 = vweird.f32 %v7639_v32 }
 0x452   :  { %v4726_v36 = vmul.f32 %v7641_v48, %v4662_v40  ;;  %vm4747_vm7 = vmor %vm4745_vm6, %vm4746_vm5  ;;  %vm4731_vm8 = vweird.f32 %v7641_v48 }
 0x453   :  { %v7060_v44 = vmul.f32 -1.442695, %v4634_v30  ;;  %v4635_v47 = vpop.f32.mrf.mxu3  ;;  %v4742_v41 = vsub.f32 1.0, %v4741_v61  ;;  %vm4732_vm13 = vmor %vm4730_vm11, %vm4731_vm8 }
 0x454   :  { %v4727_v35 = vsub.f32 1.0, %v4726_v36 }
 0x455   :  { %7642 = vpow2.f32 %v7060_v44  ;;  %v4743_v45 = vmul.f32 %v7639_v32, %v4742_v41 }
 0x456   :  { %v4622_v34 = vpop.f32.mrf.mxu2  ;;  %v4728_v52 = vmul.f32 %v7641_v48, %v4727_v35 }
 0x457   :  { %v4744_v53 = vadd.f32 %v7639_v32, %v4743_v45 }
 0x458   :  { %v4729_v22 = vadd.f32 %v7641_v48, %v4728_v52 }
 0x459   :  { %v4748_v39 = vsel %vm4747_vm7, %v7639_v32, %v4744_v53 }
 0x45a   :  { %v4753_v4 = vsel %vm4750_vm9, %v4752_v2, %v4748_v39  ;;  %v4733_v6 = vsel %vm4732_vm13, %v7641_v48, %v4729_v22 }
 0x45b   :  { %v7643_v63 = vpop.eup %7642  ;;  %v4780_v9 = vrot.slane %v4753_v4, 6  ;;  %v4738_v12 = vsel %vm4735_vm0, %v4737_v10, %v4733_v6 }
 0x45c   :  { %v4664_v38 = vadd.f32 1.0, %v7643_v63 }
 0x45d   :  { %v4787_v16 = vsel %vm2881_vm1, %v4738_v12, %v4780_v9 }
 0x45e   :  { %7644 = vrcp.f32 %v4664_v38  ;;  %v4766_v59 = vand.u32 2147483648, %v4664_v38  ;;  %v4764_v5 = vand.u32 2147483647, %v4664_v38  ;;  %vm4760_vm12 = vweird.f32 %v4664_v38 }
 0x460   :  { %v4767_v49 = vor.u32 1.1754944e-38, %v4766_v59  ;;  %vm4765_vm15 = vcmp.eq.f32.partialorder %v4764_v5, 8.507059e+37 }
 0x464   :  { %v7645_v51 = vpop.eup %7644 }
 0x465   :  { %v4756_v62 = vmul.f32 %v7645_v51, %v4664_v38  ;;  %vm4761_vm10 = vweird.f32 %v7645_v51 }
 0x466   :  { %vm4762_vm14 = vmor %vm4760_vm12, %vm4761_vm10 }
 0x467   :  { %v4757_v0 = vsub.f32 1.0, %v4756_v62 }
 0x469   :  { %v4758_v3 = vmul.f32 %v7645_v51, %v4757_v0 }
 0x46b   :  { %v4759_v50 = vadd.f32 %v7645_v51, %v4758_v3 }
 0x46d   :  { %v4763_v11 = vsel %vm4762_vm14, %v7645_v51, %v4759_v50 }
 0x46e   :  { %v4768_v57 = vsel %vm4765_vm15, %v4767_v49, %v4763_v11 }
 0x46f   :  { %v4781_v15 = vrot.slane %v4768_v57, 4 }
 0x471   :  { %v4788_v17 = vsel %vm4785_vm4, %v4787_v16, %v4781_v15 }
 0x472   :  { %4792 = vst [vmem:[#allocation4 + $0x8] sm:$0x3f] %v4788_v17 }
 0x473   :  { %4814 = dma.vmem_to_hbm [thread:$0]  %s4810_s22, 224, %s4812_s25, [#allocation5]  }
 0x474   :  { %7694 = dma.done.wait [#allocation3], 64  }
 0x475   :  { %7695 = vsyncadd [#allocation3], 4294967232 }
 0x476   :  { %7696 = dma.done.wait [#allocation5], 224  }
 0x477   :  { %7697 = vsyncadd [#allocation5], 4294967072 }
 0x478   :  { %4823 = vsyncpa [#allocation3], 1 }
 0x479   :  { %4824 = vsyncpa [#allocation5], 1 }

</bundles_post_ra>
